<compile_context>
chip_gen: v7x
topology: tpu7x:2x2x1
jax: 0.10.0
libtpu: 0.0.40
codegen_flags: <defaults>
</compile_context>

<pallas_src>
import functools

import jax
import jax.numpy as jnp
from jax import lax
from jax.experimental import pallas as pl
from jax.experimental.pallas import tpu as pltpu


# -----------------------------------------------------------------------------
# Pallas kernel: fused bidirectional LSTM over padded sequences + FC head
# -----------------------------------------------------------------------------
def _bilstm_fc_kernel(
    sched_ref,    # SMEM (2,) i32  [max(lengths), n_active_time_tiles]
    len_ref,      # VMEM (B, 1)    i32 per-row lengths (padded rows = 0)
    emb_f_ref,    # VMEM (TT, B, E) forward-order time tile (compute dtype)
    emb_b_ref,    # VMEM (TT, B, E) reverse-order time tile (compute dtype)
    wih_f_ref,    # VMEM (E, 4H)   fwd input->gate weights, gate order (i,f,o,g)
    wih_b_ref,    # VMEM (E, 4H)
    b_f_ref,      # VMEM (1, 4H)   f32, b_ih + b_hh folded
    b_b_ref,      # VMEM (1, 4H)   f32
    whh_f_ref,    # VMEM (H, 4H)
    whh_b_ref,    # VMEM (H, 4H)
    whh_fb_ref,   # VMEM (H, 8H)   [whh_f | whh_b] for the fused both-dir step
    wfc_f_ref,    # VMEM (H, O)    fc weight rows applied to fwd hidden
    wfc_b_ref,    # VMEM (H, O)    fc weight rows applied to bwd hidden
    bfc_ref,      # VMEM (1, O)    f32
    out_ref,      # VMEM (B, O)    f32 logits
    hf, cf, hb, cb,   # scratch VMEM (B, H) f32 LSTM state (persists across grid)
    gxf, gxb,         # scratch VMEM (TT, B, 4H) compute dtype: hoisted x@W_ih + b
    *,
    unroll,
):
    TT, B, E = emb_f_ref.shape
    H = hf.shape[1]
    i = pl.program_id(0)
    nt = pl.num_programs(0)

    max_len = sched_ref[0]
    fwd_base = i * TT              # global t of first step in the forward tile
    bwd_base = (nt - 1 - i) * TT   # global t of first step in the backward tile
    fwd_live = fwd_base < max_len
    bwd_live = bwd_base < max_len

    @pl.when(i == 0)
    def _init():
        hf[...] = jnp.zeros_like(hf)
        cf[...] = jnp.zeros_like(cf)
        hb[...] = jnp.zeros_like(hb)
        cb[...] = jnp.zeros_like(cb)

    # ---- hoisted input projections (+ folded bias): one MXU matmul per live
    #      direction per tile; dead tiles skip the matmul entirely ----
    @pl.when(fwd_live)
    def _proj_fwd():
        x = emb_f_ref[...].reshape(TT * B, E)
        g = jnp.dot(x, wih_f_ref[...], preferred_element_type=jnp.float32)
        gxf[...] = (g + b_f_ref[...]).reshape(TT, B, 4 * H).astype(gxf.dtype)

    @pl.when(bwd_live)
    def _proj_bwd():
        x = emb_b_ref[...].reshape(TT * B, E)
        g = jnp.dot(x, wih_b_ref[...], preferred_element_type=jnp.float32)
        gxb[...] = (g + b_b_ref[...]).reshape(TT, B, 4 * H).astype(gxb.dtype)

    lens = len_ref[...]            # (B, 1) i32
    cdt = whh_fb_ref.dtype         # compute dtype for MXU operands

    def activate(gates):
        # gate order (i, f, o, g): one sigmoid over 3H + one tanh over H
        sig = jax.nn.sigmoid(gates[:, : 3 * H])
        g = jnp.tanh(gates[:, 3 * H:])
        return sig[:, :H], sig[:, H: 2 * H], sig[:, 2 * H:], g

    def cell_update(gates, h_ref, c_ref, mask):
        ig, fg, og, gg = activate(gates)
        c_new = fg * c_ref[...] + ig * gg
        h_new = og * jnp.tanh(c_new)
        h_ref[...] = jnp.where(mask, h_new, h_ref[...])
        c_ref[...] = jnp.where(mask, c_new, c_ref[...])

    def fwd_step(s):
        gates = gxf[s] + jnp.dot(hf[...].astype(cdt), whh_f_ref[...],
                                 preferred_element_type=jnp.float32)
        cell_update(gates, hf, cf, (fwd_base + s) < lens)

    def bwd_step(s):
        s_b = TT - 1 - s
        gates = gxb[s_b] + jnp.dot(hb[...].astype(cdt), whh_b_ref[...],
                                   preferred_element_type=jnp.float32)
        cell_update(gates, hb, cb, (bwd_base + s_b) < lens)

    def both_step(s):
        # Fused recurrent matmul for both directions: one (2B,H)x(H,8H) issue.
        s_b = TT - 1 - s
        h2 = jnp.concatenate([hf[...], hb[...]], axis=0).astype(cdt)
        g2 = jnp.dot(h2, whh_fb_ref[...], preferred_element_type=jnp.float32)
        cell_update(gxf[s] + g2[:B, : 4 * H], hf, cf, (fwd_base + s) < lens)
        cell_update(gxb[s_b] + g2[B:, 4 * H:], hb, cb, (bwd_base + s_b) < lens)

    def run_loop(step_fn):
        def body(s, carry):
            step_fn(s)
            return carry
        lax.fori_loop(0, TT, body, 0, unroll=unroll)

    # Per-direction dead-work gating: run only the live direction's recurrence.
    @pl.when(fwd_live & bwd_live)
    def _both():
        run_loop(both_step)

    @pl.when(fwd_live & jnp.logical_not(bwd_live))
    def _fwd_only():
        run_loop(fwd_step)

    @pl.when(jnp.logical_not(fwd_live) & bwd_live)
    def _bwd_only():
        run_loop(bwd_step)

    # ---- fc head: two dots instead of concat(hf, hb) @ W_fc ----
    @pl.when(i == nt - 1)
    def _head():
        out = (
            jnp.dot(hf[...].astype(wfc_f_ref.dtype), wfc_f_ref[...],
                    preferred_element_type=jnp.float32)
            + jnp.dot(hb[...].astype(wfc_b_ref.dtype), wfc_b_ref[...],
                      preferred_element_type=jnp.float32)
            + bfc_ref[...]
        )
        out_ref[...] = out.astype(out_ref.dtype)


# -----------------------------------------------------------------------------
# Wrappers
# -----------------------------------------------------------------------------
def prepare_kernel_params(params, compute_dtype=jnp.bfloat16):
    """Reorder LSTM gate columns (i,f,g,o)->(i,f,o,g), split the fc weight by
    direction, build the fused [whh_f|whh_b] weight, cast MXU operands to
    compute_dtype (biases stay f32)."""
    H = params["whh_f"].shape[0]

    def reorder(w):  # columns [i|f|g|o] -> [i|f|o|g]
        return jnp.concatenate(
            [w[:, : 2 * H], w[:, 3 * H:], w[:, 2 * H: 3 * H]], axis=1)

    wih_f = reorder(params["wih_f"]).astype(compute_dtype)
    whh_f = reorder(params["whh_f"]).astype(compute_dtype)
    wih_b = reorder(params["wih_b"]).astype(compute_dtype)
    whh_b = reorder(params["whh_b"]).astype(compute_dtype)

    return {
        "wih_f": wih_f,
        "whh_f": whh_f,
        "b_f": reorder(params["b_f"]).astype(jnp.float32),
        "wih_b": wih_b,
        "whh_b": whh_b,
        "b_b": reorder(params["b_b"]).astype(jnp.float32),
        "whh_fb": jnp.concatenate([whh_f, whh_b], axis=1),
        "wfc_f": params["wfc"][:H].astype(compute_dtype),
        "wfc_b": params["wfc"][H:].astype(compute_dtype),
        "bfc": params["bfc"].astype(jnp.float32),
    }


def bilstm_fc_pallas(embedded, lengths, kparams, *, time_tile=128,
                     vmem_budget_bytes=24 * 1024 * 1024, recurrence_unroll=4):
    """embedded: (T, B, E) f32, lengths: (B,) ints. Returns (B, O) f32 logits."""
    T, B, E = embedded.shape
    H = kparams["whh_f"].shape[0]
    O = kparams["wfc_f"].shape[1]
    compute_dtype = kparams["wih_f"].dtype
    cbytes = jnp.dtype(compute_dtype).itemsize

    B_pad = ((B + 7) // 8) * 8

    weight_bytes = sum(int(v.size) * jnp.dtype(v.dtype).itemsize
                       for v in kparams.values())

    def vmem_bytes(tt):
        emb_tiles = 2 * 2 * tt * B_pad * E * cbytes   # fwd+bwd streams, 2x buffered
        gx = 2 * tt * B_pad * 4 * H * cbytes          # compute-dtype scratch
        state = 4 * B_pad * H * 4
        return (emb_tiles + gx + state + 2 * weight_bytes
                + 2 * B_pad * max(O, 128) * 4)

    # v7x-safe tiling: shrink the time tile until the working set fits the budget.
    TT = max(1, min(int(time_tile), T))
    while TT > 8 and vmem_bytes(TT) > vmem_budget_bytes:
        TT = max(8, TT // 2)
    nt = (T + TT - 1) // TT
    T_pad = nt * TT

    emb = embedded.astype(compute_dtype)
    emb = jnp.pad(emb, ((0, T_pad - T), (0, B_pad - B), (0, 0)))
    # Assumption (matches pack_padded_sequence): 0 <= length <= T. Padded batch
    # rows get length 0, so their state never updates and the bwd masking
    # ("state stays 0 until t = len-1") remains valid.
    lens = jnp.clip(lengths.astype(jnp.int32), 0, T)
    lens = jnp.pad(lens, (0, B_pad - B))
    lens_col = lens.reshape(B_pad, 1)
    max_len = jnp.max(lens)
    n_active = jnp.clip((max_len + TT - 1) // TT, 1, nt)
    sched = jnp.stack([max_len, n_active]).astype(jnp.int32)

    vmem = pl.BlockSpec(memory_space=pltpu.MemorySpace.VMEM)

    # Dead tiles (past max_len) repeat a previously-needed block index so Pallas
    # skips their HBM->VMEM DMA entirely.
    def fwd_map(i, sched_ref):
        return (jnp.minimum(i, sched_ref[1] - 1), 0, 0)

    def bwd_map(i, sched_ref):
        return (jnp.minimum(nt - 1 - i, sched_ref[1] - 1), 0, 0)

    cost = pl.CostEstimate(
        flops=int(2 * 2 * T_pad * B_pad * 4 * H * (E + H) + 2 * B_pad * 2 * H * O),
        transcendentals=int(2 * T_pad * B_pad * 5 * H),
        bytes_accessed=int(2 * T_pad * B_pad * E * cbytes + weight_bytes
                           + B_pad * O * 4),
    )

    grid_spec = pltpu.PrefetchScalarGridSpec(
        num_scalar_prefetch=1,
        grid=(nt,),
        in_specs=[
            vmem,                                         # lengths (B,1)
            pl.BlockSpec((TT, B_pad, E), fwd_map),        # fwd-order time tiles
            pl.BlockSpec((TT, B_pad, E), bwd_map),        # reverse-order tiles
            vmem, vmem, vmem, vmem,                       # wih_f, wih_b, b_f, b_b
            vmem, vmem, vmem,                             # whh_f, whh_b, whh_fb
            vmem, vmem, vmem,                             # wfc_f, wfc_b, bfc
        ],
        out_specs=pl.BlockSpec((B_pad, O), lambda i, sched_ref: (0, 0)),
        scratch_shapes=[pltpu.VMEM((B_pad, H), jnp.float32)] * 4
                     + [pltpu.VMEM((TT, B_pad, 4 * H), compute_dtype)] * 2,
    )

    kernel = functools.partial(
        _bilstm_fc_kernel, unroll=max(1, min(TT, int(recurrence_unroll))))

    out = pl.pallas_call(
        kernel,
        out_shape=jax.ShapeDtypeStruct((B_pad, O), jnp.float32),
        grid_spec=grid_spec,
        compiler_params=pltpu.CompilerParams(
            dimension_semantics=("arbitrary",),   # serial state carry across tiles
            vmem_limit_bytes=int(min(56 * 1024 * 1024,
                                     max(32 * 1024 * 1024, 2 * vmem_bytes(TT)))),
        ),
        cost_estimate=cost,
    )(
        sched, lens_col, emb, emb,
        kparams["wih_f"], kparams["wih_b"], kparams["b_f"], kparams["b_b"],
        kparams["whh_f"], kparams["whh_b"], kparams["whh_fb"],
        kparams["wfc_f"], kparams["wfc_b"], kparams["bfc"],
    )
    return out[:B]


def rnn_forward(text, text_lengths, params, *, compute_dtype=jnp.bfloat16,
                time_tile=128):
    """text: (T, B) int token ids (time-major, as nn.LSTM default);
    text_lengths: (B,) ints. Returns (B, output_dim) f32 logits."""
    # TODO(synk): dropout is identity here (eval mode); training-mode dropout not implemented.
    # TODO(synk): the embedding gather stays in XLA; fusing it into the kernel
    # (scalar-prefetch token ids + DMA row gather) would save ~3x T*B*E HBM traffic.
    embedded = params["embedding"][text]                 # (T, B, E) f32
    kparams = prepare_kernel_params(params, compute_dtype)
    return bilstm_fc_pallas(embedded, text_lengths, kparams, time_tile=time_tile)


def init_params(key, vocab_size, embedding_dim, hidden_dim, output_dim, pad_idx):
    E, H, O = embedding_dim, hidden_dim, output_dim
    keys = jax.random.split(key, 10)
    s = 1.0 / jnp.sqrt(jnp.float32(H))

    def u(k, shape):
        return jax.random.uniform(k, shape, jnp.float32, -s, s)

    emb = jax.random.normal(keys[0], (vocab_size, E), jnp.float32) * 0.1
    emb = emb.at[pad_idx].set(0.0)  # padding_idx row is zero, as in nn.Embedding

    return {
        "embedding": emb,
        # LSTM weights pre-transposed: x @ W_ih (E,4H), h @ W_hh (H,4H),
        # PyTorch gate order (i, f, g, o); biases b_ih + b_hh folded.
        "wih_f": u(keys[1], (E, 4 * H)),
        "whh_f": u(keys[2], (H, 4 * H)),
        "b_f":   u(keys[3], (1, 4 * H)),
        "wih_b": u(keys[4], (E, 4 * H)),
        "whh_b": u(keys[5], (H, 4 * H)),
        "b_b":   u(keys[6], (1, 4 * H)),
        "wfc":   u(keys[7], (2 * H, O)),
        "bfc":   u(keys[8], (1, O)),
    }


# -----------------------------------------------------------------------------
# Pure-JAX reference (standard (i,f,g,o) layout, no Pallas) for correctness
# -----------------------------------------------------------------------------
def _reference(text, lengths, params):
    emb = params["embedding"][text]
    T, B, E = emb.shape
    H = params["whh_f"].shape[0]
    lens = lengths.reshape(B, 1)

    def step(x, h, c, wih, whh, b):
        g = x @ wih + h @ whh + b
        i = jax.nn.sigmoid(g[:, :H])
        f = jax.nn.sigmoid(g[:, H:2 * H])
        gg = jnp.tanh(g[:, 2 * H:3 * H])
        o = jax.nn.sigmoid(g[:, 3 * H:])
        c_new = f * c + i * gg
        return o * jnp.tanh(c_new), c_new

    hf = cf = hb = cb = jnp.zeros((B, H), jnp.float32)
    for t in range(T):
        hn, cn = step(emb[t], hf, cf, params["wih_f"], params["whh_f"], params["b_f"])
        m = t < lens
        hf = jnp.where(m, hn, hf)
        cf = jnp.where(m, cn, cf)
    for t in range(T - 1, -1, -1):
        hn, cn = step(emb[t], hb, cb, params["wih_b"], params["whh_b"], params["b_b"])
        m = t < lens
        hb = jnp.where(m, hn, hb)
        cb = jnp.where(m, cn, cb)
    return jnp.concatenate([hf, hb], axis=1) @ params["wfc"] + params["bfc"]


if __name__ == "__main__":
    VOCAB, E, H, O = 50, 32, 32, 4
    T, B = 8, 4
    PAD_IDX = 0

    key = jax.random.PRNGKey(0)
    kp_key, kt_key = jax.random.split(key)
    params = init_params(kp_key, VOCAB, E, H, O, PAD_IDX)

    def make_batch(lengths):
        txt = jax.random.randint(kt_key, (T, B), 2, VOCAB, dtype=jnp.int32)
        t_idx = jnp.arange(T)[:, None]
        return jnp.where(t_idx < lengths[None, :], txt, PAD_IDX)

    # Batch 1: sorted-descending lengths (pack_padded_sequence enforce_sorted=True)
    lens1 = jnp.array([8, 6, 5, 3], dtype=jnp.int32)
    text1 = make_batch(lens1)
    ref1 = _reference(text1, lens1, params)

    # Exact-math f32 path, 2 time tiles (exercises cross-tile state carry).
    out_f32 = rnn_forward(text1, lens1, params, compute_dtype=jnp.float32,
                          time_tile=4)
    jax.block_until_ready(out_f32)
    assert out_f32.shape == (B, O)
    assert jnp.allclose(out_f32, ref1, rtol=1e-4, atol=1e-4), "f32 kernel mismatch"

    # Default bf16 MXU path (f32 accumulation / f32 state, bf16 gx scratch),
    # single time tile; loose tolerance covers operand + gx rounding.
    out_bf16 = rnn_forward(text1, lens1, params)
    jax.block_until_ready(out_bf16)
    assert jnp.allclose(out_bf16, ref1, rtol=1e-1, atol=1e-1), "bf16 kernel mismatch"

    # Batch 2: shorter sequences + tiny tiles: exercises dead-tile DMA clamping
    # and the fwd-only / bwd-only / fused-both recurrence branches.
    lens2 = jnp.array([5, 4, 2, 2], dtype=jnp.int32)
    text2 = make_batch(lens2)
    ref2 = _reference(text2, lens2, params)
    out2 = rnn_forward(text2, lens2, params, compute_dtype=jnp.float32,
                       time_tile=2)
    jax.block_until_ready(out2)
    assert jnp.allclose(out2, ref2, rtol=1e-4, atol=1e-4), "short-batch mismatch"

    print("KERNEL_OK")
</pallas_src>

<mosaic_0001>
module attributes {stable_mosaic.version = 11 : i64} {
  func.func @_bilstm_fc_kernel(%arg0: i32, %arg1: memref<2xi32, #tpu.memory_space<smem>>, %arg2: memref<8x1xi32, #tpu.memory_space<vmem>>, %arg3: memref<4x8x32xf32, #tpu.memory_space<vmem>>, %arg4: memref<4x8x32xf32, #tpu.memory_space<vmem>>, %arg5: memref<32x128xf32, #tpu.memory_space<vmem>>, %arg6: memref<32x128xf32, #tpu.memory_space<vmem>>, %arg7: memref<1x128xf32, #tpu.memory_space<vmem>>, %arg8: memref<1x128xf32, #tpu.memory_space<vmem>>, %arg9: memref<32x128xf32, #tpu.memory_space<vmem>>, %arg10: memref<32x128xf32, #tpu.memory_space<vmem>>, %arg11: memref<32x256xf32, #tpu.memory_space<vmem>>, %arg12: memref<32x4xf32, #tpu.memory_space<vmem>>, %arg13: memref<32x4xf32, #tpu.memory_space<vmem>>, %arg14: memref<1x4xf32, #tpu.memory_space<vmem>>, %arg15: memref<8x4xf32, #tpu.memory_space<vmem>>, %arg16: memref<8x32xf32, #tpu.memory_space<vmem>>, %arg17: memref<8x32xf32, #tpu.memory_space<vmem>>, %arg18: memref<8x32xf32, #tpu.memory_space<vmem>>, %arg19: memref<8x32xf32, #tpu.memory_space<vmem>>, %arg20: memref<4x8x128xf32, #tpu.memory_space<vmem>>, %arg21: memref<4x8x128xf32, #tpu.memory_space<vmem>>) attributes {dimension_semantics = [#tpu.dimension_semantics<arbitrary>], iteration_bounds = array<i64: 2>, scalar_prefetch = 1 : i64, scratch_operands = 6 : i64, tpu.core_type = #tpu.core_type<tc>, window_params = [{pipeline_mode = #tpu.pipeline_mode<synchronous>, transform_indices = @transform_0, window_bounds = array<i64: 8, 1>}, {transform_indices = @transform_1, window_bounds = array<i64: 4, 8, 32>}, {transform_indices = @transform_2, window_bounds = array<i64: 4, 8, 32>}, {pipeline_mode = #tpu.pipeline_mode<synchronous>, transform_indices = @transform_3, window_bounds = array<i64: 32, 128>}, {pipeline_mode = #tpu.pipeline_mode<synchronous>, transform_indices = @transform_4, window_bounds = array<i64: 32, 128>}, {pipeline_mode = #tpu.pipeline_mode<synchronous>, transform_indices = @transform_5, window_bounds = array<i64: 1, 128>}, {pipeline_mode = #tpu.pipeline_mode<synchronous>, transform_indices = @transform_6, window_bounds = array<i64: 1, 128>}, {pipeline_mode = #tpu.pipeline_mode<synchronous>, transform_indices = @transform_7, window_bounds = array<i64: 32, 128>}, {pipeline_mode = #tpu.pipeline_mode<synchronous>, transform_indices = @transform_8, window_bounds = array<i64: 32, 128>}, {pipeline_mode = #tpu.pipeline_mode<synchronous>, transform_indices = @transform_9, window_bounds = array<i64: 32, 256>}, {pipeline_mode = #tpu.pipeline_mode<synchronous>, transform_indices = @transform_10, window_bounds = array<i64: 32, 4>}, {pipeline_mode = #tpu.pipeline_mode<synchronous>, transform_indices = @transform_11, window_bounds = array<i64: 32, 4>}, {pipeline_mode = #tpu.pipeline_mode<synchronous>, transform_indices = @transform_12, window_bounds = array<i64: 1, 4>}, {pipeline_mode = #tpu.pipeline_mode<synchronous>, transform_indices = @transform_13, window_bounds = array<i64: 8, 4>}]} {
    %c0 = arith.constant 0 : index
    %0 = memref.load %arg1[%c0] : memref<2xi32, #tpu.memory_space<smem>>
    %c4_i32 = arith.constant 4 : i32
    %1 = arith.muli %arg0, %c4_i32 : i32
    %c1_i32 = arith.constant 1 : i32
    %2 = arith.subi %c1_i32, %arg0 : i32
    %c4_i32_0 = arith.constant 4 : i32
    %3 = arith.muli %2, %c4_i32_0 : i32
    %4 = arith.cmpi slt, %1, %0 : i32
    %5 = arith.cmpi slt, %3, %0 : i32
    %c0_i32 = arith.constant 0 : i32
    %6 = arith.cmpi eq, %arg0, %c0_i32 : i32
    %7 = arith.extui %6 : i1 to i32
    %c0_i32_1 = arith.constant 0 : i32
    %8 = arith.cmpi ne, %7, %c0_i32_1 : i32
    scf.if %8 {
      %cst = arith.constant 0.000000e+00 : f32
      %28 = vector.broadcast %cst : f32 to vector<8x32xf32>
      %c0_12 = arith.constant 0 : index
      %c0_13 = arith.constant 0 : index
      %29 = vector.load %arg16[%c0_12, %c0_13] : memref<8x32xf32, #tpu.memory_space<vmem>>, vector<8x32xf32>
      tpu.vector_store %arg16[%c0_12, %c0_13], %28 {strides = array<i32>} : memref<8x32xf32, #tpu.memory_space<vmem>>, vector<8x32xf32>,
      %cst_14 = arith.constant 0.000000e+00 : f32
      %30 = vector.broadcast %cst_14 : f32 to vector<8x32xf32>
      %c0_15 = arith.constant 0 : index
      %c0_16 = arith.constant 0 : index
      %31 = vector.load %arg17[%c0_15, %c0_16] : memref<8x32xf32, #tpu.memory_space<vmem>>, vector<8x32xf32>
      tpu.vector_store %arg17[%c0_15, %c0_16], %30 {strides = array<i32>} : memref<8x32xf32, #tpu.memory_space<vmem>>, vector<8x32xf32>,
      %cst_17 = arith.constant 0.000000e+00 : f32
      %32 = vector.broadcast %cst_17 : f32 to vector<8x32xf32>
      %c0_18 = arith.constant 0 : index
      %c0_19 = arith.constant 0 : index
      %33 = vector.load %arg18[%c0_18, %c0_19] : memref<8x32xf32, #tpu.memory_space<vmem>>, vector<8x32xf32>
      tpu.vector_store %arg18[%c0_18, %c0_19], %32 {strides = array<i32>} : memref<8x32xf32, #tpu.memory_space<vmem>>, vector<8x32xf32>,
      %cst_20 = arith.constant 0.000000e+00 : f32
      %34 = vector.broadcast %cst_20 : f32 to vector<8x32xf32>
      %c0_21 = arith.constant 0 : index
      %c0_22 = arith.constant 0 : index
      %35 = vector.load %arg19[%c0_21, %c0_22] : memref<8x32xf32, #tpu.memory_space<vmem>>, vector<8x32xf32>
      tpu.vector_store %arg19[%c0_21, %c0_22], %34 {strides = array<i32>} : memref<8x32xf32, #tpu.memory_space<vmem>>, vector<8x32xf32>,
    } else {
    }
    %9 = arith.extui %4 : i1 to i32
    %c0_i32_2 = arith.constant 0 : i32
    %10 = arith.cmpi ne, %9, %c0_i32_2 : i32
    scf.if %10 {
      %c0_12 = arith.constant 0 : index
      %c0_13 = arith.constant 0 : index
      %c0_14 = arith.constant 0 : index
      %28 = vector.load %arg3[%c0_12, %c0_13, %c0_14] : memref<4x8x32xf32, #tpu.memory_space<vmem>>, vector<4x8x32xf32>
      %29 = vector.shape_cast %28 : vector<4x8x32xf32> to vector<32x32xf32>
      %c0_15 = arith.constant 0 : index
      %c0_16 = arith.constant 0 : index
      %30 = vector.load %arg5[%c0_15, %c0_16] : memref<32x128xf32, #tpu.memory_space<vmem>>, vector<32x128xf32>
      %cst = arith.constant dense<0.000000e+00> : vector<32x128xf32>
      %31 = tpu.matmul %29, %30, %cst {dimension_numbers = #tpu.dot_dimension_numbers<[1], [0], [0], [1], [0, 0, 1, 1], [], []>} : vector<32x32xf32>, vector<32x128xf32>, vector<32x128xf32> -> vector<32x128xf32>
      %c0_17 = arith.constant 0 : index
      %c0_18 = arith.constant 0 : index
      %32 = vector.load %arg7[%c0_17, %c0_18] : memref<1x128xf32, #tpu.memory_space<vmem>>, vector<1x128xf32>
      %33 = vector.broadcast %32 : vector<1x128xf32> to vector<32x128xf32>
      %34 = arith.addf %31, %33 : vector<32x128xf32>
      %35 = vector.shape_cast %34 : vector<32x128xf32> to vector<4x8x128xf32>
      %c0_19 = arith.constant 0 : index
      %c0_20 = arith.constant 0 : index
      %c0_21 = arith.constant 0 : index
      %36 = vector.load %arg20[%c0_19, %c0_20, %c0_21] : memref<4x8x128xf32, #tpu.memory_space<vmem>>, vector<4x8x128xf32>
      tpu.vector_store %arg20[%c0_19, %c0_20, %c0_21], %35 {strides = array<i32>} : memref<4x8x128xf32, #tpu.memory_space<vmem>>, vector<4x8x128xf32>,
    } else {
    }
    %11 = arith.extui %5 : i1 to i32
    %c0_i32_3 = arith.constant 0 : i32
    %12 = arith.cmpi ne, %11, %c0_i32_3 : i32
    scf.if %12 {
      %c0_12 = arith.constant 0 : index
      %c0_13 = arith.constant 0 : index
      %c0_14 = arith.constant 0 : index
      %28 = vector.load %arg4[%c0_12, %c0_13, %c0_14] : memref<4x8x32xf32, #tpu.memory_space<vmem>>, vector<4x8x32xf32>
      %29 = vector.shape_cast %28 : vector<4x8x32xf32> to vector<32x32xf32>
      %c0_15 = arith.constant 0 : index
      %c0_16 = arith.constant 0 : index
      %30 = vector.load %arg6[%c0_15, %c0_16] : memref<32x128xf32, #tpu.memory_space<vmem>>, vector<32x128xf32>
      %cst = arith.constant dense<0.000000e+00> : vector<32x128xf32>
      %31 = tpu.matmul %29, %30, %cst {dimension_numbers = #tpu.dot_dimension_numbers<[1], [0], [0], [1], [0, 0, 1, 1], [], []>} : vector<32x32xf32>, vector<32x128xf32>, vector<32x128xf32> -> vector<32x128xf32>
      %c0_17 = arith.constant 0 : index
      %c0_18 = arith.constant 0 : index
      %32 = vector.load %arg8[%c0_17, %c0_18] : memref<1x128xf32, #tpu.memory_space<vmem>>, vector<1x128xf32>
      %33 = vector.broadcast %32 : vector<1x128xf32> to vector<32x128xf32>
      %34 = arith.addf %31, %33 : vector<32x128xf32>
      %35 = vector.shape_cast %34 : vector<32x128xf32> to vector<4x8x128xf32>
      %c0_19 = arith.constant 0 : index
      %c0_20 = arith.constant 0 : index
      %c0_21 = arith.constant 0 : index
      %36 = vector.load %arg21[%c0_19, %c0_20, %c0_21] : memref<4x8x128xf32, #tpu.memory_space<vmem>>, vector<4x8x128xf32>
      tpu.vector_store %arg21[%c0_19, %c0_20, %c0_21], %35 {strides = array<i32>} : memref<4x8x128xf32, #tpu.memory_space<vmem>>, vector<4x8x128xf32>,
    } else {
    }
    %c0_4 = arith.constant 0 : index
    %c0_5 = arith.constant 0 : index
    %13 = vector.load %arg2[%c0_4, %c0_5] : memref<8x1xi32, #tpu.memory_space<vmem>>, vector<8x1xi32>
    %14 = arith.andi %4, %5 : i1
    %15 = arith.extui %14 : i1 to i32
    %c0_i32_6 = arith.constant 0 : i32
    %16 = arith.cmpi ne, %15, %c0_i32_6 : i32
    scf.if %16 {
      %c0_i32_12 = arith.constant 0 : i32
      %c3_i32 = arith.constant 3 : i32
      %28 = arith.subi %c3_i32, %c0_i32_12 : i32
      %c0_13 = arith.constant 0 : index
      %c0_14 = arith.constant 0 : index
      %29 = vector.load %arg16[%c0_13, %c0_14] : memref<8x32xf32, #tpu.memory_space<vmem>>, vector<8x32xf32>
      %c0_15 = arith.constant 0 : index
      %c0_16 = arith.constant 0 : index
      %30 = vector.load %arg18[%c0_15, %c0_16] : memref<8x32xf32, #tpu.memory_space<vmem>>, vector<8x32xf32>
      %31 = tpu.concatenate %29, %30 in 0 : vector<8x32xf32>, vector<8x32xf32> -> vector<16x32xf32>
      %c0_17 = arith.constant 0 : index
      %c0_18 = arith.constant 0 : index
      %32 = vector.load %arg11[%c0_17, %c0_18] : memref<32x256xf32, #tpu.memory_space<vmem>>, vector<32x256xf32>
      %cst = arith.constant dense<0.000000e+00> : vector<16x256xf32>
      %33 = tpu.matmul %31, %32, %cst {dimension_numbers = #tpu.dot_dimension_numbers<[1], [0], [0], [1], [0, 0, 1, 1], [], []>} : vector<16x32xf32>, vector<32x256xf32>, vector<16x256xf32> -> vector<16x256xf32>
      %34 = arith.index_cast %c0_i32_12 : i32 to index
      %c0_19 = arith.constant 0 : index
      %c0_20 = arith.constant 0 : index
      %35 = vector.load %arg20[%34, %c0_19, %c0_20] : memref<4x8x128xf32, #tpu.memory_space<vmem>>, vector<1x8x128xf32>
      %36 = vector.shape_cast %35 : vector<1x8x128xf32> to vector<8x128xf32>
      %37 = vector.extract_strided_slice %33 {offsets = [0, 0], sizes = [8, 128], strides = [1, 1]} : vector<16x256xf32> to vector<8x128xf32>
      %38 = arith.addf %36, %37 : vector<8x128xf32>
      %39 = arith.addi %1, %c0_i32_12 : i32
      %40 = vector.broadcast %39 : i32 to vector<8x1xi32>
      %41 = arith.cmpi slt, %40, %13 : vector<8x1xi32>
      %42 = vector.extract_strided_slice %38 {offsets = [0, 0], sizes = [8, 96], strides = [1, 1]} : vector<8x128xf32> to vector<8x96xf32>
      %43 = arith.negf %42 : vector<8x96xf32>
      %44 = math.exp %43 : vector<8x96xf32>
      %cst_21 = arith.constant 1.000000e+00 : f32
      %45 = vector.broadcast %cst_21 : f32 to vector<8x96xf32>
      %46 = arith.addf %45, %44 : vector<8x96xf32>
      %47 = arith.divf %45, %46 : vector<8x96xf32>
      %48 = vector.extract_strided_slice %38 {offsets = [0, 96], sizes = [8, 32], strides = [1, 1]} : vector<8x128xf32> to vector<8x32xf32>
      %49 = math.tanh %48 : vector<8x32xf32>
      %50 = vector.extract_strided_slice %47 {offsets = [0, 0], sizes = [8, 32], strides = [1, 1]} : vector<8x96xf32> to vector<8x32xf32>
      %51 = vector.extract_strided_slice %47 {offsets = [0, 32], sizes = [8, 32], strides = [1, 1]} : vector<8x96xf32> to vector<8x32xf32>
      %52 = vector.extract_strided_slice %47 {offsets = [0, 64], sizes = [8, 32], strides = [1, 1]} : vector<8x96xf32> to vector<8x32xf32>
      %c0_22 = arith.constant 0 : index
      %c0_23 = arith.constant 0 : index
      %53 = vector.load %arg17[%c0_22, %c0_23] : memref<8x32xf32, #tpu.memory_space<vmem>>, vector<8x32xf32>
      %54 = arith.mulf %51, %53 : vector<8x32xf32>
      %55 = arith.mulf %50, %49 : vector<8x32xf32>
      %56 = arith.addf %54, %55 : vector<8x32xf32>
      %57 = math.tanh %56 : vector<8x32xf32>
      %58 = arith.mulf %52, %57 : vector<8x32xf32>
      %c0_24 = arith.constant 0 : index
      %c0_25 = arith.constant 0 : index
      %59 = vector.load %arg16[%c0_24, %c0_25] : memref<8x32xf32, #tpu.memory_space<vmem>>, vector<8x32xf32>
      %60 = vector.shape_cast %41 : vector<8x1xi1> to vector<8x1xi1>
      %61 = vector.broadcast %60 : vector<8x1xi1> to vector<8x32xi1>
      %62 = arith.select %61, %58, %59 : vector<8x32xi1>, vector<8x32xf32>
      %c0_26 = arith.constant 0 : index
      %c0_27 = arith.constant 0 : index
      %63 = vector.load %arg16[%c0_26, %c0_27] : memref<8x32xf32, #tpu.memory_space<vmem>>, vector<8x32xf32>
      tpu.vector_store %arg16[%c0_26, %c0_27], %62 {strides = array<i32>} : memref<8x32xf32, #tpu.memory_space<vmem>>, vector<8x32xf32>,
      %c0_28 = arith.constant 0 : index
      %c0_29 = arith.constant 0 : index
      %64 = vector.load %arg17[%c0_28, %c0_29] : memref<8x32xf32, #tpu.memory_space<vmem>>, vector<8x32xf32>
      %65 = vector.shape_cast %41 : vector<8x1xi1> to vector<8x1xi1>
      %66 = vector.broadcast %65 : vector<8x1xi1> to vector<8x32xi1>
      %67 = arith.select %66, %56, %64 : vector<8x32xi1>, vector<8x32xf32>
      %c0_30 = arith.constant 0 : index
      %c0_31 = arith.constant 0 : index
      %68 = vector.load %arg17[%c0_30, %c0_31] : memref<8x32xf32, #tpu.memory_space<vmem>>, vector<8x32xf32>
      tpu.vector_store %arg17[%c0_30, %c0_31], %67 {strides = array<i32>} : memref<8x32xf32, #tpu.memory_space<vmem>>, vector<8x32xf32>,
      %69 = arith.index_cast %28 : i32 to index
      %c0_32 = arith.constant 0 : index
      %c0_33 = arith.constant 0 : index
      %70 = vector.load %arg21[%69, %c0_32, %c0_33] : memref<4x8x128xf32, #tpu.memory_space<vmem>>, vector<1x8x128xf32>
      %71 = vector.shape_cast %70 : vector<1x8x128xf32> to vector<8x128xf32>
      %72 = vector.extract_strided_slice %33 {offsets = [8, 128], sizes = [8, 128], strides = [1, 1]} : vector<16x256xf32> to vector<8x128xf32>
      %73 = arith.addf %71, %72 : vector<8x128xf32>
      %74 = arith.addi %3, %28 : i32
      %75 = vector.broadcast %74 : i32 to vector<8x1xi32>
      %76 = arith.cmpi slt, %75, %13 : vector<8x1xi32>
      %77 = vector.extract_strided_slice %73 {offsets = [0, 0], sizes = [8, 96], strides = [1, 1]} : vector<8x128xf32> to vector<8x96xf32>
      %78 = arith.negf %77 : vector<8x96xf32>
      %79 = math.exp %78 : vector<8x96xf32>
      %cst_34 = arith.constant 1.000000e+00 : f32
      %80 = vector.broadcast %cst_34 : f32 to vector<8x96xf32>
      %81 = arith.addf %80, %79 : vector<8x96xf32>
      %82 = arith.divf %80, %81 : vector<8x96xf32>
      %83 = vector.extract_strided_slice %73 {offsets = [0, 96], sizes = [8, 32], strides = [1, 1]} : vector<8x128xf32> to vector<8x32xf32>
      %84 = math.tanh %83 : vector<8x32xf32>
      %85 = vector.extract_strided_slice %82 {offsets = [0, 0], sizes = [8, 32], strides = [1, 1]} : vector<8x96xf32> to vector<8x32xf32>
      %86 = vector.extract_strided_slice %82 {offsets = [0, 32], sizes = [8, 32], strides = [1, 1]} : vector<8x96xf32> to vector<8x32xf32>
      %87 = vector.extract_strided_slice %82 {offsets = [0, 64], sizes = [8, 32], strides = [1, 1]} : vector<8x96xf32> to vector<8x32xf32>
      %c0_35 = arith.constant 0 : index
      %c0_36 = arith.constant 0 : index
      %88 = vector.load %arg19[%c0_35, %c0_36] : memref<8x32xf32, #tpu.memory_space<vmem>>, vector<8x32xf32>
      %89 = arith.mulf %86, %88 : vector<8x32xf32>
      %90 = arith.mulf %85, %84 : vector<8x32xf32>
      %91 = arith.addf %89, %90 : vector<8x32xf32>
      %92 = math.tanh %91 : vector<8x32xf32>
      %93 = arith.mulf %87, %92 : vector<8x32xf32>
      %c0_37 = arith.constant 0 : index
      %c0_38 = arith.constant 0 : index
      %94 = vector.load %arg18[%c0_37, %c0_38] : memref<8x32xf32, #tpu.memory_space<vmem>>, vector<8x32xf32>
      %95 = vector.shape_cast %76 : vector<8x1xi1> to vector<8x1xi1>
      %96 = vector.broadcast %95 : vector<8x1xi1> to vector<8x32xi1>
      %97 = arith.select %96, %93, %94 : vector<8x32xi1>, vector<8x32xf32>
      %c0_39 = arith.constant 0 : index
      %c0_40 = arith.constant 0 : index
      %98 = vector.load %arg18[%c0_39, %c0_40] : memref<8x32xf32, #tpu.memory_space<vmem>>, vector<8x32xf32>
      tpu.vector_store %arg18[%c0_39, %c0_40], %97 {strides = array<i32>} : memref<8x32xf32, #tpu.memory_space<vmem>>, vector<8x32xf32>,
      %c0_41 = arith.constant 0 : index
      %c0_42 = arith.constant 0 : index
      %99 = vector.load %arg19[%c0_41, %c0_42] : memref<8x32xf32, #tpu.memory_space<vmem>>, vector<8x32xf32>
      %100 = vector.shape_cast %76 : vector<8x1xi1> to vector<8x1xi1>
      %101 = vector.broadcast %100 : vector<8x1xi1> to vector<8x32xi1>
      %102 = arith.select %101, %91, %99 : vector<8x32xi1>, vector<8x32xf32>
      %c0_43 = arith.constant 0 : index
      %c0_44 = arith.constant 0 : index
      %103 = vector.load %arg19[%c0_43, %c0_44] : memref<8x32xf32, #tpu.memory_space<vmem>>, vector<8x32xf32>
      tpu.vector_store %arg19[%c0_43, %c0_44], %102 {strides = array<i32>} : memref<8x32xf32, #tpu.memory_space<vmem>>, vector<8x32xf32>,
      %c1_i32_45 = arith.constant 1 : i32
      %c3_i32_46 = arith.constant 3 : i32
      %104 = arith.subi %c3_i32_46, %c1_i32_45 : i32
      %c0_47 = arith.constant 0 : index
      %c0_48 = arith.constant 0 : index
      %105 = vector.load %arg16[%c0_47, %c0_48] : memref<8x32xf32, #tpu.memory_space<vmem>>, vector<8x32xf32>
      %c0_49 = arith.constant 0 : index
      %c0_50 = arith.constant 0 : index
      %106 = vector.load %arg18[%c0_49, %c0_50] : memref<8x32xf32, #tpu.memory_space<vmem>>, vector<8x32xf32>
      %107 = tpu.concatenate %105, %106 in 0 : vector<8x32xf32>, vector<8x32xf32> -> vector<16x32xf32>
      %c0_51 = arith.constant 0 : index
      %c0_52 = arith.constant 0 : index
      %108 = vector.load %arg11[%c0_51, %c0_52] : memref<32x256xf32, #tpu.memory_space<vmem>>, vector<32x256xf32>
      %cst_53 = arith.constant dense<0.000000e+00> : vector<16x256xf32>
      %109 = tpu.matmul %107, %108, %cst_53 {dimension_numbers = #tpu.dot_dimension_numbers<[1], [0], [0], [1], [0, 0, 1, 1], [], []>} : vector<16x32xf32>, vector<32x256xf32>, vector<16x256xf32> -> vector<16x256xf32>
      %110 = arith.index_cast %c1_i32_45 : i32 to index
      %c0_54 = arith.constant 0 : index
      %c0_55 = arith.constant 0 : index
      %111 = vector.load %arg20[%110, %c0_54, %c0_55] : memref<4x8x128xf32, #tpu.memory_space<vmem>>, vector<1x8x128xf32>
      %112 = vector.shape_cast %111 : vector<1x8x128xf32> to vector<8x128xf32>
      %113 = vector.extract_strided_slice %109 {offsets = [0, 0], sizes = [8, 128], strides = [1, 1]} : vector<16x256xf32> to vector<8x128xf32>
      %114 = arith.addf %112, %113 : vector<8x128xf32>
      %115 = arith.addi %1, %c1_i32_45 : i32
      %116 = vector.broadcast %115 : i32 to vector<8x1xi32>
      %117 = arith.cmpi slt, %116, %13 : vector<8x1xi32>
      %118 = vector.extract_strided_slice %114 {offsets = [0, 0], sizes = [8, 96], strides = [1, 1]} : vector<8x128xf32> to vector<8x96xf32>
      %119 = arith.negf %118 : vector<8x96xf32>
      %120 = math.exp %119 : vector<8x96xf32>
      %cst_56 = arith.constant 1.000000e+00 : f32
      %121 = vector.broadcast %cst_56 : f32 to vector<8x96xf32>
      %122 = arith.addf %121, %120 : vector<8x96xf32>
      %123 = arith.divf %121, %122 : vector<8x96xf32>
      %124 = vector.extract_strided_slice %114 {offsets = [0, 96], sizes = [8, 32], strides = [1, 1]} : vector<8x128xf32> to vector<8x32xf32>
      %125 = math.tanh %124 : vector<8x32xf32>
      %126 = vector.extract_strided_slice %123 {offsets = [0, 0], sizes = [8, 32], strides = [1, 1]} : vector<8x96xf32> to vector<8x32xf32>
      %127 = vector.extract_strided_slice %123 {offsets = [0, 32], sizes = [8, 32], strides = [1, 1]} : vector<8x96xf32> to vector<8x32xf32>
      %128 = vector.extract_strided_slice %123 {offsets = [0, 64], sizes = [8, 32], strides = [1, 1]} : vector<8x96xf32> to vector<8x32xf32>
      %c0_57 = arith.constant 0 : index
      %c0_58 = arith.constant 0 : index
      %129 = vector.load %arg17[%c0_57, %c0_58] : memref<8x32xf32, #tpu.memory_space<vmem>>, vector<8x32xf32>
      %130 = arith.mulf %127, %129 : vector<8x32xf32>
      %131 = arith.mulf %126, %125 : vector<8x32xf32>
      %132 = arith.addf %130, %131 : vector<8x32xf32>
      %133 = math.tanh %132 : vector<8x32xf32>
      %134 = arith.mulf %128, %133 : vector<8x32xf32>
      %c0_59 = arith.constant 0 : index
      %c0_60 = arith.constant 0 : index
      %135 = vector.load %arg16[%c0_59, %c0_60] : memref<8x32xf32, #tpu.memory_space<vmem>>, vector<8x32xf32>
      %136 = vector.shape_cast %117 : vector<8x1xi1> to vector<8x1xi1>
      %137 = vector.broadcast %136 : vector<8x1xi1> to vector<8x32xi1>
      %138 = arith.select %137, %134, %135 : vector<8x32xi1>, vector<8x32xf32>
      %c0_61 = arith.constant 0 : index
      %c0_62 = arith.constant 0 : index
      %139 = vector.load %arg16[%c0_61, %c0_62] : memref<8x32xf32, #tpu.memory_space<vmem>>, vector<8x32xf32>
      tpu.vector_store %arg16[%c0_61, %c0_62], %138 {strides = array<i32>} : memref<8x32xf32, #tpu.memory_space<vmem>>, vector<8x32xf32>,
      %c0_63 = arith.constant 0 : index
      %c0_64 = arith.constant 0 : index
      %140 = vector.load %arg17[%c0_63, %c0_64] : memref<8x32xf32, #tpu.memory_space<vmem>>, vector<8x32xf32>
      %141 = vector.shape_cast %117 : vector<8x1xi1> to vector<8x1xi1>
      %142 = vector.broadcast %141 : vector<8x1xi1> to vector<8x32xi1>
      %143 = arith.select %142, %132, %140 : vector<8x32xi1>, vector<8x32xf32>
      %c0_65 = arith.constant 0 : index
      %c0_66 = arith.constant 0 : index
      %144 = vector.load %arg17[%c0_65, %c0_66] : memref<8x32xf32, #tpu.memory_space<vmem>>, vector<8x32xf32>
      tpu.vector_store %arg17[%c0_65, %c0_66], %143 {strides = array<i32>} : memref<8x32xf32, #tpu.memory_space<vmem>>, vector<8x32xf32>,
      %145 = arith.index_cast %104 : i32 to index
      %c0_67 = arith.constant 0 : index
      %c0_68 = arith.constant 0 : index
      %146 = vector.load %arg21[%145, %c0_67, %c0_68] : memref<4x8x128xf32, #tpu.memory_space<vmem>>, vector<1x8x128xf32>
      %147 = vector.shape_cast %146 : vector<1x8x128xf32> to vector<8x128xf32>
      %148 = vector.extract_strided_slice %109 {offsets = [8, 128], sizes = [8, 128], strides = [1, 1]} : vector<16x256xf32> to vector<8x128xf32>
      %149 = arith.addf %147, %148 : vector<8x128xf32>
      %150 = arith.addi %3, %104 : i32
      %151 = vector.broadcast %150 : i32 to vector<8x1xi32>
      %152 = arith.cmpi slt, %151, %13 : vector<8x1xi32>
      %153 = vector.extract_strided_slice %149 {offsets = [0, 0], sizes = [8, 96], strides = [1, 1]} : vector<8x128xf32> to vector<8x96xf32>
      %154 = arith.negf %153 : vector<8x96xf32>
      %155 = math.exp %154 : vector<8x96xf32>
      %cst_69 = arith.constant 1.000000e+00 : f32
      %156 = vector.broadcast %cst_69 : f32 to vector<8x96xf32>
      %157 = arith.addf %156, %155 : vector<8x96xf32>
      %158 = arith.divf %156, %157 : vector<8x96xf32>
      %159 = vector.extract_strided_slice %149 {offsets = [0, 96], sizes = [8, 32], strides = [1, 1]} : vector<8x128xf32> to vector<8x32xf32>
      %160 = math.tanh %159 : vector<8x32xf32>
      %161 = vector.extract_strided_slice %158 {offsets = [0, 0], sizes = [8, 32], strides = [1, 1]} : vector<8x96xf32> to vector<8x32xf32>
      %162 = vector.extract_strided_slice %158 {offsets = [0, 32], sizes = [8, 32], strides = [1, 1]} : vector<8x96xf32> to vector<8x32xf32>
      %163 = vector.extract_strided_slice %158 {offsets = [0, 64], sizes = [8, 32], strides = [1, 1]} : vector<8x96xf32> to vector<8x32xf32>
      %c0_70 = arith.constant 0 : index
      %c0_71 = arith.constant 0 : index
      %164 = vector.load %arg19[%c0_70, %c0_71] : memref<8x32xf32, #tpu.memory_space<vmem>>, vector<8x32xf32>
      %165 = arith.mulf %162, %164 : vector<8x32xf32>
      %166 = arith.mulf %161, %160 : vector<8x32xf32>
      %167 = arith.addf %165, %166 : vector<8x32xf32>
      %168 = math.tanh %167 : vector<8x32xf32>
      %169 = arith.mulf %163, %168 : vector<8x32xf32>
      %c0_72 = arith.constant 0 : index
      %c0_73 = arith.constant 0 : index
      %170 = vector.load %arg18[%c0_72, %c0_73] : memref<8x32xf32, #tpu.memory_space<vmem>>, vector<8x32xf32>
      %171 = vector.shape_cast %152 : vector<8x1xi1> to vector<8x1xi1>
      %172 = vector.broadcast %171 : vector<8x1xi1> to vector<8x32xi1>
      %173 = arith.select %172, %169, %170 : vector<8x32xi1>, vector<8x32xf32>
      %c0_74 = arith.constant 0 : index
      %c0_75 = arith.constant 0 : index
      %174 = vector.load %arg18[%c0_74, %c0_75] : memref<8x32xf32, #tpu.memory_space<vmem>>, vector<8x32xf32>
      tpu.vector_store %arg18[%c0_74, %c0_75], %173 {strides = array<i32>} : memref<8x32xf32, #tpu.memory_space<vmem>>, vector<8x32xf32>,
      %c0_76 = arith.constant 0 : index
      %c0_77 = arith.constant 0 : index
      %175 = vector.load %arg19[%c0_76, %c0_77] : memref<8x32xf32, #tpu.memory_space<vmem>>, vector<8x32xf32>
      %176 = vector.shape_cast %152 : vector<8x1xi1> to vector<8x1xi1>
      %177 = vector.broadcast %176 : vector<8x1xi1> to vector<8x32xi1>
      %178 = arith.select %177, %167, %175 : vector<8x32xi1>, vector<8x32xf32>
      %c0_78 = arith.constant 0 : index
      %c0_79 = arith.constant 0 : index
      %179 = vector.load %arg19[%c0_78, %c0_79] : memref<8x32xf32, #tpu.memory_space<vmem>>, vector<8x32xf32>
      tpu.vector_store %arg19[%c0_78, %c0_79], %178 {strides = array<i32>} : memref<8x32xf32, #tpu.memory_space<vmem>>, vector<8x32xf32>,
      %c2_i32 = arith.constant 2 : i32
      %c3_i32_80 = arith.constant 3 : i32
      %180 = arith.subi %c3_i32_80, %c2_i32 : i32
      %c0_81 = arith.constant 0 : index
      %c0_82 = arith.constant 0 : index
      %181 = vector.load %arg16[%c0_81, %c0_82] : memref<8x32xf32, #tpu.memory_space<vmem>>, vector<8x32xf32>
      %c0_83 = arith.constant 0 : index
      %c0_84 = arith.constant 0 : index
      %182 = vector.load %arg18[%c0_83, %c0_84] : memref<8x32xf32, #tpu.memory_space<vmem>>, vector<8x32xf32>
      %183 = tpu.concatenate %181, %182 in 0 : vector<8x32xf32>, vector<8x32xf32> -> vector<16x32xf32>
      %c0_85 = arith.constant 0 : index
      %c0_86 = arith.constant 0 : index
      %184 = vector.load %arg11[%c0_85, %c0_86] : memref<32x256xf32, #tpu.memory_space<vmem>>, vector<32x256xf32>
      %cst_87 = arith.constant dense<0.000000e+00> : vector<16x256xf32>
      %185 = tpu.matmul %183, %184, %cst_87 {dimension_numbers = #tpu.dot_dimension_numbers<[1], [0], [0], [1], [0, 0, 1, 1], [], []>} : vector<16x32xf32>, vector<32x256xf32>, vector<16x256xf32> -> vector<16x256xf32>
      %186 = arith.index_cast %c2_i32 : i32 to index
      %c0_88 = arith.constant 0 : index
      %c0_89 = arith.constant 0 : index
      %187 = vector.load %arg20[%186, %c0_88, %c0_89] : memref<4x8x128xf32, #tpu.memory_space<vmem>>, vector<1x8x128xf32>
      %188 = vector.shape_cast %187 : vector<1x8x128xf32> to vector<8x128xf32>
      %189 = vector.extract_strided_slice %185 {offsets = [0, 0], sizes = [8, 128], strides = [1, 1]} : vector<16x256xf32> to vector<8x128xf32>
      %190 = arith.addf %188, %189 : vector<8x128xf32>
      %191 = arith.addi %1, %c2_i32 : i32
      %192 = vector.broadcast %191 : i32 to vector<8x1xi32>
      %193 = arith.cmpi slt, %192, %13 : vector<8x1xi32>
      %194 = vector.extract_strided_slice %190 {offsets = [0, 0], sizes = [8, 96], strides = [1, 1]} : vector<8x128xf32> to vector<8x96xf32>
      %195 = arith.negf %194 : vector<8x96xf32>
      %196 = math.exp %195 : vector<8x96xf32>
      %cst_90 = arith.constant 1.000000e+00 : f32
      %197 = vector.broadcast %cst_90 : f32 to vector<8x96xf32>
      %198 = arith.addf %197, %196 : vector<8x96xf32>
      %199 = arith.divf %197, %198 : vector<8x96xf32>
      %200 = vector.extract_strided_slice %190 {offsets = [0, 96], sizes = [8, 32], strides = [1, 1]} : vector<8x128xf32> to vector<8x32xf32>
      %201 = math.tanh %200 : vector<8x32xf32>
      %202 = vector.extract_strided_slice %199 {offsets = [0, 0], sizes = [8, 32], strides = [1, 1]} : vector<8x96xf32> to vector<8x32xf32>
      %203 = vector.extract_strided_slice %199 {offsets = [0, 32], sizes = [8, 32], strides = [1, 1]} : vector<8x96xf32> to vector<8x32xf32>
      %204 = vector.extract_strided_slice %199 {offsets = [0, 64], sizes = [8, 32], strides = [1, 1]} : vector<8x96xf32> to vector<8x32xf32>
      %c0_91 = arith.constant 0 : index
      %c0_92 = arith.constant 0 : index
      %205 = vector.load %arg17[%c0_91, %c0_92] : memref<8x32xf32, #tpu.memory_space<vmem>>, vector<8x32xf32>
      %206 = arith.mulf %203, %205 : vector<8x32xf32>
      %207 = arith.mulf %202, %201 : vector<8x32xf32>
      %208 = arith.addf %206, %207 : vector<8x32xf32>
      %209 = math.tanh %208 : vector<8x32xf32>
      %210 = arith.mulf %204, %209 : vector<8x32xf32>
      %c0_93 = arith.constant 0 : index
      %c0_94 = arith.constant 0 : index
      %211 = vector.load %arg16[%c0_93, %c0_94] : memref<8x32xf32, #tpu.memory_space<vmem>>, vector<8x32xf32>
      %212 = vector.shape_cast %193 : vector<8x1xi1> to vector<8x1xi1>
      %213 = vector.broadcast %212 : vector<8x1xi1> to vector<8x32xi1>
      %214 = arith.select %213, %210, %211 : vector<8x32xi1>, vector<8x32xf32>
      %c0_95 = arith.constant 0 : index
      %c0_96 = arith.constant 0 : index
      %215 = vector.load %arg16[%c0_95, %c0_96] : memref<8x32xf32, #tpu.memory_space<vmem>>, vector<8x32xf32>
      tpu.vector_store %arg16[%c0_95, %c0_96], %214 {strides = array<i32>} : memref<8x32xf32, #tpu.memory_space<vmem>>, vector<8x32xf32>,
      %c0_97 = arith.constant 0 : index
      %c0_98 = arith.constant 0 : index
      %216 = vector.load %arg17[%c0_97, %c0_98] : memref<8x32xf32, #tpu.memory_space<vmem>>, vector<8x32xf32>
      %217 = vector.shape_cast %193 : vector<8x1xi1> to vector<8x1xi1>
      %218 = vector.broadcast %217 : vector<8x1xi1> to vector<8x32xi1>
      %219 = arith.select %218, %208, %216 : vector<8x32xi1>, vector<8x32xf32>
      %c0_99 = arith.constant 0 : index
      %c0_100 = arith.constant 0 : index
      %220 = vector.load %arg17[%c0_99, %c0_100] : memref<8x32xf32, #tpu.memory_space<vmem>>, vector<8x32xf32>
      tpu.vector_store %arg17[%c0_99, %c0_100], %219 {strides = array<i32>} : memref<8x32xf32, #tpu.memory_space<vmem>>, vector<8x32xf32>,
      %221 = arith.index_cast %180 : i32 to index
      %c0_101 = arith.constant 0 : index
      %c0_102 = arith.constant 0 : index
      %222 = vector.load %arg21[%221, %c0_101, %c0_102] : memref<4x8x128xf32, #tpu.memory_space<vmem>>, vector<1x8x128xf32>
      %223 = vector.shape_cast %222 : vector<1x8x128xf32> to vector<8x128xf32>
      %224 = vector.extract_strided_slice %185 {offsets = [8, 128], sizes = [8, 128], strides = [1, 1]} : vector<16x256xf32> to vector<8x128xf32>
      %225 = arith.addf %223, %224 : vector<8x128xf32>
      %226 = arith.addi %3, %180 : i32
      %227 = vector.broadcast %226 : i32 to vector<8x1xi32>
      %228 = arith.cmpi slt, %227, %13 : vector<8x1xi32>
      %229 = vector.extract_strided_slice %225 {offsets = [0, 0], sizes = [8, 96], strides = [1, 1]} : vector<8x128xf32> to vector<8x96xf32>
      %230 = arith.negf %229 : vector<8x96xf32>
      %231 = math.exp %230 : vector<8x96xf32>
      %cst_103 = arith.constant 1.000000e+00 : f32
      %232 = vector.broadcast %cst_103 : f32 to vector<8x96xf32>
      %233 = arith.addf %232, %231 : vector<8x96xf32>
      %234 = arith.divf %232, %233 : vector<8x96xf32>
      %235 = vector.extract_strided_slice %225 {offsets = [0, 96], sizes = [8, 32], strides = [1, 1]} : vector<8x128xf32> to vector<8x32xf32>
      %236 = math.tanh %235 : vector<8x32xf32>
      %237 = vector.extract_strided_slice %234 {offsets = [0, 0], sizes = [8, 32], strides = [1, 1]} : vector<8x96xf32> to vector<8x32xf32>
      %238 = vector.extract_strided_slice %234 {offsets = [0, 32], sizes = [8, 32], strides = [1, 1]} : vector<8x96xf32> to vector<8x32xf32>
      %239 = vector.extract_strided_slice %234 {offsets = [0, 64], sizes = [8, 32], strides = [1, 1]} : vector<8x96xf32> to vector<8x32xf32>
      %c0_104 = arith.constant 0 : index
      %c0_105 = arith.constant 0 : index
      %240 = vector.load %arg19[%c0_104, %c0_105] : memref<8x32xf32, #tpu.memory_space<vmem>>, vector<8x32xf32>
      %241 = arith.mulf %238, %240 : vector<8x32xf32>
      %242 = arith.mulf %237, %236 : vector<8x32xf32>
      %243 = arith.addf %241, %242 : vector<8x32xf32>
      %244 = math.tanh %243 : vector<8x32xf32>
      %245 = arith.mulf %239, %244 : vector<8x32xf32>
      %c0_106 = arith.constant 0 : index
      %c0_107 = arith.constant 0 : index
      %246 = vector.load %arg18[%c0_106, %c0_107] : memref<8x32xf32, #tpu.memory_space<vmem>>, vector<8x32xf32>
      %247 = vector.shape_cast %228 : vector<8x1xi1> to vector<8x1xi1>
      %248 = vector.broadcast %247 : vector<8x1xi1> to vector<8x32xi1>
      %249 = arith.select %248, %245, %246 : vector<8x32xi1>, vector<8x32xf32>
      %c0_108 = arith.constant 0 : index
      %c0_109 = arith.constant 0 : index
      %250 = vector.load %arg18[%c0_108, %c0_109] : memref<8x32xf32, #tpu.memory_space<vmem>>, vector<8x32xf32>
      tpu.vector_store %arg18[%c0_108, %c0_109], %249 {strides = array<i32>} : memref<8x32xf32, #tpu.memory_space<vmem>>, vector<8x32xf32>,
      %c0_110 = arith.constant 0 : index
      %c0_111 = arith.constant 0 : index
      %251 = vector.load %arg19[%c0_110, %c0_111] : memref<8x32xf32, #tpu.memory_space<vmem>>, vector<8x32xf32>
      %252 = vector.shape_cast %228 : vector<8x1xi1> to vector<8x1xi1>
      %253 = vector.broadcast %252 : vector<8x1xi1> to vector<8x32xi1>
      %254 = arith.select %253, %243, %251 : vector<8x32xi1>, vector<8x32xf32>
      %c0_112 = arith.constant 0 : index
      %c0_113 = arith.constant 0 : index
      %255 = vector.load %arg19[%c0_112, %c0_113] : memref<8x32xf32, #tpu.memory_space<vmem>>, vector<8x32xf32>
      tpu.vector_store %arg19[%c0_112, %c0_113], %254 {strides = array<i32>} : memref<8x32xf32, #tpu.memory_space<vmem>>, vector<8x32xf32>,
      %c3_i32_114 = arith.constant 3 : i32
      %c3_i32_115 = arith.constant 3 : i32
      %256 = arith.subi %c3_i32_115, %c3_i32_114 : i32
      %c0_116 = arith.constant 0 : index
      %c0_117 = arith.constant 0 : index
      %257 = vector.load %arg16[%c0_116, %c0_117] : memref<8x32xf32, #tpu.memory_space<vmem>>, vector<8x32xf32>
      %c0_118 = arith.constant 0 : index
      %c0_119 = arith.constant 0 : index
      %258 = vector.load %arg18[%c0_118, %c0_119] : memref<8x32xf32, #tpu.memory_space<vmem>>, vector<8x32xf32>
      %259 = tpu.concatenate %257, %258 in 0 : vector<8x32xf32>, vector<8x32xf32> -> vector<16x32xf32>
      %c0_120 = arith.constant 0 : index
      %c0_121 = arith.constant 0 : index
      %260 = vector.load %arg11[%c0_120, %c0_121] : memref<32x256xf32, #tpu.memory_space<vmem>>, vector<32x256xf32>
      %cst_122 = arith.constant dense<0.000000e+00> : vector<16x256xf32>
      %261 = tpu.matmul %259, %260, %cst_122 {dimension_numbers = #tpu.dot_dimension_numbers<[1], [0], [0], [1], [0, 0, 1, 1], [], []>} : vector<16x32xf32>, vector<32x256xf32>, vector<16x256xf32> -> vector<16x256xf32>
      %262 = arith.index_cast %c3_i32_114 : i32 to index
      %c0_123 = arith.constant 0 : index
      %c0_124 = arith.constant 0 : index
      %263 = vector.load %arg20[%262, %c0_123, %c0_124] : memref<4x8x128xf32, #tpu.memory_space<vmem>>, vector<1x8x128xf32>
      %264 = vector.shape_cast %263 : vector<1x8x128xf32> to vector<8x128xf32>
      %265 = vector.extract_strided_slice %261 {offsets = [0, 0], sizes = [8, 128], strides = [1, 1]} : vector<16x256xf32> to vector<8x128xf32>
      %266 = arith.addf %264, %265 : vector<8x128xf32>
      %267 = arith.addi %1, %c3_i32_114 : i32
      %268 = vector.broadcast %267 : i32 to vector<8x1xi32>
      %269 = arith.cmpi slt, %268, %13 : vector<8x1xi32>
      %270 = vector.extract_strided_slice %266 {offsets = [0, 0], sizes = [8, 96], strides = [1, 1]} : vector<8x128xf32> to vector<8x96xf32>
      %271 = arith.negf %270 : vector<8x96xf32>
      %272 = math.exp %271 : vector<8x96xf32>
      %cst_125 = arith.constant 1.000000e+00 : f32
      %273 = vector.broadcast %cst_125 : f32 to vector<8x96xf32>
      %274 = arith.addf %273, %272 : vector<8x96xf32>
      %275 = arith.divf %273, %274 : vector<8x96xf32>
      %276 = vector.extract_strided_slice %266 {offsets = [0, 96], sizes = [8, 32], strides = [1, 1]} : vector<8x128xf32> to vector<8x32xf32>
      %277 = math.tanh %276 : vector<8x32xf32>
      %278 = vector.extract_strided_slice %275 {offsets = [0, 0], sizes = [8, 32], strides = [1, 1]} : vector<8x96xf32> to vector<8x32xf32>
      %279 = vector.extract_strided_slice %275 {offsets = [0, 32], sizes = [8, 32], strides = [1, 1]} : vector<8x96xf32> to vector<8x32xf32>
      %280 = vector.extract_strided_slice %275 {offsets = [0, 64], sizes = [8, 32], strides = [1, 1]} : vector<8x96xf32> to vector<8x32xf32>
      %c0_126 = arith.constant 0 : index
      %c0_127 = arith.constant 0 : index
      %281 = vector.load %arg17[%c0_126, %c0_127] : memref<8x32xf32, #tpu.memory_space<vmem>>, vector<8x32xf32>
      %282 = arith.mulf %279, %281 : vector<8x32xf32>
      %283 = arith.mulf %278, %277 : vector<8x32xf32>
      %284 = arith.addf %282, %283 : vector<8x32xf32>
      %285 = math.tanh %284 : vector<8x32xf32>
      %286 = arith.mulf %280, %285 : vector<8x32xf32>
      %c0_128 = arith.constant 0 : index
      %c0_129 = arith.constant 0 : index
      %287 = vector.load %arg16[%c0_128, %c0_129] : memref<8x32xf32, #tpu.memory_space<vmem>>, vector<8x32xf32>
      %288 = vector.shape_cast %269 : vector<8x1xi1> to vector<8x1xi1>
      %289 = vector.broadcast %288 : vector<8x1xi1> to vector<8x32xi1>
      %290 = arith.select %289, %286, %287 : vector<8x32xi1>, vector<8x32xf32>
      %c0_130 = arith.constant 0 : index
      %c0_131 = arith.constant 0 : index
      %291 = vector.load %arg16[%c0_130, %c0_131] : memref<8x32xf32, #tpu.memory_space<vmem>>, vector<8x32xf32>
      tpu.vector_store %arg16[%c0_130, %c0_131], %290 {strides = array<i32>} : memref<8x32xf32, #tpu.memory_space<vmem>>, vector<8x32xf32>,
      %c0_132 = arith.constant 0 : index
      %c0_133 = arith.constant 0 : index
      %292 = vector.load %arg17[%c0_132, %c0_133] : memref<8x32xf32, #tpu.memory_space<vmem>>, vector<8x32xf32>
      %293 = vector.shape_cast %269 : vector<8x1xi1> to vector<8x1xi1>
      %294 = vector.broadcast %293 : vector<8x1xi1> to vector<8x32xi1>
      %295 = arith.select %294, %284, %292 : vector<8x32xi1>, vector<8x32xf32>
      %c0_134 = arith.constant 0 : index
      %c0_135 = arith.constant 0 : index
      %296 = vector.load %arg17[%c0_134, %c0_135] : memref<8x32xf32, #tpu.memory_space<vmem>>, vector<8x32xf32>
      tpu.vector_store %arg17[%c0_134, %c0_135], %295 {strides = array<i32>} : memref<8x32xf32, #tpu.memory_space<vmem>>, vector<8x32xf32>,
      %297 = arith.index_cast %256 : i32 to index
      %c0_136 = arith.constant 0 : index
      %c0_137 = arith.constant 0 : index
      %298 = vector.load %arg21[%297, %c0_136, %c0_137] : memref<4x8x128xf32, #tpu.memory_space<vmem>>, vector<1x8x128xf32>
      %299 = vector.shape_cast %298 : vector<1x8x128xf32> to vector<8x128xf32>
      %300 = vector.extract_strided_slice %261 {offsets = [8, 128], sizes = [8, 128], strides = [1, 1]} : vector<16x256xf32> to vector<8x128xf32>
      %301 = arith.addf %299, %300 : vector<8x128xf32>
      %302 = arith.addi %3, %256 : i32
      %303 = vector.broadcast %302 : i32 to vector<8x1xi32>
      %304 = arith.cmpi slt, %303, %13 : vector<8x1xi32>
      %305 = vector.extract_strided_slice %301 {offsets = [0, 0], sizes = [8, 96], strides = [1, 1]} : vector<8x128xf32> to vector<8x96xf32>
      %306 = arith.negf %305 : vector<8x96xf32>
      %307 = math.exp %306 : vector<8x96xf32>
      %cst_138 = arith.constant 1.000000e+00 : f32
      %308 = vector.broadcast %cst_138 : f32 to vector<8x96xf32>
      %309 = arith.addf %308, %307 : vector<8x96xf32>
      %310 = arith.divf %308, %309 : vector<8x96xf32>
      %311 = vector.extract_strided_slice %301 {offsets = [0, 96], sizes = [8, 32], strides = [1, 1]} : vector<8x128xf32> to vector<8x32xf32>
      %312 = math.tanh %311 : vector<8x32xf32>
      %313 = vector.extract_strided_slice %310 {offsets = [0, 0], sizes = [8, 32], strides = [1, 1]} : vector<8x96xf32> to vector<8x32xf32>
      %314 = vector.extract_strided_slice %310 {offsets = [0, 32], sizes = [8, 32], strides = [1, 1]} : vector<8x96xf32> to vector<8x32xf32>
      %315 = vector.extract_strided_slice %310 {offsets = [0, 64], sizes = [8, 32], strides = [1, 1]} : vector<8x96xf32> to vector<8x32xf32>
      %c0_139 = arith.constant 0 : index
      %c0_140 = arith.constant 0 : index
      %316 = vector.load %arg19[%c0_139, %c0_140] : memref<8x32xf32, #tpu.memory_space<vmem>>, vector<8x32xf32>
      %317 = arith.mulf %314, %316 : vector<8x32xf32>
      %318 = arith.mulf %313, %312 : vector<8x32xf32>
      %319 = arith.addf %317, %318 : vector<8x32xf32>
      %320 = math.tanh %319 : vector<8x32xf32>
      %321 = arith.mulf %315, %320 : vector<8x32xf32>
      %c0_141 = arith.constant 0 : index
      %c0_142 = arith.constant 0 : index
      %322 = vector.load %arg18[%c0_141, %c0_142] : memref<8x32xf32, #tpu.memory_space<vmem>>, vector<8x32xf32>
      %323 = vector.shape_cast %304 : vector<8x1xi1> to vector<8x1xi1>
      %324 = vector.broadcast %323 : vector<8x1xi1> to vector<8x32xi1>
      %325 = arith.select %324, %321, %322 : vector<8x32xi1>, vector<8x32xf32>
      %c0_143 = arith.constant 0 : index
      %c0_144 = arith.constant 0 : index
      %326 = vector.load %arg18[%c0_143, %c0_144] : memref<8x32xf32, #tpu.memory_space<vmem>>, vector<8x32xf32>
      tpu.vector_store %arg18[%c0_143, %c0_144], %325 {strides = array<i32>} : memref<8x32xf32, #tpu.memory_space<vmem>>, vector<8x32xf32>,
      %c0_145 = arith.constant 0 : index
      %c0_146 = arith.constant 0 : index
      %327 = vector.load %arg19[%c0_145, %c0_146] : memref<8x32xf32, #tpu.memory_space<vmem>>, vector<8x32xf32>
      %328 = vector.shape_cast %304 : vector<8x1xi1> to vector<8x1xi1>
      %329 = vector.broadcast %328 : vector<8x1xi1> to vector<8x32xi1>
      %330 = arith.select %329, %319, %327 : vector<8x32xi1>, vector<8x32xf32>
      %c0_147 = arith.constant 0 : index
      %c0_148 = arith.constant 0 : index
      %331 = vector.load %arg19[%c0_147, %c0_148] : memref<8x32xf32, #tpu.memory_space<vmem>>, vector<8x32xf32>
      tpu.vector_store %arg19[%c0_147, %c0_148], %330 {strides = array<i32>} : memref<8x32xf32, #tpu.memory_space<vmem>>, vector<8x32xf32>,
      %c4_i32_149 = arith.constant 4 : i32
    } else {
    }
    %true = arith.constant true
    %17 = arith.xori %5, %true : i1
    %18 = arith.andi %4, %17 : i1
    %19 = arith.extui %18 : i1 to i32
    %c0_i32_7 = arith.constant 0 : i32
    %20 = arith.cmpi ne, %19, %c0_i32_7 : i32
    scf.if %20 {
      %c0_i32_12 = arith.constant 0 : i32
      %28 = arith.index_cast %c0_i32_12 : i32 to index
      %c0_13 = arith.constant 0 : index
      %c0_14 = arith.constant 0 : index
      %29 = vector.load %arg20[%28, %c0_13, %c0_14] : memref<4x8x128xf32, #tpu.memory_space<vmem>>, vector<1x8x128xf32>
      %30 = vector.shape_cast %29 : vector<1x8x128xf32> to vector<8x128xf32>
      %c0_15 = arith.constant 0 : index
      %c0_16 = arith.constant 0 : index
      %31 = vector.load %arg16[%c0_15, %c0_16] : memref<8x32xf32, #tpu.memory_space<vmem>>, vector<8x32xf32>
      %c0_17 = arith.constant 0 : index
      %c0_18 = arith.constant 0 : index
      %32 = vector.load %arg9[%c0_17, %c0_18] : memref<32x128xf32, #tpu.memory_space<vmem>>, vector<32x128xf32>
      %cst = arith.constant dense<0.000000e+00> : vector<8x128xf32>
      %33 = tpu.matmul %31, %32, %cst {dimension_numbers = #tpu.dot_dimension_numbers<[1], [0], [0], [1], [0, 0, 1, 1], [], []>} : vector<8x32xf32>, vector<32x128xf32>, vector<8x128xf32> -> vector<8x128xf32>
      %34 = arith.addf %30, %33 : vector<8x128xf32>
      %35 = arith.addi %1, %c0_i32_12 : i32
      %36 = vector.broadcast %35 : i32 to vector<8x1xi32>
      %37 = arith.cmpi slt, %36, %13 : vector<8x1xi32>
      %38 = vector.extract_strided_slice %34 {offsets = [0, 0], sizes = [8, 96], strides = [1, 1]} : vector<8x128xf32> to vector<8x96xf32>
      %39 = arith.negf %38 : vector<8x96xf32>
      %40 = math.exp %39 : vector<8x96xf32>
      %cst_19 = arith.constant 1.000000e+00 : f32
      %41 = vector.broadcast %cst_19 : f32 to vector<8x96xf32>
      %42 = arith.addf %41, %40 : vector<8x96xf32>
      %43 = arith.divf %41, %42 : vector<8x96xf32>
      %44 = vector.extract_strided_slice %34 {offsets = [0, 96], sizes = [8, 32], strides = [1, 1]} : vector<8x128xf32> to vector<8x32xf32>
      %45 = math.tanh %44 : vector<8x32xf32>
      %46 = vector.extract_strided_slice %43 {offsets = [0, 0], sizes = [8, 32], strides = [1, 1]} : vector<8x96xf32> to vector<8x32xf32>
      %47 = vector.extract_strided_slice %43 {offsets = [0, 32], sizes = [8, 32], strides = [1, 1]} : vector<8x96xf32> to vector<8x32xf32>
      %48 = vector.extract_strided_slice %43 {offsets = [0, 64], sizes = [8, 32], strides = [1, 1]} : vector<8x96xf32> to vector<8x32xf32>
      %c0_20 = arith.constant 0 : index
      %c0_21 = arith.constant 0 : index
      %49 = vector.load %arg17[%c0_20, %c0_21] : memref<8x32xf32, #tpu.memory_space<vmem>>, vector<8x32xf32>
      %50 = arith.mulf %47, %49 : vector<8x32xf32>
      %51 = arith.mulf %46, %45 : vector<8x32xf32>
      %52 = arith.addf %50, %51 : vector<8x32xf32>
      %53 = math.tanh %52 : vector<8x32xf32>
      %54 = arith.mulf %48, %53 : vector<8x32xf32>
      %c0_22 = arith.constant 0 : index
      %c0_23 = arith.constant 0 : index
      %55 = vector.load %arg16[%c0_22, %c0_23] : memref<8x32xf32, #tpu.memory_space<vmem>>, vector<8x32xf32>
      %56 = vector.shape_cast %37 : vector<8x1xi1> to vector<8x1xi1>
      %57 = vector.broadcast %56 : vector<8x1xi1> to vector<8x32xi1>
      %58 = arith.select %57, %54, %55 : vector<8x32xi1>, vector<8x32xf32>
      %c0_24 = arith.constant 0 : index
      %c0_25 = arith.constant 0 : index
      %59 = vector.load %arg16[%c0_24, %c0_25] : memref<8x32xf32, #tpu.memory_space<vmem>>, vector<8x32xf32>
      tpu.vector_store %arg16[%c0_24, %c0_25], %58 {strides = array<i32>} : memref<8x32xf32, #tpu.memory_space<vmem>>, vector<8x32xf32>,
      %c0_26 = arith.constant 0 : index
      %c0_27 = arith.constant 0 : index
      %60 = vector.load %arg17[%c0_26, %c0_27] : memref<8x32xf32, #tpu.memory_space<vmem>>, vector<8x32xf32>
      %61 = vector.shape_cast %37 : vector<8x1xi1> to vector<8x1xi1>
      %62 = vector.broadcast %61 : vector<8x1xi1> to vector<8x32xi1>
      %63 = arith.select %62, %52, %60 : vector<8x32xi1>, vector<8x32xf32>
      %c0_28 = arith.constant 0 : index
      %c0_29 = arith.constant 0 : index
      %64 = vector.load %arg17[%c0_28, %c0_29] : memref<8x32xf32, #tpu.memory_space<vmem>>, vector<8x32xf32>
      tpu.vector_store %arg17[%c0_28, %c0_29], %63 {strides = array<i32>} : memref<8x32xf32, #tpu.memory_space<vmem>>, vector<8x32xf32>,
      %c1_i32_30 = arith.constant 1 : i32
      %65 = arith.index_cast %c1_i32_30 : i32 to index
      %c0_31 = arith.constant 0 : index
      %c0_32 = arith.constant 0 : index
      %66 = vector.load %arg20[%65, %c0_31, %c0_32] : memref<4x8x128xf32, #tpu.memory_space<vmem>>, vector<1x8x128xf32>
      %67 = vector.shape_cast %66 : vector<1x8x128xf32> to vector<8x128xf32>
      %c0_33 = arith.constant 0 : index
      %c0_34 = arith.constant 0 : index
      %68 = vector.load %arg16[%c0_33, %c0_34] : memref<8x32xf32, #tpu.memory_space<vmem>>, vector<8x32xf32>
      %c0_35 = arith.constant 0 : index
      %c0_36 = arith.constant 0 : index
      %69 = vector.load %arg9[%c0_35, %c0_36] : memref<32x128xf32, #tpu.memory_space<vmem>>, vector<32x128xf32>
      %cst_37 = arith.constant dense<0.000000e+00> : vector<8x128xf32>
      %70 = tpu.matmul %68, %69, %cst_37 {dimension_numbers = #tpu.dot_dimension_numbers<[1], [0], [0], [1], [0, 0, 1, 1], [], []>} : vector<8x32xf32>, vector<32x128xf32>, vector<8x128xf32> -> vector<8x128xf32>
      %71 = arith.addf %67, %70 : vector<8x128xf32>
      %72 = arith.addi %1, %c1_i32_30 : i32
      %73 = vector.broadcast %72 : i32 to vector<8x1xi32>
      %74 = arith.cmpi slt, %73, %13 : vector<8x1xi32>
      %75 = vector.extract_strided_slice %71 {offsets = [0, 0], sizes = [8, 96], strides = [1, 1]} : vector<8x128xf32> to vector<8x96xf32>
      %76 = arith.negf %75 : vector<8x96xf32>
      %77 = math.exp %76 : vector<8x96xf32>
      %cst_38 = arith.constant 1.000000e+00 : f32
      %78 = vector.broadcast %cst_38 : f32 to vector<8x96xf32>
      %79 = arith.addf %78, %77 : vector<8x96xf32>
      %80 = arith.divf %78, %79 : vector<8x96xf32>
      %81 = vector.extract_strided_slice %71 {offsets = [0, 96], sizes = [8, 32], strides = [1, 1]} : vector<8x128xf32> to vector<8x32xf32>
      %82 = math.tanh %81 : vector<8x32xf32>
      %83 = vector.extract_strided_slice %80 {offsets = [0, 0], sizes = [8, 32], strides = [1, 1]} : vector<8x96xf32> to vector<8x32xf32>
      %84 = vector.extract_strided_slice %80 {offsets = [0, 32], sizes = [8, 32], strides = [1, 1]} : vector<8x96xf32> to vector<8x32xf32>
      %85 = vector.extract_strided_slice %80 {offsets = [0, 64], sizes = [8, 32], strides = [1, 1]} : vector<8x96xf32> to vector<8x32xf32>
      %c0_39 = arith.constant 0 : index
      %c0_40 = arith.constant 0 : index
      %86 = vector.load %arg17[%c0_39, %c0_40] : memref<8x32xf32, #tpu.memory_space<vmem>>, vector<8x32xf32>
      %87 = arith.mulf %84, %86 : vector<8x32xf32>
      %88 = arith.mulf %83, %82 : vector<8x32xf32>
      %89 = arith.addf %87, %88 : vector<8x32xf32>
      %90 = math.tanh %89 : vector<8x32xf32>
      %91 = arith.mulf %85, %90 : vector<8x32xf32>
      %c0_41 = arith.constant 0 : index
      %c0_42 = arith.constant 0 : index
      %92 = vector.load %arg16[%c0_41, %c0_42] : memref<8x32xf32, #tpu.memory_space<vmem>>, vector<8x32xf32>
      %93 = vector.shape_cast %74 : vector<8x1xi1> to vector<8x1xi1>
      %94 = vector.broadcast %93 : vector<8x1xi1> to vector<8x32xi1>
      %95 = arith.select %94, %91, %92 : vector<8x32xi1>, vector<8x32xf32>
      %c0_43 = arith.constant 0 : index
      %c0_44 = arith.constant 0 : index
      %96 = vector.load %arg16[%c0_43, %c0_44] : memref<8x32xf32, #tpu.memory_space<vmem>>, vector<8x32xf32>
      tpu.vector_store %arg16[%c0_43, %c0_44], %95 {strides = array<i32>} : memref<8x32xf32, #tpu.memory_space<vmem>>, vector<8x32xf32>,
      %c0_45 = arith.constant 0 : index
      %c0_46 = arith.constant 0 : index
      %97 = vector.load %arg17[%c0_45, %c0_46] : memref<8x32xf32, #tpu.memory_space<vmem>>, vector<8x32xf32>
      %98 = vector.shape_cast %74 : vector<8x1xi1> to vector<8x1xi1>
      %99 = vector.broadcast %98 : vector<8x1xi1> to vector<8x32xi1>
      %100 = arith.select %99, %89, %97 : vector<8x32xi1>, vector<8x32xf32>
      %c0_47 = arith.constant 0 : index
      %c0_48 = arith.constant 0 : index
      %101 = vector.load %arg17[%c0_47, %c0_48] : memref<8x32xf32, #tpu.memory_space<vmem>>, vector<8x32xf32>
      tpu.vector_store %arg17[%c0_47, %c0_48], %100 {strides = array<i32>} : memref<8x32xf32, #tpu.memory_space<vmem>>, vector<8x32xf32>,
      %c2_i32 = arith.constant 2 : i32
      %102 = arith.index_cast %c2_i32 : i32 to index
      %c0_49 = arith.constant 0 : index
      %c0_50 = arith.constant 0 : index
      %103 = vector.load %arg20[%102, %c0_49, %c0_50] : memref<4x8x128xf32, #tpu.memory_space<vmem>>, vector<1x8x128xf32>
      %104 = vector.shape_cast %103 : vector<1x8x128xf32> to vector<8x128xf32>
      %c0_51 = arith.constant 0 : index
      %c0_52 = arith.constant 0 : index
      %105 = vector.load %arg16[%c0_51, %c0_52] : memref<8x32xf32, #tpu.memory_space<vmem>>, vector<8x32xf32>
      %c0_53 = arith.constant 0 : index
      %c0_54 = arith.constant 0 : index
      %106 = vector.load %arg9[%c0_53, %c0_54] : memref<32x128xf32, #tpu.memory_space<vmem>>, vector<32x128xf32>
      %cst_55 = arith.constant dense<0.000000e+00> : vector<8x128xf32>
      %107 = tpu.matmul %105, %106, %cst_55 {dimension_numbers = #tpu.dot_dimension_numbers<[1], [0], [0], [1], [0, 0, 1, 1], [], []>} : vector<8x32xf32>, vector<32x128xf32>, vector<8x128xf32> -> vector<8x128xf32>
      %108 = arith.addf %104, %107 : vector<8x128xf32>
      %109 = arith.addi %1, %c2_i32 : i32
      %110 = vector.broadcast %109 : i32 to vector<8x1xi32>
      %111 = arith.cmpi slt, %110, %13 : vector<8x1xi32>
      %112 = vector.extract_strided_slice %108 {offsets = [0, 0], sizes = [8, 96], strides = [1, 1]} : vector<8x128xf32> to vector<8x96xf32>
      %113 = arith.negf %112 : vector<8x96xf32>
      %114 = math.exp %113 : vector<8x96xf32>
      %cst_56 = arith.constant 1.000000e+00 : f32
      %115 = vector.broadcast %cst_56 : f32 to vector<8x96xf32>
      %116 = arith.addf %115, %114 : vector<8x96xf32>
      %117 = arith.divf %115, %116 : vector<8x96xf32>
      %118 = vector.extract_strided_slice %108 {offsets = [0, 96], sizes = [8, 32], strides = [1, 1]} : vector<8x128xf32> to vector<8x32xf32>
      %119 = math.tanh %118 : vector<8x32xf32>
      %120 = vector.extract_strided_slice %117 {offsets = [0, 0], sizes = [8, 32], strides = [1, 1]} : vector<8x96xf32> to vector<8x32xf32>
      %121 = vector.extract_strided_slice %117 {offsets = [0, 32], sizes = [8, 32], strides = [1, 1]} : vector<8x96xf32> to vector<8x32xf32>
      %122 = vector.extract_strided_slice %117 {offsets = [0, 64], sizes = [8, 32], strides = [1, 1]} : vector<8x96xf32> to vector<8x32xf32>
      %c0_57 = arith.constant 0 : index
      %c0_58 = arith.constant 0 : index
      %123 = vector.load %arg17[%c0_57, %c0_58] : memref<8x32xf32, #tpu.memory_space<vmem>>, vector<8x32xf32>
      %124 = arith.mulf %121, %123 : vector<8x32xf32>
      %125 = arith.mulf %120, %119 : vector<8x32xf32>
      %126 = arith.addf %124, %125 : vector<8x32xf32>
      %127 = math.tanh %126 : vector<8x32xf32>
      %128 = arith.mulf %122, %127 : vector<8x32xf32>
      %c0_59 = arith.constant 0 : index
      %c0_60 = arith.constant 0 : index
      %129 = vector.load %arg16[%c0_59, %c0_60] : memref<8x32xf32, #tpu.memory_space<vmem>>, vector<8x32xf32>
      %130 = vector.shape_cast %111 : vector<8x1xi1> to vector<8x1xi1>
      %131 = vector.broadcast %130 : vector<8x1xi1> to vector<8x32xi1>
      %132 = arith.select %131, %128, %129 : vector<8x32xi1>, vector<8x32xf32>
      %c0_61 = arith.constant 0 : index
      %c0_62 = arith.constant 0 : index
      %133 = vector.load %arg16[%c0_61, %c0_62] : memref<8x32xf32, #tpu.memory_space<vmem>>, vector<8x32xf32>
      tpu.vector_store %arg16[%c0_61, %c0_62], %132 {strides = array<i32>} : memref<8x32xf32, #tpu.memory_space<vmem>>, vector<8x32xf32>,
      %c0_63 = arith.constant 0 : index
      %c0_64 = arith.constant 0 : index
      %134 = vector.load %arg17[%c0_63, %c0_64] : memref<8x32xf32, #tpu.memory_space<vmem>>, vector<8x32xf32>
      %135 = vector.shape_cast %111 : vector<8x1xi1> to vector<8x1xi1>
      %136 = vector.broadcast %135 : vector<8x1xi1> to vector<8x32xi1>
      %137 = arith.select %136, %126, %134 : vector<8x32xi1>, vector<8x32xf32>
      %c0_65 = arith.constant 0 : index
      %c0_66 = arith.constant 0 : index
      %138 = vector.load %arg17[%c0_65, %c0_66] : memref<8x32xf32, #tpu.memory_space<vmem>>, vector<8x32xf32>
      tpu.vector_store %arg17[%c0_65, %c0_66], %137 {strides = array<i32>} : memref<8x32xf32, #tpu.memory_space<vmem>>, vector<8x32xf32>,
      %c3_i32 = arith.constant 3 : i32
      %139 = arith.index_cast %c3_i32 : i32 to index
      %c0_67 = arith.constant 0 : index
      %c0_68 = arith.constant 0 : index
      %140 = vector.load %arg20[%139, %c0_67, %c0_68] : memref<4x8x128xf32, #tpu.memory_space<vmem>>, vector<1x8x128xf32>
      %141 = vector.shape_cast %140 : vector<1x8x128xf32> to vector<8x128xf32>
      %c0_69 = arith.constant 0 : index
      %c0_70 = arith.constant 0 : index
      %142 = vector.load %arg16[%c0_69, %c0_70] : memref<8x32xf32, #tpu.memory_space<vmem>>, vector<8x32xf32>
      %c0_71 = arith.constant 0 : index
      %c0_72 = arith.constant 0 : index
      %143 = vector.load %arg9[%c0_71, %c0_72] : memref<32x128xf32, #tpu.memory_space<vmem>>, vector<32x128xf32>
      %cst_73 = arith.constant dense<0.000000e+00> : vector<8x128xf32>
      %144 = tpu.matmul %142, %143, %cst_73 {dimension_numbers = #tpu.dot_dimension_numbers<[1], [0], [0], [1], [0, 0, 1, 1], [], []>} : vector<8x32xf32>, vector<32x128xf32>, vector<8x128xf32> -> vector<8x128xf32>
      %145 = arith.addf %141, %144 : vector<8x128xf32>
      %146 = arith.addi %1, %c3_i32 : i32
      %147 = vector.broadcast %146 : i32 to vector<8x1xi32>
      %148 = arith.cmpi slt, %147, %13 : vector<8x1xi32>
      %149 = vector.extract_strided_slice %145 {offsets = [0, 0], sizes = [8, 96], strides = [1, 1]} : vector<8x128xf32> to vector<8x96xf32>
      %150 = arith.negf %149 : vector<8x96xf32>
      %151 = math.exp %150 : vector<8x96xf32>
      %cst_74 = arith.constant 1.000000e+00 : f32
      %152 = vector.broadcast %cst_74 : f32 to vector<8x96xf32>
      %153 = arith.addf %152, %151 : vector<8x96xf32>
      %154 = arith.divf %152, %153 : vector<8x96xf32>
      %155 = vector.extract_strided_slice %145 {offsets = [0, 96], sizes = [8, 32], strides = [1, 1]} : vector<8x128xf32> to vector<8x32xf32>
      %156 = math.tanh %155 : vector<8x32xf32>
      %157 = vector.extract_strided_slice %154 {offsets = [0, 0], sizes = [8, 32], strides = [1, 1]} : vector<8x96xf32> to vector<8x32xf32>
      %158 = vector.extract_strided_slice %154 {offsets = [0, 32], sizes = [8, 32], strides = [1, 1]} : vector<8x96xf32> to vector<8x32xf32>
      %159 = vector.extract_strided_slice %154 {offsets = [0, 64], sizes = [8, 32], strides = [1, 1]} : vector<8x96xf32> to vector<8x32xf32>
      %c0_75 = arith.constant 0 : index
      %c0_76 = arith.constant 0 : index
      %160 = vector.load %arg17[%c0_75, %c0_76] : memref<8x32xf32, #tpu.memory_space<vmem>>, vector<8x32xf32>
      %161 = arith.mulf %158, %160 : vector<8x32xf32>
      %162 = arith.mulf %157, %156 : vector<8x32xf32>
      %163 = arith.addf %161, %162 : vector<8x32xf32>
      %164 = math.tanh %163 : vector<8x32xf32>
      %165 = arith.mulf %159, %164 : vector<8x32xf32>
      %c0_77 = arith.constant 0 : index
      %c0_78 = arith.constant 0 : index
      %166 = vector.load %arg16[%c0_77, %c0_78] : memref<8x32xf32, #tpu.memory_space<vmem>>, vector<8x32xf32>
      %167 = vector.shape_cast %148 : vector<8x1xi1> to vector<8x1xi1>
      %168 = vector.broadcast %167 : vector<8x1xi1> to vector<8x32xi1>
      %169 = arith.select %168, %165, %166 : vector<8x32xi1>, vector<8x32xf32>
      %c0_79 = arith.constant 0 : index
      %c0_80 = arith.constant 0 : index
      %170 = vector.load %arg16[%c0_79, %c0_80] : memref<8x32xf32, #tpu.memory_space<vmem>>, vector<8x32xf32>
      tpu.vector_store %arg16[%c0_79, %c0_80], %169 {strides = array<i32>} : memref<8x32xf32, #tpu.memory_space<vmem>>, vector<8x32xf32>,
      %c0_81 = arith.constant 0 : index
      %c0_82 = arith.constant 0 : index
      %171 = vector.load %arg17[%c0_81, %c0_82] : memref<8x32xf32, #tpu.memory_space<vmem>>, vector<8x32xf32>
      %172 = vector.shape_cast %148 : vector<8x1xi1> to vector<8x1xi1>
      %173 = vector.broadcast %172 : vector<8x1xi1> to vector<8x32xi1>
      %174 = arith.select %173, %163, %171 : vector<8x32xi1>, vector<8x32xf32>
      %c0_83 = arith.constant 0 : index
      %c0_84 = arith.constant 0 : index
      %175 = vector.load %arg17[%c0_83, %c0_84] : memref<8x32xf32, #tpu.memory_space<vmem>>, vector<8x32xf32>
      tpu.vector_store %arg17[%c0_83, %c0_84], %174 {strides = array<i32>} : memref<8x32xf32, #tpu.memory_space<vmem>>, vector<8x32xf32>,
      %c4_i32_85 = arith.constant 4 : i32
    } else {
    }
    %true_8 = arith.constant true
    %21 = arith.xori %4, %true_8 : i1
    %22 = arith.andi %21, %5 : i1
    %23 = arith.extui %22 : i1 to i32
    %c0_i32_9 = arith.constant 0 : i32
    %24 = arith.cmpi ne, %23, %c0_i32_9 : i32
    scf.if %24 {
      %c0_i32_12 = arith.constant 0 : i32
      %c3_i32 = arith.constant 3 : i32
      %28 = arith.subi %c3_i32, %c0_i32_12 : i32
      %29 = arith.index_cast %28 : i32 to index
      %c0_13 = arith.constant 0 : index
      %c0_14 = arith.constant 0 : index
      %30 = vector.load %arg21[%29, %c0_13, %c0_14] : memref<4x8x128xf32, #tpu.memory_space<vmem>>, vector<1x8x128xf32>
      %31 = vector.shape_cast %30 : vector<1x8x128xf32> to vector<8x128xf32>
      %c0_15 = arith.constant 0 : index
      %c0_16 = arith.constant 0 : index
      %32 = vector.load %arg18[%c0_15, %c0_16] : memref<8x32xf32, #tpu.memory_space<vmem>>, vector<8x32xf32>
      %c0_17 = arith.constant 0 : index
      %c0_18 = arith.constant 0 : index
      %33 = vector.load %arg10[%c0_17, %c0_18] : memref<32x128xf32, #tpu.memory_space<vmem>>, vector<32x128xf32>
      %cst = arith.constant dense<0.000000e+00> : vector<8x128xf32>
      %34 = tpu.matmul %32, %33, %cst {dimension_numbers = #tpu.dot_dimension_numbers<[1], [0], [0], [1], [0, 0, 1, 1], [], []>} : vector<8x32xf32>, vector<32x128xf32>, vector<8x128xf32> -> vector<8x128xf32>
      %35 = arith.addf %31, %34 : vector<8x128xf32>
      %36 = arith.addi %3, %28 : i32
      %37 = vector.broadcast %36 : i32 to vector<8x1xi32>
      %38 = arith.cmpi slt, %37, %13 : vector<8x1xi32>
      %39 = vector.extract_strided_slice %35 {offsets = [0, 0], sizes = [8, 96], strides = [1, 1]} : vector<8x128xf32> to vector<8x96xf32>
      %40 = arith.negf %39 : vector<8x96xf32>
      %41 = math.exp %40 : vector<8x96xf32>
      %cst_19 = arith.constant 1.000000e+00 : f32
      %42 = vector.broadcast %cst_19 : f32 to vector<8x96xf32>
      %43 = arith.addf %42, %41 : vector<8x96xf32>
      %44 = arith.divf %42, %43 : vector<8x96xf32>
      %45 = vector.extract_strided_slice %35 {offsets = [0, 96], sizes = [8, 32], strides = [1, 1]} : vector<8x128xf32> to vector<8x32xf32>
      %46 = math.tanh %45 : vector<8x32xf32>
      %47 = vector.extract_strided_slice %44 {offsets = [0, 0], sizes = [8, 32], strides = [1, 1]} : vector<8x96xf32> to vector<8x32xf32>
      %48 = vector.extract_strided_slice %44 {offsets = [0, 32], sizes = [8, 32], strides = [1, 1]} : vector<8x96xf32> to vector<8x32xf32>
      %49 = vector.extract_strided_slice %44 {offsets = [0, 64], sizes = [8, 32], strides = [1, 1]} : vector<8x96xf32> to vector<8x32xf32>
      %c0_20 = arith.constant 0 : index
      %c0_21 = arith.constant 0 : index
      %50 = vector.load %arg19[%c0_20, %c0_21] : memref<8x32xf32, #tpu.memory_space<vmem>>, vector<8x32xf32>
      %51 = arith.mulf %48, %50 : vector<8x32xf32>
      %52 = arith.mulf %47, %46 : vector<8x32xf32>
      %53 = arith.addf %51, %52 : vector<8x32xf32>
      %54 = math.tanh %53 : vector<8x32xf32>
      %55 = arith.mulf %49, %54 : vector<8x32xf32>
      %c0_22 = arith.constant 0 : index
      %c0_23 = arith.constant 0 : index
      %56 = vector.load %arg18[%c0_22, %c0_23] : memref<8x32xf32, #tpu.memory_space<vmem>>, vector<8x32xf32>
      %57 = vector.shape_cast %38 : vector<8x1xi1> to vector<8x1xi1>
      %58 = vector.broadcast %57 : vector<8x1xi1> to vector<8x32xi1>
      %59 = arith.select %58, %55, %56 : vector<8x32xi1>, vector<8x32xf32>
      %c0_24 = arith.constant 0 : index
      %c0_25 = arith.constant 0 : index
      %60 = vector.load %arg18[%c0_24, %c0_25] : memref<8x32xf32, #tpu.memory_space<vmem>>, vector<8x32xf32>
      tpu.vector_store %arg18[%c0_24, %c0_25], %59 {strides = array<i32>} : memref<8x32xf32, #tpu.memory_space<vmem>>, vector<8x32xf32>,
      %c0_26 = arith.constant 0 : index
      %c0_27 = arith.constant 0 : index
      %61 = vector.load %arg19[%c0_26, %c0_27] : memref<8x32xf32, #tpu.memory_space<vmem>>, vector<8x32xf32>
      %62 = vector.shape_cast %38 : vector<8x1xi1> to vector<8x1xi1>
      %63 = vector.broadcast %62 : vector<8x1xi1> to vector<8x32xi1>
      %64 = arith.select %63, %53, %61 : vector<8x32xi1>, vector<8x32xf32>
      %c0_28 = arith.constant 0 : index
      %c0_29 = arith.constant 0 : index
      %65 = vector.load %arg19[%c0_28, %c0_29] : memref<8x32xf32, #tpu.memory_space<vmem>>, vector<8x32xf32>
      tpu.vector_store %arg19[%c0_28, %c0_29], %64 {strides = array<i32>} : memref<8x32xf32, #tpu.memory_space<vmem>>, vector<8x32xf32>,
      %c1_i32_30 = arith.constant 1 : i32
      %c3_i32_31 = arith.constant 3 : i32
      %66 = arith.subi %c3_i32_31, %c1_i32_30 : i32
      %67 = arith.index_cast %66 : i32 to index
      %c0_32 = arith.constant 0 : index
      %c0_33 = arith.constant 0 : index
      %68 = vector.load %arg21[%67, %c0_32, %c0_33] : memref<4x8x128xf32, #tpu.memory_space<vmem>>, vector<1x8x128xf32>
      %69 = vector.shape_cast %68 : vector<1x8x128xf32> to vector<8x128xf32>
      %c0_34 = arith.constant 0 : index
      %c0_35 = arith.constant 0 : index
      %70 = vector.load %arg18[%c0_34, %c0_35] : memref<8x32xf32, #tpu.memory_space<vmem>>, vector<8x32xf32>
      %c0_36 = arith.constant 0 : index
      %c0_37 = arith.constant 0 : index
      %71 = vector.load %arg10[%c0_36, %c0_37] : memref<32x128xf32, #tpu.memory_space<vmem>>, vector<32x128xf32>
      %cst_38 = arith.constant dense<0.000000e+00> : vector<8x128xf32>
      %72 = tpu.matmul %70, %71, %cst_38 {dimension_numbers = #tpu.dot_dimension_numbers<[1], [0], [0], [1], [0, 0, 1, 1], [], []>} : vector<8x32xf32>, vector<32x128xf32>, vector<8x128xf32> -> vector<8x128xf32>
      %73 = arith.addf %69, %72 : vector<8x128xf32>
      %74 = arith.addi %3, %66 : i32
      %75 = vector.broadcast %74 : i32 to vector<8x1xi32>
      %76 = arith.cmpi slt, %75, %13 : vector<8x1xi32>
      %77 = vector.extract_strided_slice %73 {offsets = [0, 0], sizes = [8, 96], strides = [1, 1]} : vector<8x128xf32> to vector<8x96xf32>
      %78 = arith.negf %77 : vector<8x96xf32>
      %79 = math.exp %78 : vector<8x96xf32>
      %cst_39 = arith.constant 1.000000e+00 : f32
      %80 = vector.broadcast %cst_39 : f32 to vector<8x96xf32>
      %81 = arith.addf %80, %79 : vector<8x96xf32>
      %82 = arith.divf %80, %81 : vector<8x96xf32>
      %83 = vector.extract_strided_slice %73 {offsets = [0, 96], sizes = [8, 32], strides = [1, 1]} : vector<8x128xf32> to vector<8x32xf32>
      %84 = math.tanh %83 : vector<8x32xf32>
      %85 = vector.extract_strided_slice %82 {offsets = [0, 0], sizes = [8, 32], strides = [1, 1]} : vector<8x96xf32> to vector<8x32xf32>
      %86 = vector.extract_strided_slice %82 {offsets = [0, 32], sizes = [8, 32], strides = [1, 1]} : vector<8x96xf32> to vector<8x32xf32>
      %87 = vector.extract_strided_slice %82 {offsets = [0, 64], sizes = [8, 32], strides = [1, 1]} : vector<8x96xf32> to vector<8x32xf32>
      %c0_40 = arith.constant 0 : index
      %c0_41 = arith.constant 0 : index
      %88 = vector.load %arg19[%c0_40, %c0_41] : memref<8x32xf32, #tpu.memory_space<vmem>>, vector<8x32xf32>
      %89 = arith.mulf %86, %88 : vector<8x32xf32>
      %90 = arith.mulf %85, %84 : vector<8x32xf32>
      %91 = arith.addf %89, %90 : vector<8x32xf32>
      %92 = math.tanh %91 : vector<8x32xf32>
      %93 = arith.mulf %87, %92 : vector<8x32xf32>
      %c0_42 = arith.constant 0 : index
      %c0_43 = arith.constant 0 : index
      %94 = vector.load %arg18[%c0_42, %c0_43] : memref<8x32xf32, #tpu.memory_space<vmem>>, vector<8x32xf32>
      %95 = vector.shape_cast %76 : vector<8x1xi1> to vector<8x1xi1>
      %96 = vector.broadcast %95 : vector<8x1xi1> to vector<8x32xi1>
      %97 = arith.select %96, %93, %94 : vector<8x32xi1>, vector<8x32xf32>
      %c0_44 = arith.constant 0 : index
      %c0_45 = arith.constant 0 : index
      %98 = vector.load %arg18[%c0_44, %c0_45] : memref<8x32xf32, #tpu.memory_space<vmem>>, vector<8x32xf32>
      tpu.vector_store %arg18[%c0_44, %c0_45], %97 {strides = array<i32>} : memref<8x32xf32, #tpu.memory_space<vmem>>, vector<8x32xf32>,
      %c0_46 = arith.constant 0 : index
      %c0_47 = arith.constant 0 : index
      %99 = vector.load %arg19[%c0_46, %c0_47] : memref<8x32xf32, #tpu.memory_space<vmem>>, vector<8x32xf32>
      %100 = vector.shape_cast %76 : vector<8x1xi1> to vector<8x1xi1>
      %101 = vector.broadcast %100 : vector<8x1xi1> to vector<8x32xi1>
      %102 = arith.select %101, %91, %99 : vector<8x32xi1>, vector<8x32xf32>
      %c0_48 = arith.constant 0 : index
      %c0_49 = arith.constant 0 : index
      %103 = vector.load %arg19[%c0_48, %c0_49] : memref<8x32xf32, #tpu.memory_space<vmem>>, vector<8x32xf32>
      tpu.vector_store %arg19[%c0_48, %c0_49], %102 {strides = array<i32>} : memref<8x32xf32, #tpu.memory_space<vmem>>, vector<8x32xf32>,
      %c2_i32 = arith.constant 2 : i32
      %c3_i32_50 = arith.constant 3 : i32
      %104 = arith.subi %c3_i32_50, %c2_i32 : i32
      %105 = arith.index_cast %104 : i32 to index
      %c0_51 = arith.constant 0 : index
      %c0_52 = arith.constant 0 : index
      %106 = vector.load %arg21[%105, %c0_51, %c0_52] : memref<4x8x128xf32, #tpu.memory_space<vmem>>, vector<1x8x128xf32>
      %107 = vector.shape_cast %106 : vector<1x8x128xf32> to vector<8x128xf32>
      %c0_53 = arith.constant 0 : index
      %c0_54 = arith.constant 0 : index
      %108 = vector.load %arg18[%c0_53, %c0_54] : memref<8x32xf32, #tpu.memory_space<vmem>>, vector<8x32xf32>
      %c0_55 = arith.constant 0 : index
      %c0_56 = arith.constant 0 : index
      %109 = vector.load %arg10[%c0_55, %c0_56] : memref<32x128xf32, #tpu.memory_space<vmem>>, vector<32x128xf32>
      %cst_57 = arith.constant dense<0.000000e+00> : vector<8x128xf32>
      %110 = tpu.matmul %108, %109, %cst_57 {dimension_numbers = #tpu.dot_dimension_numbers<[1], [0], [0], [1], [0, 0, 1, 1], [], []>} : vector<8x32xf32>, vector<32x128xf32>, vector<8x128xf32> -> vector<8x128xf32>
      %111 = arith.addf %107, %110 : vector<8x128xf32>
      %112 = arith.addi %3, %104 : i32
      %113 = vector.broadcast %112 : i32 to vector<8x1xi32>
      %114 = arith.cmpi slt, %113, %13 : vector<8x1xi32>
      %115 = vector.extract_strided_slice %111 {offsets = [0, 0], sizes = [8, 96], strides = [1, 1]} : vector<8x128xf32> to vector<8x96xf32>
      %116 = arith.negf %115 : vector<8x96xf32>
      %117 = math.exp %116 : vector<8x96xf32>
      %cst_58 = arith.constant 1.000000e+00 : f32
      %118 = vector.broadcast %cst_58 : f32 to vector<8x96xf32>
      %119 = arith.addf %118, %117 : vector<8x96xf32>
      %120 = arith.divf %118, %119 : vector<8x96xf32>
      %121 = vector.extract_strided_slice %111 {offsets = [0, 96], sizes = [8, 32], strides = [1, 1]} : vector<8x128xf32> to vector<8x32xf32>
      %122 = math.tanh %121 : vector<8x32xf32>
      %123 = vector.extract_strided_slice %120 {offsets = [0, 0], sizes = [8, 32], strides = [1, 1]} : vector<8x96xf32> to vector<8x32xf32>
      %124 = vector.extract_strided_slice %120 {offsets = [0, 32], sizes = [8, 32], strides = [1, 1]} : vector<8x96xf32> to vector<8x32xf32>
      %125 = vector.extract_strided_slice %120 {offsets = [0, 64], sizes = [8, 32], strides = [1, 1]} : vector<8x96xf32> to vector<8x32xf32>
      %c0_59 = arith.constant 0 : index
      %c0_60 = arith.constant 0 : index
      %126 = vector.load %arg19[%c0_59, %c0_60] : memref<8x32xf32, #tpu.memory_space<vmem>>, vector<8x32xf32>
      %127 = arith.mulf %124, %126 : vector<8x32xf32>
      %128 = arith.mulf %123, %122 : vector<8x32xf32>
      %129 = arith.addf %127, %128 : vector<8x32xf32>
      %130 = math.tanh %129 : vector<8x32xf32>
      %131 = arith.mulf %125, %130 : vector<8x32xf32>
      %c0_61 = arith.constant 0 : index
      %c0_62 = arith.constant 0 : index
      %132 = vector.load %arg18[%c0_61, %c0_62] : memref<8x32xf32, #tpu.memory_space<vmem>>, vector<8x32xf32>
      %133 = vector.shape_cast %114 : vector<8x1xi1> to vector<8x1xi1>
      %134 = vector.broadcast %133 : vector<8x1xi1> to vector<8x32xi1>
      %135 = arith.select %134, %131, %132 : vector<8x32xi1>, vector<8x32xf32>
      %c0_63 = arith.constant 0 : index
      %c0_64 = arith.constant 0 : index
      %136 = vector.load %arg18[%c0_63, %c0_64] : memref<8x32xf32, #tpu.memory_space<vmem>>, vector<8x32xf32>
      tpu.vector_store %arg18[%c0_63, %c0_64], %135 {strides = array<i32>} : memref<8x32xf32, #tpu.memory_space<vmem>>, vector<8x32xf32>,
      %c0_65 = arith.constant 0 : index
      %c0_66 = arith.constant 0 : index
      %137 = vector.load %arg19[%c0_65, %c0_66] : memref<8x32xf32, #tpu.memory_space<vmem>>, vector<8x32xf32>
      %138 = vector.shape_cast %114 : vector<8x1xi1> to vector<8x1xi1>
      %139 = vector.broadcast %138 : vector<8x1xi1> to vector<8x32xi1>
      %140 = arith.select %139, %129, %137 : vector<8x32xi1>, vector<8x32xf32>
      %c0_67 = arith.constant 0 : index
      %c0_68 = arith.constant 0 : index
      %141 = vector.load %arg19[%c0_67, %c0_68] : memref<8x32xf32, #tpu.memory_space<vmem>>, vector<8x32xf32>
      tpu.vector_store %arg19[%c0_67, %c0_68], %140 {strides = array<i32>} : memref<8x32xf32, #tpu.memory_space<vmem>>, vector<8x32xf32>,
      %c3_i32_69 = arith.constant 3 : i32
      %c3_i32_70 = arith.constant 3 : i32
      %142 = arith.subi %c3_i32_70, %c3_i32_69 : i32
      %143 = arith.index_cast %142 : i32 to index
      %c0_71 = arith.constant 0 : index
      %c0_72 = arith.constant 0 : index
      %144 = vector.load %arg21[%143, %c0_71, %c0_72] : memref<4x8x128xf32, #tpu.memory_space<vmem>>, vector<1x8x128xf32>
      %145 = vector.shape_cast %144 : vector<1x8x128xf32> to vector<8x128xf32>
      %c0_73 = arith.constant 0 : index
      %c0_74 = arith.constant 0 : index
      %146 = vector.load %arg18[%c0_73, %c0_74] : memref<8x32xf32, #tpu.memory_space<vmem>>, vector<8x32xf32>
      %c0_75 = arith.constant 0 : index
      %c0_76 = arith.constant 0 : index
      %147 = vector.load %arg10[%c0_75, %c0_76] : memref<32x128xf32, #tpu.memory_space<vmem>>, vector<32x128xf32>
      %cst_77 = arith.constant dense<0.000000e+00> : vector<8x128xf32>
      %148 = tpu.matmul %146, %147, %cst_77 {dimension_numbers = #tpu.dot_dimension_numbers<[1], [0], [0], [1], [0, 0, 1, 1], [], []>} : vector<8x32xf32>, vector<32x128xf32>, vector<8x128xf32> -> vector<8x128xf32>
      %149 = arith.addf %145, %148 : vector<8x128xf32>
      %150 = arith.addi %3, %142 : i32
      %151 = vector.broadcast %150 : i32 to vector<8x1xi32>
      %152 = arith.cmpi slt, %151, %13 : vector<8x1xi32>
      %153 = vector.extract_strided_slice %149 {offsets = [0, 0], sizes = [8, 96], strides = [1, 1]} : vector<8x128xf32> to vector<8x96xf32>
      %154 = arith.negf %153 : vector<8x96xf32>
      %155 = math.exp %154 : vector<8x96xf32>
      %cst_78 = arith.constant 1.000000e+00 : f32
      %156 = vector.broadcast %cst_78 : f32 to vector<8x96xf32>
      %157 = arith.addf %156, %155 : vector<8x96xf32>
      %158 = arith.divf %156, %157 : vector<8x96xf32>
      %159 = vector.extract_strided_slice %149 {offsets = [0, 96], sizes = [8, 32], strides = [1, 1]} : vector<8x128xf32> to vector<8x32xf32>
      %160 = math.tanh %159 : vector<8x32xf32>
      %161 = vector.extract_strided_slice %158 {offsets = [0, 0], sizes = [8, 32], strides = [1, 1]} : vector<8x96xf32> to vector<8x32xf32>
      %162 = vector.extract_strided_slice %158 {offsets = [0, 32], sizes = [8, 32], strides = [1, 1]} : vector<8x96xf32> to vector<8x32xf32>
      %163 = vector.extract_strided_slice %158 {offsets = [0, 64], sizes = [8, 32], strides = [1, 1]} : vector<8x96xf32> to vector<8x32xf32>
      %c0_79 = arith.constant 0 : index
      %c0_80 = arith.constant 0 : index
      %164 = vector.load %arg19[%c0_79, %c0_80] : memref<8x32xf32, #tpu.memory_space<vmem>>, vector<8x32xf32>
      %165 = arith.mulf %162, %164 : vector<8x32xf32>
      %166 = arith.mulf %161, %160 : vector<8x32xf32>
      %167 = arith.addf %165, %166 : vector<8x32xf32>
      %168 = math.tanh %167 : vector<8x32xf32>
      %169 = arith.mulf %163, %168 : vector<8x32xf32>
      %c0_81 = arith.constant 0 : index
      %c0_82 = arith.constant 0 : index
      %170 = vector.load %arg18[%c0_81, %c0_82] : memref<8x32xf32, #tpu.memory_space<vmem>>, vector<8x32xf32>
      %171 = vector.shape_cast %152 : vector<8x1xi1> to vector<8x1xi1>
      %172 = vector.broadcast %171 : vector<8x1xi1> to vector<8x32xi1>
      %173 = arith.select %172, %169, %170 : vector<8x32xi1>, vector<8x32xf32>
      %c0_83 = arith.constant 0 : index
      %c0_84 = arith.constant 0 : index
      %174 = vector.load %arg18[%c0_83, %c0_84] : memref<8x32xf32, #tpu.memory_space<vmem>>, vector<8x32xf32>
      tpu.vector_store %arg18[%c0_83, %c0_84], %173 {strides = array<i32>} : memref<8x32xf32, #tpu.memory_space<vmem>>, vector<8x32xf32>,
      %c0_85 = arith.constant 0 : index
      %c0_86 = arith.constant 0 : index
      %175 = vector.load %arg19[%c0_85, %c0_86] : memref<8x32xf32, #tpu.memory_space<vmem>>, vector<8x32xf32>
      %176 = vector.shape_cast %152 : vector<8x1xi1> to vector<8x1xi1>
      %177 = vector.broadcast %176 : vector<8x1xi1> to vector<8x32xi1>
      %178 = arith.select %177, %167, %175 : vector<8x32xi1>, vector<8x32xf32>
      %c0_87 = arith.constant 0 : index
      %c0_88 = arith.constant 0 : index
      %179 = vector.load %arg19[%c0_87, %c0_88] : memref<8x32xf32, #tpu.memory_space<vmem>>, vector<8x32xf32>
      tpu.vector_store %arg19[%c0_87, %c0_88], %178 {strides = array<i32>} : memref<8x32xf32, #tpu.memory_space<vmem>>, vector<8x32xf32>,
      %c4_i32_89 = arith.constant 4 : i32
    } else {
    }
    %c1_i32_10 = arith.constant 1 : i32
    %25 = arith.cmpi eq, %arg0, %c1_i32_10 : i32
    %26 = arith.extui %25 : i1 to i32
    %c0_i32_11 = arith.constant 0 : i32
    %27 = arith.cmpi ne, %26, %c0_i32_11 : i32
    scf.if %27 {
      %c0_12 = arith.constant 0 : index
      %c0_13 = arith.constant 0 : index
      %28 = vector.load %arg16[%c0_12, %c0_13] : memref<8x32xf32, #tpu.memory_space<vmem>>, vector<8x32xf32>
      %c0_14 = arith.constant 0 : index
      %c0_15 = arith.constant 0 : index
      %29 = vector.load %arg12[%c0_14, %c0_15] : memref<32x4xf32, #tpu.memory_space<vmem>>, vector<32x4xf32>
      %cst = arith.constant dense<0.000000e+00> : vector<8x4xf32>
      %30 = tpu.matmul %28, %29, %cst {dimension_numbers = #tpu.dot_dimension_numbers<[1], [0], [0], [1], [0, 0, 1, 1], [], []>} : vector<8x32xf32>, vector<32x4xf32>, vector<8x4xf32> -> vector<8x4xf32>
      %c0_16 = arith.constant 0 : index
      %c0_17 = arith.constant 0 : index
      %31 = vector.load %arg18[%c0_16, %c0_17] : memref<8x32xf32, #tpu.memory_space<vmem>>, vector<8x32xf32>
      %c0_18 = arith.constant 0 : index
      %c0_19 = arith.constant 0 : index
      %32 = vector.load %arg13[%c0_18, %c0_19] : memref<32x4xf32, #tpu.memory_space<vmem>>, vector<32x4xf32>
      %cst_20 = arith.constant dense<0.000000e+00> : vector<8x4xf32>
      %33 = tpu.matmul %31, %32, %cst_20 {dimension_numbers = #tpu.dot_dimension_numbers<[1], [0], [0], [1], [0, 0, 1, 1], [], []>} : vector<8x32xf32>, vector<32x4xf32>, vector<8x4xf32> -> vector<8x4xf32>
      %34 = arith.addf %30, %33 : vector<8x4xf32>
      %c0_21 = arith.constant 0 : index
      %c0_22 = arith.constant 0 : index
      %35 = vector.load %arg14[%c0_21, %c0_22] : memref<1x4xf32, #tpu.memory_space<vmem>>, vector<1x4xf32>
      %36 = vector.broadcast %35 : vector<1x4xf32> to vector<8x4xf32>
      %37 = arith.addf %34, %36 : vector<8x4xf32>
      %c0_23 = arith.constant 0 : index
      %c0_24 = arith.constant 0 : index
      %38 = vector.load %arg15[%c0_23, %c0_24] : memref<8x4xf32, #tpu.memory_space<vmem>>, vector<8x4xf32>
      tpu.vector_store %arg15[%c0_23, %c0_24], %37 {strides = array<i32>} : memref<8x4xf32, #tpu.memory_space<vmem>>, vector<8x4xf32>,
    } else {
    }
    return
  }
  func.func @transform_0(%arg0: i32, %arg1: memref<2xi32, #tpu.memory_space<smem>>) -> (i32, i32) {
    %c0_i32 = arith.constant 0 : i32
    %c0_i32_0 = arith.constant 0 : i32
    %c0_i32_1 = arith.constant 0 : i32
    return %c0_i32, %c0_i32_0 : i32, i32
  }
  func.func @transform_1(%arg0: i32, %arg1: memref<2xi32, #tpu.memory_space<smem>>) -> (i32, i32, i32) {
    %c1 = arith.constant 1 : index
    %0 = memref.load %arg1[%c1] : memref<2xi32, #tpu.memory_space<smem>>
    %c1_i32 = arith.constant 1 : i32
    %1 = arith.subi %0, %c1_i32 : i32
    %2 = arith.minsi %arg0, %1 : i32
    %c0_i32 = arith.constant 0 : i32
    %c0_i32_0 = arith.constant 0 : i32
    %c0_i32_1 = arith.constant 0 : i32
    return %2, %c0_i32, %c0_i32_0 : i32, i32, i32
  }
  func.func @transform_2(%arg0: i32, %arg1: memref<2xi32, #tpu.memory_space<smem>>) -> (i32, i32, i32) {
    %c1_i32 = arith.constant 1 : i32
    %0 = arith.subi %c1_i32, %arg0 : i32
    %c1 = arith.constant 1 : index
    %1 = memref.load %arg1[%c1] : memref<2xi32, #tpu.memory_space<smem>>
    %c1_i32_0 = arith.constant 1 : i32
    %2 = arith.subi %1, %c1_i32_0 : i32
    %3 = arith.minsi %0, %2 : i32
    %c0_i32 = arith.constant 0 : i32
    %c0_i32_1 = arith.constant 0 : i32
    %c0_i32_2 = arith.constant 0 : i32
    return %3, %c0_i32, %c0_i32_1 : i32, i32, i32
  }
  func.func @transform_3(%arg0: i32, %arg1: memref<2xi32, #tpu.memory_space<smem>>) -> (i32, i32) {
    %c0_i32 = arith.constant 0 : i32
    %c0_i32_0 = arith.constant 0 : i32
    %c0_i32_1 = arith.constant 0 : i32
    return %c0_i32, %c0_i32_0 : i32, i32
  }
  func.func @transform_4(%arg0: i32, %arg1: memref<2xi32, #tpu.memory_space<smem>>) -> (i32, i32) {
    %c0_i32 = arith.constant 0 : i32
    %c0_i32_0 = arith.constant 0 : i32
    %c0_i32_1 = arith.constant 0 : i32
    return %c0_i32, %c0_i32_0 : i32, i32
  }
  func.func @transform_5(%arg0: i32, %arg1: memref<2xi32, #tpu.memory_space<smem>>) -> (i32, i32) {
    %c0_i32 = arith.constant 0 : i32
    %c0_i32_0 = arith.constant 0 : i32
    %c0_i32_1 = arith.constant 0 : i32
    return %c0_i32, %c0_i32_0 : i32, i32
  }
  func.func @transform_6(%arg0: i32, %arg1: memref<2xi32, #tpu.memory_space<smem>>) -> (i32, i32) {
    %c0_i32 = arith.constant 0 : i32
    %c0_i32_0 = arith.constant 0 : i32
    %c0_i32_1 = arith.constant 0 : i32
    return %c0_i32, %c0_i32_0 : i32, i32
  }
  func.func @transform_7(%arg0: i32, %arg1: memref<2xi32, #tpu.memory_space<smem>>) -> (i32, i32) {
    %c0_i32 = arith.constant 0 : i32
    %c0_i32_0 = arith.constant 0 : i32
    %c0_i32_1 = arith.constant 0 : i32
    return %c0_i32, %c0_i32_0 : i32, i32
  }
  func.func @transform_8(%arg0: i32, %arg1: memref<2xi32, #tpu.memory_space<smem>>) -> (i32, i32) {
    %c0_i32 = arith.constant 0 : i32
    %c0_i32_0 = arith.constant 0 : i32
    %c0_i32_1 = arith.constant 0 : i32
    return %c0_i32, %c0_i32_0 : i32, i32
  }
  func.func @transform_9(%arg0: i32, %arg1: memref<2xi32, #tpu.memory_space<smem>>) -> (i32, i32) {
    %c0_i32 = arith.constant 0 : i32
    %c0_i32_0 = arith.constant 0 : i32
    %c0_i32_1 = arith.constant 0 : i32
    return %c0_i32, %c0_i32_0 : i32, i32
  }
  func.func @transform_10(%arg0: i32, %arg1: memref<2xi32, #tpu.memory_space<smem>>) -> (i32, i32) {
    %c0_i32 = arith.constant 0 : i32
    %c0_i32_0 = arith.constant 0 : i32
    %c0_i32_1 = arith.constant 0 : i32
    return %c0_i32, %c0_i32_0 : i32, i32
  }
  func.func @transform_11(%arg0: i32, %arg1: memref<2xi32, #tpu.memory_space<smem>>) -> (i32, i32) {
    %c0_i32 = arith.constant 0 : i32
    %c0_i32_0 = arith.constant 0 : i32
    %c0_i32_1 = arith.constant 0 : i32
    return %c0_i32, %c0_i32_0 : i32, i32
  }
  func.func @transform_12(%arg0: i32, %arg1: memref<2xi32, #tpu.memory_space<smem>>) -> (i32, i32) {
    %c0_i32 = arith.constant 0 : i32
    %c0_i32_0 = arith.constant 0 : i32
    %c0_i32_1 = arith.constant 0 : i32
    return %c0_i32, %c0_i32_0 : i32, i32
  }
  func.func @transform_13(%arg0: i32, %arg1: memref<2xi32, #tpu.memory_space<smem>>) -> (i32, i32) {
    %c0_i32 = arith.constant 0 : i32
    %c0_i32_0 = arith.constant 0 : i32
    %c0_i32_1 = arith.constant 0 : i32
    return %c0_i32, %c0_i32_0 : i32, i32
  }
}

</mosaic_0001>

<bundles_post_ra>
// kernel: tpu_custom_call.1
= control target key start
LH: loop header
LB: loop body
LE: loop exit
PB: predicated region body
PF: predicated region fallthrough
CT: control target
= control target key end

     0   :  { %s4712_s0 = inlined_call_operand.hbm [shape: s32[2], index: 0, kind: input, shape index: {}]   ;;  %s4713_s1 = inlined_call_operand.vmem [shape: s32[8,1], index: 1, kind: input, shape index: {}]   ;;  %s4714_s2 = inlined_call_operand.vmem [shape: f32[8,8,32], index: 2, kind: input, shape index: {}]   ;;  %s4715_s3 = inlined_call_operand.hbm [shape: f32[8,8,32], index: 3, kind: input, shape index: {}]   ;;  %s4716_s4 = inlined_call_operand.vmem [shape: f32[32,128], index: 4, kind: input, shape index: {}]   ;;  %s4717_s5 = inlined_call_operand.hbm [shape: f32[32,128], index: 5, kind: input, shape index: {}]   ;;  %s4718_s6 = inlined_call_operand.vmem [shape: f32[1,128], index: 6, kind: input, shape index: {}]   ;;  %s4719_s7 = inlined_call_operand.vmem [shape: f32[1,128], index: 7, kind: input, shape index: {}]   ;;  %s4720_s8 = inlined_call_operand.hbm [shape: f32[32,128], index: 8, kind: input, shape index: {}]   ;;  %s4721_s9 = inlined_call_operand.hbm [shape: f32[32,128], index: 9, kind: input, shape index: {}]   ;;  %s4722_s10 = inlined_call_operand.hbm [shape: f32[32,256], index: 10, kind: input, shape index: {}]   ;;  %s4723_s11 = inlined_call_operand.vmem [shape: f32[32,4], index: 11, kind: input, shape index: {}]   ;;  %s4724_s12 = inlined_call_operand.vmem [shape: f32[32,4], index: 12, kind: input, shape index: {}]   ;;  %s4725_s13 = inlined_call_operand.vmem [shape: f32[1,4], index: 13, kind: input, shape index: {}]   ;;  %s4726_s14 = inlined_call_operand.vmem [shape: f32[8,4], index: 14, kind: output, shape index: {}]  }
   0x1   :  { %4733 = sst [smem:[#allocation22_spill]] %s4713_s1  ;;  %s3707_s15 = scalar_lea.hbm %s4712_s0, 16 }
   0x2   :  { %4734 = sst [smem:[#allocation23_spill]] %s4723_s11  ;;  %p3708_p0 = scmp.ne.s32.totalorder %s4712_s0, %s3707_s15 }
   0x3   :  { %4735 = sst [smem:[#allocation24_spill]] %s4724_s12  ;;  %p3711_p1 = scmp.lt.u32.totalorder %s3707_s15, %s4712_s0 }
   0x4   :  { %4736 = sst [smem:[#allocation25_spill]] %s4725_s13 }
   0x5   :  { %4737 = sst [smem:[#allocation26_spill]] %s4726_s14  ;;  %p3713_p2 = pnand %p3711_p1, %p3708_p0 }
   0x7   :  { %3716 = shalt.err (!%p3713_p2)  }
   0x8   :  { %s3905_s20 = smov [#allocation9]  }
   0x9   :  { %20 = dma.hbm_to_smem %s4712_s0, 16, %s3905_s20, [#allocation8] }
   0xa   :  { %3875 = dma.done.wait [#allocation8], 16 }
   0xb   :  { %3876 = vsyncadd [#allocation8], 4294967280 }
   0xc   :  { %22 = sfence }
   0xd   :  { %23 = vsyncpa [#allocation11], 0 }
   0xe   :  { %25 = vsyncpa [#allocation11 + $0x1], 0 }
   0xf   :  { %26 = vsyncpa [#allocation13], 0 }
  0x10   :  { %27 = vsyncpa [#allocation16], 0  ;;  %s4025_s23 = smov 0   ;;  %s4027_s24 = smov 0  }
  0x11   :  { %s4029_s25 = smov 0   ;;  %s4031_s26 = smov 0  }
  0x12 LB: > { %s4044_s0 = sadd.s32 4294967295, %s3903_s26   ;;  %p118_p3 = scmp.ne.s32.totalorder %s3895_s24, %s3891_s23  ;;  %s3903_s26 = sphi %s4031_s26, %s4761_s26   ;;  %s3899_s25 = sphi %s4029_s25, %s4760_s25   ;;  %s3895_s24 = sphi %s4027_s24, %s4759_s24   ;;  %s3891_s23 = sphi %s4025_s23, %s4758_s23  }
  0x13   : > { %p4727_p4 = scmp.eq.s32.totalorder %s4044_s0, 0  ;;  %p3070_p5 = scmp.ge.s32.totalorder %s3903_s26, 1 }
  0x14   : > { %p360_p6 = scmp.lt.s32.totalorder %s3903_s26, 3  ;;  %s3906_s29 = smov [#allocation12]  }
  0x15   : > { %p4053_p8 = por %p4727_p4, %p118_p3  ;;  %s378_s30 = sshll.u32 %s3906_s29, 4  ;;  %s4061_s30 = int_to_ptr.vmem [resolvable:$true] %s378_s30 }
  0x16   : > { %p4057_p9 = pnand %p3070_p5, %p360_p6  ;;  %s3907_s16 = smov [#allocation15]  }
  0x17   : > { %s4738_s27 = scalar_select %p4053_p8, 1, 0 }
  0x18   : > { %s4739_s28 = scalar_select %p4057_p9, 1, 0 }
  0x19   : > { %p3483_p10 = pneg %p4057_p9  ;;  %s410_s17 = sshll.u32 %s3907_s16, 4  ;;  %s4071_s17 = int_to_ptr.vmem [resolvable:$true] %s410_s17 }
  0x1a   : > { %s3908_s18 = smov [#allocation14]   ;;  %s3717_s22 = scalar_lea.hbm %s4717_s5, 512 }
  0x1b   : > { %p4067_p11 = pnand %p3483_p10, %p4727_p4  ;;  %s4073_s19 = sshll.u32 %s3908_s18, 4  ;;  %s398_s19 = int_to_ptr.vmem [resolvable:$true] %s4073_s19 }
  0x1c   : > { %p3718_p12 = scmp.ne.s32.totalorder %s4717_s5, %s3717_s22  ;;  %p3724_p2 = scmp.lt.u32.totalorder %s3717_s22, %s4717_s5 }
  0x1d   : > { %p4083_p13 = pneg %p4067_p11 }
  0x1f   : > { %p3720_p0 = pnand %p4083_p13, %p3718_p12 }
  0x21   : > { %p3721_p1 = pneg %p3720_p0 }
  0x23   : > { %p3726_p3 = pnand %p3724_p2, %p3721_p1 }
  0x25   : > { %3729 = shalt.err (!%p3726_p3)
}
  0x26   : > { %s3730_s20 = scalar_lea.vmem %s4061_s30, 512  ;;  %p3738_p7 = scmp.lt.s32.totalorder %s4061_s30, %s4061_s30 }
  0x27   : > { %p3731_p5 = scmp.ne.s32.totalorder %s4061_s30, %s3730_s20  ;;  %p3739_p4 = scmp.lt.s32.totalorder %s3730_s20, %s3730_s20 }
  0x29   : > { %p3733_p6 = pnand %p3731_p5, %p4083_p13  ;;  %p3740_p12 = por %p3739_p4, %p3738_p7 }
  0x2b   : > { %p3734_p10 = pneg %p3733_p6 }
  0x2d   : > { %p3741_p0 = pnand %p3740_p12, %p3734_p10 }
  0x2f   : > { %3744 = shalt.err (!%p3741_p0)
}
  0x30   : > { %s4732_s21 = smov 128   ;;  %s3910_s22 = smov 8  }
  0x31   : > { %3486 = dma.hbm_to_vmem [thread:$0]  (!%p4067_p11), %s4717_s5, 512, %s4061_s30, [#allocation13], %s4732_s21, %s4732_s21, %s3910_s22  }
  0x32   : > { %s3745_s20 = scalar_lea.hbm %s4721_s9, 512 }
  0x33   : > { %p3746_p4 = scmp.ne.s32.totalorder %s4721_s9, %s3745_s20  ;;  %p3752_p2 = scmp.lt.u32.totalorder %s3745_s20, %s4721_s9 }
  0x35   : > { %p3748_p7 = pnand %p3746_p4, %p4083_p13 }
  0x37   : > { %p3749_p1 = pneg %p3748_p7 }
  0x39   : > { %p3754_p3 = pnand %p3752_p2, %p3749_p1 }
  0x3b   : > { %3757 = shalt.err (!%p3754_p3)
}
  0x3c   : > { %s3758_s30 = scalar_lea.vmem %s4071_s17, 512  ;;  %p3766_p12 = scmp.lt.s32.totalorder %s4071_s17, %s4071_s17 }
  0x3d   : > { %p3759_p5 = scmp.ne.s32.totalorder %s4071_s17, %s3758_s30  ;;  %p3767_p0 = scmp.lt.s32.totalorder %s3758_s30, %s3758_s30 }
  0x3f   : > { %p3761_p6 = pnand %p3759_p5, %p4083_p13  ;;  %p3768_p4 = por %p3767_p0, %p3766_p12 }
  0x41   : > { %p3762_p10 = pneg %p3761_p6 }
  0x43   : > { %p3769_p7 = pnand %p3768_p4, %p3762_p10 }
  0x45   : > { %3772 = shalt.err (!%p3769_p7)
}
  0x46   : > { %3492 = dma.hbm_to_vmem [thread:$0]  (!%p4067_p11), %s4721_s9, 512, %s4071_s17, [#allocation16], %s4732_s21, %s4732_s21, %s3910_s22  }
  0x47   : > { %s3773_s23 = scalar_lea.hbm %s4720_s8, 512 }
  0x48   : > { %p3774_p1 = scmp.ne.s32.totalorder %s4720_s8, %s3773_s23  ;;  %p3780_p5 = scmp.lt.u32.totalorder %s3773_s23, %s4720_s8 }
  0x4a   : > { %p3776_p2 = pnand %p3774_p1, %p4083_p13 }
  0x4c   : > { %p3777_p3 = pneg %p3776_p2 }
  0x4e   : > { %p3782_p6 = pnand %p3780_p5, %p3777_p3 }
  0x50   : > { %3785 = shalt.err (!%p3782_p6)
}
  0x51   : > { %s3786_s30 = scalar_lea.vmem %s398_s19, 512  ;;  %p3794_p4 = scmp.lt.s32.totalorder %s398_s19, %s398_s19 }
  0x52   : > { %p3787_p10 = scmp.ne.s32.totalorder %s398_s19, %s3786_s30  ;;  %p3795_p7 = scmp.lt.s32.totalorder %s3786_s30, %s3786_s30 }
  0x54   : > { %p3789_p12 = pnand %p3787_p10, %p4083_p13  ;;  %p3796_p8 = por %p3795_p7, %p3794_p4 }
  0x56   : > { %p3790_p0 = pneg %p3789_p12 }
  0x58   : > { %p3797_p9 = pnand %p3796_p8, %p3790_p0 }
  0x5a   : > { %3800 = shalt.err (!%p3797_p9)
}
  0x5b   : > { %3489 = dma.hbm_to_vmem [thread:$0]  (!%p4067_p11), %s4720_s8, 512, %s398_s19, [#allocation13], %s4732_s21, %s4732_s21, %s3910_s22  }
  0x5c   : > { %s3911_s11 = smov [#allocation17]   ;;  %s3801_s29 = scalar_lea.hbm %s4722_s10, 1024 }
  0x5d   : > { %s423_s12 = sshll.u32 %s3911_s11, 4  ;;  %p3802_p8 = scmp.ne.s32.totalorder %s4722_s10, %s3801_s29  ;;  %s424_s12 = int_to_ptr.vmem [resolvable:$true] %s423_s12 }
  0x5e   : > { %p3808_p2 = scmp.lt.u32.totalorder %s3801_s29, %s4722_s10 }
  0x5f   : > { %p3804_p9 = pnand %p3802_p8, %p4083_p13 }
  0x61   : > { %p3805_p1 = pneg %p3804_p9 }
  0x63   : > { %p3810_p3 = pnand %p3808_p2, %p3805_p1 }
  0x65   : > { %3813 = shalt.err (!%p3810_p3)
}
  0x66   : > { %s3814_s19 = scalar_lea.vmem %s424_s12, 1024  ;;  %p3822_p12 = scmp.lt.s32.totalorder %s424_s12, %s424_s12 }
  0x67   : > { %p3815_p5 = scmp.ne.s32.totalorder %s424_s12, %s3814_s19  ;;  %p3823_p0 = scmp.lt.s32.totalorder %s3814_s19, %s3814_s19 }
  0x69   : > { %p3817_p6 = pnand %p3815_p5, %p4083_p13  ;;  %p3824_p4 = por %p3823_p0, %p3822_p12 }
  0x6b   : > { %p3818_p10 = pneg %p3817_p6 }
  0x6d   : > { %p3825_p7 = pnand %p3824_p4, %p3818_p10 }
  0x6f   : > { %3828 = shalt.err (!%p3825_p7)
}
  0x70   : > { %s3912_s17 = smov 256   ;;  %s3913_s1 = smov 16  }
  0x71   : > { %3495 = dma.hbm_to_vmem [thread:$0]  (!%p4067_p11), %s4722_s10, 1024, %s424_s12, [#allocation16], %s3912_s17, %s3912_s17, %s3913_s1  }
  0x72   : > { %s4174_s13 = sadd.s32 1, %s3903_s26   ;;  %s3066_s23 = sld [smem:[#allocation9 + $0x1]] }
  0x73   : > { %s92_s29 = ssub.s32 1, %s3903_s26  ;;  %p112_p13 = scmp.ne.s32.totalorder %s3899_s25, %s3895_s24 }
  0x74   : > { %s97_s16 = ssub.s32 1, %s4174_s13  ;;  %p113_p8 = scmp.eq.s32.totalorder %s3903_s26, 0 }
  0x75   : > { %s105_s18 = sadd.s32 1, %s3899_s25  ;;  %s463_s20 = sand.u32 1, %s3899_s25  }
  0x76   : > { %p114_p9 = por %p113_p8, %p112_p13  ;;  %p3504_p1 = scmp.lt.s32.totalorder %s3903_s26, 2 }
  0x77   : > { %s3076_s30 = sshll.u32 %s463_s20, 5 }
  0x78   : > { %s3067_s19 = sadd.s32 4294967295, %s3066_s23  ;;  %s467_s15 = scalar_lea.vmem [#allocation10], %s3076_s30 }
  0x79   : > { %p95_p2 = scmp.lt.s32.totalorder %s92_s29, %s3067_s19  ;;  %p100_p3 = scmp.lt.s32.totalorder %s97_s16, %s3067_s19 }
  0x7a   : > { %s479_s21 = sshll.u32 %s467_s15, 4  ;;  %p4184_p5 = pnand %p3504_p1, %p114_p9  ;;  %s4188_s21 = int_to_ptr.vmem [resolvable:$true] %s479_s21 }
  0x7b   : > { %s4763_s29 = smov (!%p95_p2, %s92_s29), %s3067_s19  ;;  %s4765_s16 = smov (!%p100_p3, %s97_s16), %s3067_s19 }
  0x7c   : > { %s3144_s17 = sshll.u32 %s4763_s29, 9  ;;  %s102_s1 = ssub.s32 %s4763_s29, %s4765_s16 }
  0x7d   : > { %s4193_s11 = scalar_lea.hbm %s4715_s3, %s3144_s17  ;;  %p4195_p11 = scmp.eq.s32.totalorder %s102_s1, 0 }
  0x7e   : > { %s4199_s30 = scalar_lea.sflag [#allocation11], %s463_s20  ;;  %s3829_s19 = scalar_lea.hbm %s4193_s11, 512 }
  0x7f   : > { %p3830_p6 = scmp.ne.s32.totalorder %s4193_s11, %s3829_s19  ;;  %p3831_p10 = pneg %p4184_p5 }
  0x80   : > { %s3834_s15 = scalar_lea.hbm %s4715_s3, 1024  ;;  %p3835_p4 = scmp.lt.u32.totalorder %s4193_s11, %s4715_s3 }
  0x81   : > { %p3832_p12 = pnand %p3831_p10, %p3830_p6  ;;  %p3836_p7 = scmp.lt.u32.totalorder %s3834_s15, %s3829_s19 }
  0x82   : > { %p3838_p8 = scmp.lt.u32.totalorder %s3829_s19, %s4193_s11 }
  0x83   : > { %p3833_p0 = pneg %p3832_p12  ;;  %p3837_p13 = por %p3836_p7, %p3835_p4 }
  0x85   : > { %p3839_p9 = por %p3838_p8, %p3837_p13 }
  0x87   : > { %p3840_p1 = pnand %p3839_p9, %p3833_p0 }
  0x89   : > { %3843 = shalt.err (!%p3840_p1)
}
  0x8a   : > { %s3844_s20 = scalar_lea.vmem %s4188_s21, 512  ;;  %s3914_s1 = smov [#allocation10]  }
  0x8b   : > { %p3845_p2 = scmp.ne.s32.totalorder %s4188_s21, %s3844_s20  ;;  %s3849_s26 = sshll.u32 %s3914_s1, 4  ;;  %s3850_s26 = int_to_ptr.vmem [resolvable:$false] %s3849_s26 }
  0x8c   : > { %s3851_s29 = scalar_lea.vmem %s3850_s26, 1024  ;;  %p3852_p12 = scmp.lt.s32.totalorder %s4188_s21, %s3850_s26 }
  0x8d   : > { %p3847_p3 = pnand %p3845_p2, %p3831_p10  ;;  %p3853_p4 = scmp.lt.s32.totalorder %s3851_s29, %s3844_s20 }
  0x8f   : > { %p3848_p6 = pneg %p3847_p3  ;;  %p3854_p7 = por %p3853_p4, %p3852_p12 }
  0x91   : > { %p3855_p13 = pnand %p3854_p7, %p3848_p6 }
  0x93   : > { %3858 = shalt.err (!%p3855_p13)
}
  0x94   : > { %s4744_s19 = smov 128   ;;  %p4745_p10 = scmp.ne.s32.totalorder %s4739_s28, 0 }
  0x95   : > { %3499 = dma.hbm_to_vmem [thread:$0]  (!%p4184_p5), %s4193_s11, 512, %s4188_s21, %s4199_s30, %s4744_s19, %s4744_s19, %s3910_s22  }
  0x96   : > { %s4235_s16 = scalar_select %p4195_p11, %s3899_s25, %s105_s18  }
  0x97   : > { %491 = sbr.rel (%p4745_p10) target bundleno = 9436 (0x24dc), region = 72  ;;  %s493_s12 = sand.u32 (!%p4745_p10), 1, %s3895_s24  }
  0x98   : > { %s3082_s15 = sshll.u32 (!%p4745_p10), %s493_s12, 5  ;;  %s494_s17 = scalar_lea.sflag (!%p4745_p10), [#allocation11], %s493_s12 }
  0x99   : > { %s4240_s14 = scalar_lea.vmem (!%p4745_p10), [#allocation10], %s3082_s15  ;;  %p4746_p0 = scmp.ne.s32.totalorder (!%p4745_p10), %s4738_s27, 0 }
  0x9e   : > { %3878 = dma.done.wait (%p4746_p0), %s494_s17, 512  }
  0x9f   : > { %3880 = vsyncadd (%p4746_p0), %s494_s17, 4294966784  ;;  %p4747_p5 = scmp.eq.s32.totalorder %s4044_s0, 0 }
  0xa1   : > { %3882 = dma.done.wait (%p4747_p5), [#allocation13], 1024   ;;  %p4748_p11 = pmov %p4747_p5 }
  0xa2   : > { %p4749_p8 = pmov %p4747_p5 }
  0xa3   : > { %3884 = vsyncadd (%p4748_p11), [#allocation13], 4294966272 }
  0xa4   : > { %3886 = dma.done.wait (%p4749_p8), [#allocation16], 1536   ;;  %p4750_p9 = pmov %p4747_p5 }
  0xa5   : > { %s3087_s28 = sld [smem:[#allocation9 + $0x1]]  ;;  %s4254_s21 = sld [smem:[#allocation9]] }
  0xa6   : > { %3888 = vsyncadd (%p4750_p9), [#allocation16], 4294965760  ;;  %s582_s27 = ssub.s32 1, %s4044_s0  ;;  %s4258_s22 = sshll.u32 %s4044_s0, 2 }
  0xa7   : > { %s4260_s18 = sshll.u32 %s582_s27, 2  ;;  %p4751_p12 = scmp.ne.s32.totalorder %s4044_s0, 0 }
  0xa8   : > { %vm590_vm0 = vcmask (!%p4751_p12), 261120   ;;  %v3915_v0 = vmov (!%p4751_p12), 0.0  }
  0xa9   : > { %591 = vst.msk [vmem:[#allocation2] sm:$0xff] (!%p4751_p12), %vm590_vm0, %v3915_v0  ;;  %592 = vst.msk [vmem:[#allocation3] sm:$0xff] (!%p4751_p12), %vm590_vm0, %v3915_v0 }
  0xaa   : > { %593 = vst.msk [vmem:[#allocation4] sm:$0xff] (!%p4751_p12), %vm590_vm0, %v3915_v0  ;;  %594 = vst.msk [vmem:[#allocation5] sm:$0xff] (!%p4751_p12), %vm590_vm0, %v3915_v0 }
  0xab   : > { %s3088_s11 = sadd.s32 4294967295, %s3087_s28  ;;  %p584_p1 = scmp.lt.s32.totalorder %s4258_s22, %s4254_s21 }
  0xac   : > { %p562_p2 = scmp.lt.s32.totalorder %s4044_s0, %s3088_s11  ;;  %p585_p3 = scmp.lt.s32.totalorder %s4260_s18, %s4254_s21 }
  0xae   : > { %s563_s23 = scalar_select %p562_p2, %s4044_s0, %s3088_s11 }
  0xaf   : > { %589 = sbr.rel (%p4751_p12) target bundleno = 182 (0xb6), region = 96 }
  0xb0   : > { %s3089_s30 = sshll.u32 %s563_s23, 2 }
  0xb1   : > { %p565_p6 = scmp.lt.s32.totalorder %s3089_s30, 7 }
  0xb3   : > { %s4767_s30 = smov (!%p565_p6, %s3089_s30), 7 }
  0xb4   : > { %s3090_s20 = sshll.u32 %s4767_s30, 3 }
  0xb5   : > { %s4271_s29 = scalar_lea.vmem %s4714_s2, %s3090_s20 }
  0xb6 PF: > { %p3094_p4 = scmp.ge.s32.totalorder %s4258_s22, %s4254_s21 }
  0xb7   : > { %v602_v1 = vld [vmem:[%s4716_s4] sm:$0xff] (!%p3094_p4)  ;;  %v603_v2 = vld [vmem:[%s4716_s4 + $0x8] sm:$0xff] (!%p3094_p4)  ;;  %v604_v3 = vld [vmem:[%s4716_s4 + $0x10] sm:$0xff] (!%p3094_p4)  ;;  %vm613_vm1 = vcmask (!%p3094_p4), 261120  }
  0xb8   : > { %597 = sbr.rel (%p3094_p4) target bundleno = 410 (0x19a), region = 100  ;;  %v3349_v4 = vpack.c.bf16 (!%p3094_p4), %v603_v2, %v602_v1  ;;  %v605_v5 = vld [vmem:[%s4716_s4 + $0x18] sm:$0xff] (!%p3094_p4)  ;;  %v598_v6 = vld [vmem:[%s4271_s29] sm:$0xff] (!%p3094_p4)  ;;  %v600_v7 = vld [vmem:[%s4271_s29 + $0x10] sm:$0xff] (!%p3094_p4) }
  0xb9   : > { %v3353_v8 = vpack.c.bf16 (!%p3094_p4), %v605_v5, %v604_v3  ;;  %3219 = vmatprep.mubr.msk.f32.mxu0 (!%p3094_p4), %vm613_vm1, %v598_v6  ;;  %3222 = vmatprep.mubr.msk.f32.mxu1 (!%p3094_p4), %vm613_vm1, %v600_v7  ;;  %v599_v9 = vld [vmem:[%s4271_s29 + $0x8] sm:$0xff] (!%p3094_p4)  ;;  %v601_v10 = vld [vmem:[%s4271_s29 + $0x18] sm:$0xff] (!%p3094_p4)  ;;  %v3095_v11 = vld [vmem:[%s4718_s6] ss:$0 sm:$0xff] (!%p3094_p4) }
  0xba   : > { %3350 = vmatprep.subr.bf16.mxu0 (!%p3094_p4), %v3349_v4  ;;  %3457 = vmatprep.subr.bf16.mxu1 (!%p3094_p4), %v3349_v4 }
  0xbb   : > { %3352 = vmatpush3.bf16.msra.mxu0 (!%p3094_p4), %v3349_v4  ;;  %3459 = vmatpush3.bf16.msra.mxu1 (!%p3094_p4), %v3349_v4 }
  0xbc   : > { %3354 = vmatprep.subr.bf16.mxu0 (!%p3094_p4), %v3353_v8  ;;  %3458 = vmatprep.subr.bf16.mxu1 (!%p3094_p4), %v3353_v8 }
  0xbf   : > { %3356 = vmatpush3.bf16.msra.mxu0 %v3353_v8  ;;  %3460 = vmatpush3.bf16.msra.mxu1 %v3353_v8 }
  0xc2   : > { %3220 = vmatmul.mubr.msk.f32.vlgmr.msra.gmra.mrb[0].mxu0 %vm613_vm1, %v599_v9  ;;  %3223 = vmatmul.mubr.msk.f32.vlgmr.msra.gmra.mrb[0].mxu1 %vm613_vm1, %v601_v10 }
 0x195   : > { %v3221_v12 = vpop.f32.mrb[0].mxu0  ;;  %v3224_v13 = vpop.f32.mrb[0].mxu1 }
 0x196   : > { %v698_v14 = vadd.f32 %v3221_v12, %v3095_v11  ;;  %v708_v15 = vadd.f32 %v3224_v13, %v3095_v11  ;;  %v692_v16 = vpop.f32.mrb[1].mxu0  ;;  %v702_v17 = vpop.f32.mrb[1].mxu1 }
 0x197   : > { %v693_v18 = vadd.f32 %v3095_v11, %v692_v16  ;;  %v703_v19 = vadd.f32 %v3095_v11, %v702_v17 }
 0x198   : > { %712 = vst [vmem:[#allocation6 + $0x8] sm:$0xff] %v698_v14  ;;  %714 = vst [vmem:[#allocation6 + $0x18] sm:$0xff] %v708_v15 }
 0x199   : > { %711 = vst [vmem:[#allocation6] sm:$0xff] %v693_v18  ;;  %713 = vst [vmem:[#allocation6 + $0x10] sm:$0xff] %v703_v19 }
 0x19a PF: > { %p3100_p7 = scmp.ge.s32.totalorder %s4260_s18, %s4254_s21 }
 0x19b   : > { %v722_v20 = vld [vmem:[#allocation12] sm:$0xff] (!%p3100_p7)  ;;  %v723_v21 = vld [vmem:[#allocation12 + $0x8] sm:$0xff] (!%p3100_p7)  ;;  %v724_v22 = vld [vmem:[#allocation12 + $0x10] sm:$0xff] (!%p3100_p7)  ;;  %vm733_vm2 = vcmask (!%p3100_p7), 261120  }
 0x19c   : > { %717 = sbr.rel (%p3100_p7) target bundleno = 638 (0x27e), region = 104  ;;  %v3357_v23 = vpack.c.bf16 (!%p3100_p7), %v723_v21, %v722_v20  ;;  %v725_v24 = vld [vmem:[#allocation12 + $0x18] sm:$0xff] (!%p3100_p7)  ;;  %v718_v25 = vld [vmem:[%s4240_s14] sm:$0xff] (!%p3100_p7)  ;;  %v720_v26 = vld [vmem:[%s4240_s14 + $0x10] sm:$0xff] (!%p3100_p7) }
 0x19d   : > { %v3361_v27 = vpack.c.bf16 (!%p3100_p7), %v725_v24, %v724_v22  ;;  %3233 = vmatprep.mubr.msk.f32.mxu0 (!%p3100_p7), %vm733_vm2, %v718_v25  ;;  %3236 = vmatprep.mubr.msk.f32.mxu1 (!%p3100_p7), %vm733_vm2, %v720_v26  ;;  %v719_v28 = vld [vmem:[%s4240_s14 + $0x8] sm:$0xff] (!%p3100_p7)  ;;  %v721_v29 = vld [vmem:[%s4240_s14 + $0x18] sm:$0xff] (!%p3100_p7)  ;;  %v3101_v30 = vld [vmem:[%s4719_s7] ss:$0 sm:$0xff] (!%p3100_p7) }
 0x19e   : > { %3358 = vmatprep.subr.bf16.mxu0 (!%p3100_p7), %v3357_v23  ;;  %3461 = vmatprep.subr.bf16.mxu1 (!%p3100_p7), %v3357_v23 }
 0x19f   : > { %3360 = vmatpush3.bf16.msra.mxu0 (!%p3100_p7), %v3357_v23  ;;  %3463 = vmatpush3.bf16.msra.mxu1 (!%p3100_p7), %v3357_v23 }
 0x1a0   : > { %3362 = vmatprep.subr.bf16.mxu0 (!%p3100_p7), %v3361_v27  ;;  %3462 = vmatprep.subr.bf16.mxu1 (!%p3100_p7), %v3361_v27 }
 0x1a3   : > { %3364 = vmatpush3.bf16.msra.mxu0 %v3361_v27  ;;  %3464 = vmatpush3.bf16.msra.mxu1 %v3361_v27 }
 0x1a6   : > { %3234 = vmatmul.mubr.msk.f32.vlgmr.msra.gmra.mrb[0].mxu0 %vm733_vm2, %v719_v28  ;;  %3237 = vmatmul.mubr.msk.f32.vlgmr.msra.gmra.mrb[0].mxu1 %vm733_vm2, %v721_v29 }
 0x279   : > { %v3235_v31 = vpop.f32.mrb[0].mxu0  ;;  %v3238_v32 = vpop.f32.mrb[0].mxu1 }
 0x27a   : > { %v818_v33 = vadd.f32 %v3235_v31, %v3101_v30  ;;  %v828_v34 = vadd.f32 %v3238_v32, %v3101_v30  ;;  %v812_v35 = vpop.f32.mrb[1].mxu0  ;;  %v822_v36 = vpop.f32.mrb[1].mxu1 }
 0x27b   : > { %v813_v37 = vadd.f32 %v3101_v30, %v812_v35  ;;  %v823_v38 = vadd.f32 %v3101_v30, %v822_v36 }
 0x27c   : > { %832 = vst [vmem:[#allocation7 + $0x8] sm:$0xff] %v818_v33  ;;  %834 = vst [vmem:[#allocation7 + $0x18] sm:$0xff] %v828_v34 }
 0x27d   : > { %831 = vst [vmem:[#allocation7] sm:$0xff] %v813_v37  ;;  %833 = vst [vmem:[#allocation7 + $0x10] sm:$0xff] %v823_v38 }
 0x27e PF: > { %s4752_s19 = sld [smem:[#allocation22_spill]]  ;;  %p836_p13 = pnand %p585_p3, %p584_p1 }
 0x27f   : > { %v843_v40 = vld [vmem:[#allocation17 + $0x8] sm:$0xff] (!%p836_p13)  ;;  %v845_v41 = vld [vmem:[#allocation17 + $0x18] sm:$0xff] (!%p836_p13)  ;;  %v842_v42 = vld [vmem:[#allocation17] sm:$0xff] (!%p836_p13)  ;;  %v3916_v47 = vmov (!%p836_p13), 0.0   ;;  %s3917_s12 = smov (!%p836_p13), 32   ;;  %vm850_vm3 = vcmask (!%p836_p13), 261120   ;;  %v934_v3 = vstv (!%p836_p13), %s4258_s22 }
 0x280   : > { %839 = sbr.rel (%p836_p13) target bundleno = 3497 (0xda9), region = 108  ;;  %v3365_v43 = vpack.c.bf16 (!%p836_p13), %v845_v41, %v843_v40  ;;  %v844_v44 = vld [vmem:[#allocation17 + $0x10] sm:$0xff] (!%p836_p13)  ;;  %v847_v45 = vld [vmem:[#allocation17 + $0x28] sm:$0xff] (!%p836_p13)  ;;  %v849_v46 = vld [vmem:[#allocation17 + $0x38] sm:$0xff] (!%p836_p13)  ;;  %921 = vmatprep.mubr.f32.mxu0 (!%p836_p13), %v3916_v47  ;;  %1132 = vmatprep.mubr.f32.mxu1 (!%p836_p13), %v3916_v47  ;;  %v3918_v0 = vmov (!%p836_p13), 0   ;;  %s993_s15 = sadd.s32 (!%p836_p13), 3, %s4260_s18 }
 0x281   : > { %v4332_v48 = vpack.c.bf16 (!%p836_p13), %v844_v44, %v842_v42  ;;  %v4334_v49 = vpack.c.bf16 (!%p836_p13), %v849_v46, %v847_v45  ;;  %v846_v50 = vld [vmem:[#allocation17 + $0x20] sm:$0xff] (!%p836_p13)  ;;  %v848_v51 = vld [vmem:[#allocation17 + $0x30] sm:$0xff] (!%p836_p13)  ;;  %v4336_v52 = vld [vmem:[#allocation3] sm:$0xff] (!%p836_p13)  ;;  %3574 = vset.pattern.permute.xlu1 (!%p836_p13), %v3918_v0  ;;  %3573 = vset.pattern.permute.xlu0 (!%p836_p13), %v3918_v0  ;;  %v994_v15 = vstv (!%p836_p13), %s993_s15  ;;  %s3919_s17 = smov (!%p836_p13), 64   ;;  %s3920_s28 = smov (!%p836_p13), 96  }
 0x282   : > { %3366 = vmatprep.subr.bf16.mxu0 (!%p836_p13), %v3365_v43  ;;  %3374 = vmatprep.subr.bf16.mxu1 (!%p836_p13), %v3365_v43  ;;  %v4339_v53 = vpack.c.bf16 (!%p836_p13), %v848_v51, %v846_v50  ;;  %v840_v54 = vld [vmem:[#allocation2] sm:$0xff] (!%p836_p13)  ;;  %v841_v55 = vld [vmem:[#allocation4] sm:$0xff] (!%p836_p13)  ;;  %v1003_v4 = vld [vmem:[#allocation5] sm:$0xff] (!%p836_p13)  ;;  %s1146_s27 = sadd.s32 (!%p836_p13), 1, %s4258_s22  ;;  %s1206_s11 = sadd.s32 (!%p836_p13), 2, %s4260_s18 }
 0x283   : > { %3368 = vmatpush1.bf16.msra.mxu0 (!%p836_p13), %v4332_v48  ;;  %945 = vrot.lane.b32.xlu1 (!%p836_p13), %v4336_v52, %s3917_s12  ;;  %v932_v56 = vld [vmem:[#allocation6] sm:$0xff] (!%p836_p13)  ;;  %v991_v60 = vld [vmem:[#allocation7 + $0x18] sm:$0xff] (!%p836_p13)  ;;  %s1359_s23 = sadd.s32 (!%p836_p13), 2, %s4258_s22  ;;  %s1419_s30 = sadd.s32 (!%p836_p13), 1, %s4260_s18 }
 0x284   : > { %v4322_v39 = vld [vmem:[%s4752_s19] sm:$0xff]  ;;  %3370 = vmatprep.subr.bf16.mxu0 (!%p836_p13), %v4334_v49  ;;  %3376 = vmatpush1.bf16.msra.mxu1 (!%p836_p13), %v4332_v48  ;;  %s1572_s20 = sadd.s32 (!%p836_p13), 3, %s4258_s22 }
 0x285   : > { %3378 = vmatprep.subr.bf16.mxu1 (!%p836_p13), %v4334_v49  ;;  %vm935_vm4 = vcmp.lt.s32.totalorder (!%p836_p13), %v934_v3, %v4322_v39  ;;  %vm995_vm5 = vcmp.lt.s32.totalorder (!%p836_p13), %v994_v15, %v4322_v39 }
 0x286   : > { %v965_v5 = vsel (!%p836_p13), %vm935_vm4, 1, %v3918_v0  ;;  %v1026_v19 = vsel (!%p836_p13), %vm995_vm5, 1, %v3918_v0 }
 0x287   : > { %3372 = vmatpush1.bf16.msra.mxu0 %v4339_v53 }
 0x288   : > { %3380 = vmatpush1.bf16.msra.mxu1 %v4339_v53  ;;  %3382 = vmatprep.subr.bf16.mxu0 %v3365_v43 }
 0x289   : > { %3390 = vmatprep.subr.bf16.mxu1 %v3365_v43 }
 0x28a   : > { %3106 = vmatmul.mubr.msk.f32.vlgmr.msra.gmra.mrb[0].mxu0 %vm850_vm3, %v840_v54 }
 0x28b   : > { %926 = vmatprep.mubr.f32.mxu0 %v3916_v47  ;;  %3384 = vmatpush1.bf16.msra.mxu0 %v4332_v48 }
 0x28c   : > { %3386 = vmatprep.subr.bf16.mxu0 %v4334_v49 }
 0x28e   : > { %3107 = vmatmul.mubr.msk.f32.gmra.mrb[2].mxu0 %vm850_vm3, %v841_v55 }
 0x28f   : > { %3388 = vmatpush1.bf16.msra.mxu0 %v4339_v53  ;;  %1345 = vmatprep.mubr.f32.mxu0 %v3916_v47 }
 0x2f5   : > { %v946_v20 = vpop.permute.xlu1 %945 }
 0x35d   : > { %v923_v57 = vpop.f32.mrb[0].mxu0 }
 0x35e   : > { %v933_v58 = vadd.f32 %v932_v56, %v923_v57  ;;  %v925_v59 = vpop.f32.mrb[1].mxu0 }
 0x360   : > { %3575 = vtanh.f32 %v933_v58  ;;  %v3108_v6 = vmul.f32 -1.442695, %v933_v58 }
 0x361   : > { %v928_v61 = vpop.f32.mrb[2].mxu0 }
 0x362   : > { %v929_v62 = vpop.f32.mrb[3].mxu0 }
 0x363   : > { %v992_v63 = vadd.f32 %v991_v60, %v929_v62  ;;  %v1147_v62 = vstv %s1146_s27 }
 0x364   : > { %vm1148_vm8 = vcmp.lt.s32.totalorder %v1147_v62, %v4322_v39 }
 0x365   : > { %3577 = vtanh.f32 %v992_v63  ;;  %v3109_v7 = vmul.f32 -1.442695, %v992_v63 }
 0x366   : > { %3579 = vpow2.f32 %v3108_v6 }
 0x367   : > { %3581 = vpow2.f32 %v3109_v7 }
 0x36a   : > { %v3576_v1 = vpop.eup %3575 }
 0x36b   : > { %950 = vrot.lane.b32.xlu0 %v3576_v1, %s3917_s12 }
 0x36f   : > { %v3578_v2 = vpop.eup %3577 }
 0x370   : > { %1010 = vrot.lane.b32.xlu0 %v3578_v2, %s3917_s12  ;;  %v3580_v8 = vpop.eup %3579  ;;  %v1178_v2 = vsel %vm1148_vm8, 1, %v3918_v0 }
 0x371   : > { %v939_v9 = vadd.f32 1.0, %v3580_v8  ;;  %v3582_v10 = vpop.eup %3581 }
 0x372   : > { %v999_v11 = vadd.f32 1.0, %v3582_v10 }
 0x373   : > { %3583 = vrcp.f32 %v939_v9 }
 0x374   : > { %1005 = vrot.lane.b32.xlu0 %v1003_v4, %s3917_s12  ;;  %3585 = vrcp.f32 %v999_v11 }
 0x378   : > { %967 = vperm.xlu0 %3573, %v965_v5  }
 0x37c   : > { %970 = vrot.lane.b32.xlu0 %v840_v54, %s3919_s17 }
 0x37d   : > { %v3584_v12 = vpop.eup %3583 }
 0x37e   : > { %v3586_v16 = vpop.eup %3585  ;;  %v948_v21 = vmul.f32 %v3584_v12, %v946_v20 }
 0x380   : > { %1032 = vrot.lane.b32.xlu0 %v841_v55, %s3919_s17  ;;  %v1144_v55 = vld [vmem:[#allocation6 + $0x8] sm:$0xff] }
 0x3dd   : > { %v951_v13 = vpop.permute.xlu0 %950 }
 0x3de   : > { %v953_v14 = vmul.f32 %v3584_v12, %v951_v13 }
 0x3e0   : > { %955 = vrot.lane.b32.xlu1 %v953_v14, %s3917_s12 }
 0x3e2   : > { %v1011_v17 = vpop.permute.xlu0 %1010 }
 0x3e3   : > { %v1013_v18 = vmul.f32 %v3586_v16, %v1011_v17 }
 0x3e5   : > { %1015 = vrot.lane.b32.xlu1 %v1013_v18, %s3917_s12 }
 0x3e6   : > { %v1006_v23 = vpop.permute.xlu0 %1005 }
 0x3e7   : > { %v1008_v25 = vmul.f32 %v3586_v16, %v1006_v23 }
 0x3e9   : > { %1028 = vperm.xlu1 %3574, %v1026_v19  }
 0x3f7   : > { %v968_v30 = vpop.permute.xlu0 %967 }
 0x3f8   : > { %vm969_vm6 = vcmp.eq.s32.totalorder %v968_v30, 1 }
 0x3fb   : > { %v971_v32 = vpop.permute.xlu0 %970 }
 0x3ff   : > { %v1033_v37 = vpop.permute.xlu0 %1032 }
 0x452   : > { %v956_v22 = vpop.permute.xlu1 %955 }
 0x453   : > { %v958_v24 = vadd.f32 %v956_v22, %v948_v21 }
 0x455   : > { %3587 = vtanh.f32 %v958_v24 }
 0x457   : > { %v1016_v26 = vpop.permute.xlu1 %1015 }
 0x458   : > { %v1018_v27 = vadd.f32 %v1016_v26, %v1008_v25 }
 0x45a   : > { %3589 = vtanh.f32 %v1018_v27 }
 0x45f   : > { %v3588_v28 = vpop.eup %3587 }
 0x460   : > { %961 = vrot.lane.b32.xlu1 %v3588_v28, %s3917_s12 }
 0x464   : > { %v3590_v29 = vpop.eup %3589 }
 0x465   : > { %1021 = vrot.lane.b32.xlu1 %v3590_v29, %s3917_s12 }
 0x468   : > { %v1029_v31 = vpop.permute.xlu1 %1028 }
 0x469   : > { %vm1030_vm7 = vcmp.eq.s32.totalorder %v1029_v31, 1 }
 0x4d2   : > { %v962_v33 = vpop.permute.xlu1 %961 }
 0x4d3   : > { %v964_v34 = vmul.f32 %v3584_v12, %v962_v33  ;;  %v1207_v12 = vstv %s1206_s11 }
 0x4d4   : > { %vm1208_vm9 = vcmp.lt.s32.totalorder %v1207_v12, %v4322_v39 }
 0x4d5   : > { %v973_v35 = vsel %vm969_vm6, %v964_v34, %v971_v32 }
 0x4d6   : > { %975 = vrot.lane.b32.xlu1 %v973_v35, %s3919_s17 }
 0x4d7   : > { %v1022_v36 = vpop.permute.xlu1 %1021 }
 0x4d8   : > { %v1024_v38 = vmul.f32 %v3586_v16, %v1022_v36  ;;  %v1239_v16 = vsel %vm1208_vm9, 1, %v3918_v0 }
 0x4da   : > { %981 = vrot.lane.b32.xlu1 %v4336_v52, %s3917_s12  ;;  %v1035_v40 = vsel %vm1030_vm7, %v1024_v38, %v1033_v37 }
 0x4db   : > { %1037 = vrot.lane.b32.xlu0 %v1035_v40, %s3919_s17 }
 0x4df   : > { %1043 = vrot.lane.b32.xlu0 %v1003_v4, %s3917_s12 }
 0x548   : > { %v976_v41 = vpop.permute.xlu1 %975 }
 0x549   : > { %978 = vst.msk [vmem:[#allocation2] sm:$0xff] %vm850_vm3, %v976_v41 }
 0x54c   : > { %v982_v42 = vpop.permute.xlu1 %981 }
 0x54d   : > { %v1038_v43 = vpop.permute.xlu0 %1037  ;;  %v984_v44 = vsel %vm969_vm6, %v958_v24, %v982_v42 }
 0x54e   : > { %1040 = vst.msk [vmem:[#allocation4] sm:$0xff] %vm850_vm3, %v1038_v43  ;;  %986 = vrot.lane.b32.xlu1 %v984_v44, %s3920_s28 }
 0x550   : > { %v1052_v45 = vld [vmem:[#allocation2] sm:$0xff] }
 0x551   : > { %v1044_v46 = vpop.permute.xlu0 %1043  ;;  %3110 = vmatmul.mubr.msk.f32.vlgmr.msra.gmra.mrb[0].mxu1 %vm850_vm3, %v1052_v45 }
 0x552   : > { %v1046_v50 = vsel %vm1030_vm7, %v1018_v27, %v1044_v46  ;;  %1137 = vmatprep.mubr.f32.mxu1 %v3916_v47  ;;  %3392 = vmatpush1.bf16.msra.mxu1 %v4332_v48 }
 0x553   : > { %1048 = vrot.lane.b32.xlu0 %v1046_v50, %s3920_s28  ;;  %3394 = vmatprep.subr.bf16.mxu1 %v4334_v49  ;;  %v1204_v49 = vld [vmem:[#allocation7 + $0x10] sm:$0xff] }
 0x555   : > { %v1053_v51 = vld [vmem:[#allocation4] sm:$0xff] }
 0x556   : > { %3111 = vmatmul.mubr.msk.f32.gmra.mrb[2].mxu1 %vm850_vm3, %v1053_v51 }
 0x557   : > { %3396 = vmatpush1.bf16.msra.mxu1 %v4339_v53  ;;  %1558 = vmatprep.mubr.f32.mxu1 %v3916_v47 }
 0x5c0   : > { %v987_v52 = vpop.permute.xlu1 %986 }
 0x5c1   : > { %989 = vst.msk [vmem:[#allocation3] sm:$0xff] %vm850_vm3, %v987_v52 }
 0x5c5   : > { %v1049_v54 = vpop.permute.xlu0 %1048 }
 0x5c6   : > { %1051 = vst.msk [vmem:[#allocation5] sm:$0xff] %vm850_vm3, %v1049_v54 }
 0x5c8   : > { %v1156_v61 = vld [vmem:[#allocation3] sm:$0xff] }
 0x5cd   : > { %v1216_v1 = vld [vmem:[#allocation5] sm:$0xff] }
 0x624   : > { %v1134_v48 = vpop.f32.mrb[0].mxu1 }
 0x625   : > { %v1145_v56 = vadd.f32 %v1144_v55, %v1134_v48  ;;  %v1136_v57 = vpop.f32.mrb[1].mxu1  ;;  %v1417_v48 = vld [vmem:[#allocation7 + $0x8] sm:$0xff] }
 0x627   : > { %3591 = vtanh.f32 %v1145_v56  ;;  %v3112_v3 = vmul.f32 -1.442695, %v1145_v56 }
 0x629   : > { %v1139_v58 = vpop.f32.mrb[2].mxu1 }
 0x62a   : > { %v1140_v59 = vpop.f32.mrb[3].mxu1 }
 0x62b   : > { %v1205_v60 = vadd.f32 %v1204_v49, %v1140_v59 }
 0x62d   : > { %3593 = vtanh.f32 %v1205_v60  ;;  %v3113_v4 = vmul.f32 -1.442695, %v1205_v60  ;;  %v1360_v60 = vstv %s1359_s23 }
 0x62e   : > { %3595 = vpow2.f32 %v3112_v3  ;;  %vm1361_vm12 = vcmp.lt.s32.totalorder %v1360_v60, %v4322_v39 }
 0x62f   : > { %3597 = vpow2.f32 %v3113_v4  ;;  %v1391_v62 = vsel %vm1361_vm12, 1, %v3918_v0 }
 0x631   : > { %v3592_v53 = vpop.eup %3591 }
 0x632   : > { %1163 = vrot.lane.b32.xlu1 %v3592_v53, %s3917_s12 }
 0x636   : > { %1158 = vrot.lane.b32.xlu1 %v1156_v61, %s3917_s12 }
 0x637   : > { %v3594_v63 = vpop.eup %3593 }
 0x638   : > { %1223 = vrot.lane.b32.xlu0 %v3594_v63, %s3917_s12  ;;  %v3596_v5 = vpop.eup %3595 }
 0x639   : > { %v1152_v6 = vadd.f32 1.0, %v3596_v5  ;;  %v3598_v7 = vpop.eup %3597 }
 0x63a   : > { %1218 = vrot.lane.b32.xlu1 %v1216_v1, %s3917_s12  ;;  %v1212_v8 = vadd.f32 1.0, %v3598_v7 }
 0x63b   : > { %3599 = vrcp.f32 %v1152_v6 }
 0x63c   : > { %3601 = vrcp.f32 %v1212_v8 }
 0x63e   : > { %1180 = vperm.xlu1 %3574, %v1178_v2  }
 0x645   : > { %v3600_v9 = vpop.eup %3599 }
 0x646   : > { %v3602_v13 = vpop.eup %3601 }
 0x6a4   : > { %v1164_v10 = vpop.permute.xlu1 %1163 }
 0x6a5   : > { %v1166_v11 = vmul.f32 %v3600_v9, %v1164_v10 }
 0x6a7   : > { %1168 = vrot.lane.b32.xlu0 %v1166_v11, %s3917_s12 }
 0x6a8   : > { %v1159_v17 = vpop.permute.xlu1 %1158 }
 0x6a9   : > { %v1161_v18 = vmul.f32 %v3600_v9, %v1159_v17 }
 0x6aa   : > { %v1224_v14 = vpop.permute.xlu0 %1223 }
 0x6ab   : > { %v1226_v15 = vmul.f32 %v3602_v13, %v1224_v14 }
 0x6ac   : > { %v1219_v21 = vpop.permute.xlu1 %1218 }
 0x6ad   : > { %1228 = vrot.lane.b32.xlu0 %v1226_v15, %s3917_s12  ;;  %v1221_v22 = vmul.f32 %v3602_v13, %v1219_v21 }
 0x6b1   : > { %1241 = vperm.xlu0 %3573, %v1239_v16  }
 0x6b5   : > { %1183 = vrot.lane.b32.xlu0 %v1052_v45, %s3919_s17 }
 0x6b9   : > { %1245 = vrot.lane.b32.xlu0 %v1053_v51, %s3919_s17  ;;  %v1357_v51 = vld [vmem:[#allocation6 + $0x10] sm:$0xff] }
 0x6bd   : > { %v1181_v27 = vpop.permute.xlu1 %1180 }
 0x6be   : > { %vm1182_vm10 = vcmp.eq.s32.totalorder %v1181_v27, 1 }
 0x719   : > { %v1169_v19 = vpop.permute.xlu0 %1168 }
 0x71a   : > { %v1171_v20 = vadd.f32 %v1169_v19, %v1161_v18 }
 0x71c   : > { %3603 = vtanh.f32 %v1171_v20 }
 0x71f   : > { %v1229_v23 = vpop.permute.xlu0 %1228 }
 0x720   : > { %v1231_v24 = vadd.f32 %v1229_v23, %v1221_v22 }
 0x722   : > { %3605 = vtanh.f32 %v1231_v24 }
 0x726   : > { %v3604_v25 = vpop.eup %3603 }
 0x727   : > { %1174 = vrot.lane.b32.xlu1 %v3604_v25, %s3917_s12 }
 0x72c   : > { %v3606_v26 = vpop.eup %3605 }
 0x72d   : > { %1234 = vrot.lane.b32.xlu1 %v3606_v26, %s3917_s12 }
 0x730   : > { %v1242_v28 = vpop.permute.xlu0 %1241 }
 0x731   : > { %vm1243_vm11 = vcmp.eq.s32.totalorder %v1242_v28, 1 }
 0x734   : > { %v1184_v31 = vpop.permute.xlu0 %1183 }
 0x738   : > { %v1246_v35 = vpop.permute.xlu0 %1245 }
 0x799   : > { %v1175_v29 = vpop.permute.xlu1 %1174 }
 0x79a   : > { %v1177_v30 = vmul.f32 %v3600_v9, %v1175_v29  ;;  %v1420_v9 = vstv %s1419_s30 }
 0x79b   : > { %vm1421_vm13 = vcmp.lt.s32.totalorder %v1420_v9, %v4322_v39 }
 0x79c   : > { %v1186_v32 = vsel %vm1182_vm10, %v1177_v30, %v1184_v31 }
 0x79d   : > { %1188 = vrot.lane.b32.xlu1 %v1186_v32, %s3919_s17 }
 0x79f   : > { %v1235_v33 = vpop.permute.xlu1 %1234 }
 0x7a0   : > { %v1237_v34 = vmul.f32 %v3602_v13, %v1235_v33  ;;  %v1452_v13 = vsel %vm1421_vm13, 1, %v3918_v0 }
 0x7a1   : > { %1194 = vrot.lane.b32.xlu1 %v1156_v61, %s3917_s12 }
 0x7a2   : > { %v1248_v36 = vsel %vm1243_vm11, %v1237_v34, %v1246_v35 }
 0x7a3   : > { %1250 = vrot.lane.b32.xlu0 %v1248_v36, %s3919_s17 }
 0x7a7   : > { %1256 = vrot.lane.b32.xlu0 %v1216_v1, %s3917_s12 }
 0x80f   : > { %v1189_v37 = vpop.permute.xlu1 %1188 }
 0x810   : > { %1191 = vst.msk [vmem:[#allocation2] sm:$0xff] %vm850_vm3, %v1189_v37 }
 0x813   : > { %v1195_v38 = vpop.permute.xlu1 %1194 }
 0x814   : > { %v1197_v40 = vsel %vm1182_vm10, %v1171_v20, %v1195_v38 }
 0x815   : > { %v1251_v41 = vpop.permute.xlu0 %1250  ;;  %1199 = vrot.lane.b32.xlu1 %v1197_v40, %s3920_s28 }
 0x816   : > { %1253 = vst.msk [vmem:[#allocation4] sm:$0xff] %vm850_vm3, %v1251_v41 }
 0x817   : > { %v1265_v42 = vld [vmem:[#allocation2] sm:$0xff] }
 0x818   : > { %3114 = vmatmul.mubr.msk.f32.vlgmr.msra.gmra.mrb[4].mxu0 %vm850_vm3, %v1265_v42 }
 0x819   : > { %v1257_v43 = vpop.permute.xlu0 %1256  ;;  %1350 = vmatprep.mubr.f32.mxu0 %v3916_v47 }
 0x81a   : > { %v1259_v44 = vsel %vm1243_vm11, %v1231_v24, %v1257_v43 }
 0x81b   : > { %1261 = vrot.lane.b32.xlu0 %v1259_v44, %s3920_s28 }
 0x81d   : > { %v1266_v45 = vld [vmem:[#allocation4] sm:$0xff] }
 0x81e   : > { %3115 = vmatmul.mubr.msk.f32.gmra.mrb[6].mxu0 %vm850_vm3, %v1266_v45 }
 0x887   : > { %v1200_v46 = vpop.permute.xlu1 %1199 }
 0x888   : > { %1202 = vst.msk [vmem:[#allocation3] sm:$0xff] %vm850_vm3, %v1200_v46 }
 0x88d   : > { %v1262_v50 = vpop.permute.xlu0 %1261 }
 0x88e   : > { %1264 = vst.msk [vmem:[#allocation5] sm:$0xff] %vm850_vm3, %v1262_v50 }
 0x88f   : > { %v1369_v59 = vld [vmem:[#allocation3] sm:$0xff] }
 0x895   : > { %v1429_v61 = vld [vmem:[#allocation5] sm:$0xff] }
 0x8eb   : > { %v1347_v52 = vpop.f32.mrb[4].mxu0 }
 0x8ec   : > { %v1358_v54 = vadd.f32 %v1357_v51, %v1347_v52  ;;  %v1349_v55 = vpop.f32.mrb[5].mxu0  ;;  %v1629_v51 = vld [vmem:[#allocation7] sm:$0xff] }
 0x8ee   : > { %3607 = vtanh.f32 %v1358_v54  ;;  %v3116_v63 = vmul.f32 -1.442695, %v1358_v54 }
 0x8f1   : > { %v1352_v56 = vpop.f32.mrb[6].mxu0 }
 0x8f2   : > { %v1353_v57 = vpop.f32.mrb[7].mxu0 }
 0x8f3   : > { %v1418_v49 = vadd.f32 %v1417_v48, %v1353_v57 }
 0x8f5   : > { %3609 = vtanh.f32 %v1418_v49  ;;  %v3117_v1 = vmul.f32 -1.442695, %v1418_v49 }
 0x8f6   : > { %3611 = vpow2.f32 %v3116_v63  ;;  %v1573_v63 = vstv %s1572_s20 }
 0x8f7   : > { %3613 = vpow2.f32 %v3117_v1  ;;  %vm1574_vm0 = vcmp.lt.s32.totalorder %v1573_v63, %v4322_v39 }
 0x8f8   : > { %v3608_v58 = vpop.eup %3607 }
 0x8f9   : > { %1376 = vrot.lane.b32.xlu1 %v3608_v58, %s3917_s12 }
 0x8fd   : > { %1371 = vrot.lane.b32.xlu1 %v1369_v59, %s3917_s12 }
 0x8ff   : > { %v3610_v53 = vpop.eup %3609 }
 0x900   : > { %1436 = vrot.lane.b32.xlu0 %v3610_v53, %s3917_s12  ;;  %v3612_v2 = vpop.eup %3611 }
 0x901   : > { %1431 = vrot.lane.b32.xlu1 %v1429_v61, %s3917_s12  ;;  %v1365_v3 = vadd.f32 1.0, %v3612_v2  ;;  %v3614_v4 = vpop.eup %3613 }
 0x902   : > { %v1425_v5 = vadd.f32 1.0, %v3614_v4  ;;  %v1604_v4 = vsel %vm1574_vm0, 1, %v3918_v0 }
 0x903   : > { %3615 = vrcp.f32 %v1365_v3 }
 0x904   : > { %3617 = vrcp.f32 %v1425_v5  ;;  %v1631_v5 = vstv %s4260_s18 }
 0x905   : > { %1393 = vperm.xlu1 %3574, %v1391_v62   ;;  %vm1632_vm1 = vcmp.lt.s32.totalorder %v1631_v5, %v4322_v39 }
 0x906   : > { %v1663_v9 = vsel %vm1632_vm1, 1, %v3918_v0 }
 0x90d   : > { %v3616_v6 = vpop.eup %3615 }
 0x90e   : > { %v3618_v10 = vpop.eup %3617 }
 0x96b   : > { %v1377_v7 = vpop.permute.xlu1 %1376 }
 0x96c   : > { %v1379_v8 = vmul.f32 %v3616_v6, %v1377_v7 }
 0x96e   : > { %1381 = vrot.lane.b32.xlu0 %v1379_v8, %s3917_s12 }
 0x96f   : > { %v1372_v14 = vpop.permute.xlu1 %1371 }
 0x970   : > { %v1374_v15 = vmul.f32 %v3616_v6, %v1372_v14 }
 0x972   : > { %v1437_v11 = vpop.permute.xlu0 %1436 }
 0x973   : > { %v1439_v12 = vmul.f32 %v3618_v10, %v1437_v11  ;;  %v1432_v18 = vpop.permute.xlu1 %1431 }
 0x974   : > { %v1434_v19 = vmul.f32 %v3618_v10, %v1432_v18 }
 0x975   : > { %1441 = vrot.lane.b32.xlu0 %v1439_v12, %s3917_s12 }
 0x979   : > { %1454 = vperm.xlu0 %3573, %v1452_v13  }
 0x97d   : > { %1396 = vrot.lane.b32.xlu0 %v1265_v42, %s3919_s17 }
 0x981   : > { %1458 = vrot.lane.b32.xlu0 %v1266_v45, %s3919_s17  ;;  %v1570_v45 = vld [vmem:[#allocation6 + $0x18] sm:$0xff] }
 0x984   : > { %v1394_v24 = vpop.permute.xlu1 %1393 }
 0x985   : > { %vm1395_vm14 = vcmp.eq.s32.totalorder %v1394_v24, 1 }
 0x9e0   : > { %v1382_v16 = vpop.permute.xlu0 %1381 }
 0x9e1   : > { %v1384_v17 = vadd.f32 %v1382_v16, %v1374_v15 }
 0x9e3   : > { %3619 = vtanh.f32 %v1384_v17 }
 0x9e7   : > { %v1442_v20 = vpop.permute.xlu0 %1441 }
 0x9e8   : > { %v1444_v21 = vadd.f32 %v1442_v20, %v1434_v19 }
 0x9ea   : > { %3621 = vtanh.f32 %v1444_v21 }
 0x9ed   : > { %v3620_v22 = vpop.eup %3619 }
 0x9ee   : > { %1387 = vrot.lane.b32.xlu1 %v3620_v22, %s3917_s12 }
 0x9f4   : > { %v3622_v23 = vpop.eup %3621 }
 0x9f5   : > { %1447 = vrot.lane.b32.xlu1 %v3622_v23, %s3917_s12 }
 0x9f8   : > { %v1455_v25 = vpop.permute.xlu0 %1454 }
 0x9f9   : > { %vm1456_vm15 = vcmp.eq.s32.totalorder %v1455_v25, 1 }
 0x9fc   : > { %v1397_v28 = vpop.permute.xlu0 %1396 }
 0xa00   : > { %v1459_v32 = vpop.permute.xlu0 %1458 }
 0xa60   : > { %v1388_v26 = vpop.permute.xlu1 %1387 }
 0xa61   : > { %v1390_v27 = vmul.f32 %v3616_v6, %v1388_v26 }
 0xa63   : > { %v1399_v29 = vsel %vm1395_vm14, %v1390_v27, %v1397_v28 }
 0xa64   : > { %1401 = vrot.lane.b32.xlu1 %v1399_v29, %s3919_s17 }
 0xa67   : > { %v1448_v30 = vpop.permute.xlu1 %1447 }
 0xa68   : > { %v1450_v31 = vmul.f32 %v3618_v10, %v1448_v30  ;;  %1407 = vrot.lane.b32.xlu1 %v1369_v59, %s3917_s12 }
 0xa6a   : > { %v1461_v33 = vsel %vm1456_vm15, %v1450_v31, %v1459_v32 }
 0xa6b   : > { %1463 = vrot.lane.b32.xlu0 %v1461_v33, %s3919_s17 }
 0xa6f   : > { %1469 = vrot.lane.b32.xlu0 %v1429_v61, %s3917_s12 }
 0xad6   : > { %v1402_v34 = vpop.permute.xlu1 %1401 }
 0xad7   : > { %1404 = vst.msk [vmem:[#allocation2] sm:$0xff] %vm850_vm3, %v1402_v34 }
 0xada   : > { %v1408_v35 = vpop.permute.xlu1 %1407 }
 0xadb   : > { %v1410_v36 = vsel %vm1395_vm14, %v1384_v17, %v1408_v35 }
 0xadc   : > { %1412 = vrot.lane.b32.xlu1 %v1410_v36, %s3920_s28 }
 0xadd   : > { %v1464_v37 = vpop.permute.xlu0 %1463 }
 0xade   : > { %1466 = vst.msk [vmem:[#allocation4] sm:$0xff] %vm850_vm3, %v1464_v37  ;;  %v1478_v38 = vld [vmem:[#allocation2] sm:$0xff] }
 0xadf   : > { %3118 = vmatmul.mubr.msk.f32.vlgmr.msra.gmra.mrb[4].mxu1 %vm850_vm3, %v1478_v38 }
 0xae0   : > { %1563 = vmatprep.mubr.f32.mxu1 %v3916_v47 }
 0xae1   : > { %v1470_v40 = vpop.permute.xlu0 %1469 }
 0xae2   : > { %v1472_v41 = vsel %vm1456_vm15, %v1444_v21, %v1470_v40 }
 0xae3   : > { %1474 = vrot.lane.b32.xlu0 %v1472_v41, %s3920_s28 }
 0xae5   : > { %v4451_v42 = vld [vmem:[#allocation4] sm:$0xff] }
 0xae6   : > { %3119 = vmatmul.mubr.msk.f32.gmra.mrb[6].mxu1 %vm850_vm3, %v4451_v42 }
 0xb4e   : > { %v1413_v43 = vpop.permute.xlu1 %1412 }
 0xb4f   : > { %1415 = vst.msk [vmem:[#allocation3] sm:$0xff] %vm850_vm3, %v1413_v43 }
 0xb55   : > { %v1475_v44 = vpop.permute.xlu0 %1474 }
 0xb56   : > { %1477 = vst.msk [vmem:[#allocation5] sm:$0xff] %vm850_vm3, %v1475_v44  ;;  %v1582_v56 = vld [vmem:[#allocation3] sm:$0xff] }
 0xb5d   : > { %v1640_v49 = vld [vmem:[#allocation5] sm:$0xff] }
 0xbb2   : > { %v1560_v46 = vpop.f32.mrb[4].mxu1 }
 0xbb3   : > { %v1571_v50 = vadd.f32 %v1570_v45, %v1560_v46  ;;  %v1562_v47 = vpop.f32.mrb[5].mxu1 }
 0xbb5   : > { %3623 = vtanh.f32 %v1571_v50  ;;  %v3120_v58 = vmul.f32 -1.442695, %v1571_v50 }
 0xbb9   : > { %v1565_v52 = vpop.f32.mrb[6].mxu1 }
 0xbba   : > { %v1566_v54 = vpop.f32.mrb[7].mxu1 }
 0xbbb   : > { %v1630_v55 = vadd.f32 %v1629_v51, %v1566_v54 }
 0xbbd   : > { %3625 = vtanh.f32 %v1630_v55  ;;  %v3121_v59 = vmul.f32 -1.442695, %v1630_v55 }
 0xbbe   : > { %3627 = vpow2.f32 %v3120_v58 }
 0xbbf   : > { %v3624_v48 = vpop.eup %3623  ;;  %3629 = vpow2.f32 %v3121_v59 }
 0xbc0   : > { %1589 = vrot.lane.b32.xlu1 %v3624_v48, %s3917_s12 }
 0xbc4   : > { %1584 = vrot.lane.b32.xlu1 %v1582_v56, %s3917_s12 }
 0xbc7   : > { %v3626_v57 = vpop.eup %3625 }
 0xbc8   : > { %1647 = vrot.lane.b32.xlu0 %v3626_v57, %s3917_s12  ;;  %v3628_v60 = vpop.eup %3627 }
 0xbc9   : > { %v1578_v53 = vadd.f32 1.0, %v3628_v60  ;;  %v3630_v61 = vpop.eup %3629 }
 0xbca   : > { %v1636_v62 = vadd.f32 1.0, %v3630_v61 }
 0xbcb   : > { %3631 = vrcp.f32 %v1578_v53 }
 0xbcc   : > { %1642 = vrot.lane.b32.xlu0 %v1640_v49, %s3917_s12  ;;  %3633 = vrcp.f32 %v1636_v62 }
 0xbd5   : > { %v3632_v1 = vpop.eup %3631 }
 0xbd6   : > { %v3634_v6 = vpop.eup %3633 }
 0xc32   : > { %v1590_v2 = vpop.permute.xlu1 %1589 }
 0xc33   : > { %v1592_v3 = vmul.f32 %v3632_v1, %v1590_v2 }
 0xc35   : > { %1594 = vrot.lane.b32.xlu1 %v1592_v3, %s3917_s12 }
 0xc36   : > { %v1585_v10 = vpop.permute.xlu1 %1584 }
 0xc37   : > { %v1587_v11 = vmul.f32 %v3632_v1, %v1585_v10 }
 0xc39   : > { %1606 = vperm.xlu1 %3574, %v1604_v4  }
 0xc3a   : > { %v1648_v7 = vpop.permute.xlu0 %1647 }
 0xc3b   : > { %v1650_v8 = vmul.f32 %v3634_v6, %v1648_v7 }
 0xc3d   : > { %1652 = vrot.lane.b32.xlu0 %v1650_v8, %s3917_s12  ;;  %1609 = vrot.lane.b32.xlu1 %v1478_v38, %s3919_s17 }
 0xc3e   : > { %v1643_v14 = vpop.permute.xlu0 %1642 }
 0xc3f   : > { %v1645_v15 = vmul.f32 %v3634_v6, %v1643_v14 }
 0xc41   : > { %1665 = vperm.xlu0 %3573, %v1663_v9  }
 0xc45   : > { %1620 = vrot.lane.b32.xlu0 %v1582_v56, %s3917_s12 }
 0xca7   : > { %v1595_v12 = vpop.permute.xlu1 %1594 }
 0xca8   : > { %v1597_v13 = vadd.f32 %v1595_v12, %v1587_v11 }
 0xcaa   : > { %3635 = vtanh.f32 %v1597_v13 }
 0xcaf   : > { %v1653_v16 = vpop.permute.xlu0 %1652 }
 0xcb0   : > { %v1655_v17 = vadd.f32 %v1653_v16, %v1645_v15 }
 0xcb2   : > { %3637 = vtanh.f32 %v1655_v17 }
 0xcb4   : > { %v3636_v18 = vpop.eup %3635 }
 0xcb5   : > { %1600 = vrot.lane.b32.xlu1 %v3636_v18, %s3917_s12 }
 0xcb8   : > { %v1607_v20 = vpop.permute.xlu1 %1606 }
 0xcb9   : > { %1669 = vrot.lane.b32.xlu1 %v4451_v42, %s3919_s17  ;;  %vm1608_vm2 = vcmp.eq.s32.totalorder %v1607_v20, 1 }
 0xcbc   : > { %v3638_v0 = vpop.eup %3637  ;;  %v1610_v23 = vpop.permute.xlu1 %1609 }
 0xcbd   : > { %1658 = vrot.lane.b32.xlu0 %v3638_v0, %s3917_s12 }
 0xcc0   : > { %v1666_v19 = vpop.permute.xlu0 %1665 }
 0xcc1   : > { %1680 = vrot.lane.b32.xlu0 %v1640_v49, %s3917_s12  ;;  %vm1667_vm4 = vcmp.eq.s32.totalorder %v1666_v19, 1 }
 0xcc4   : > { %v1621_v21 = vpop.permute.xlu0 %1620 }
 0xcc5   : > { %v1623_v22 = vsel %vm1608_vm2, %v1597_v13, %v1621_v21 }
 0xcc6   : > { %1625 = vrot.lane.b32.xlu0 %v1623_v22, %s3920_s28 }
 0xd27   : > { %v1601_v24 = vpop.permute.xlu1 %1600 }
 0xd28   : > { %v1603_v25 = vmul.f32 %v3632_v1, %v1601_v24 }
 0xd2a   : > { %v1612_v26 = vsel %vm1608_vm2, %v1603_v25, %v1610_v23 }
 0xd2b   : > { %1614 = vrot.lane.b32.xlu1 %v1612_v26, %s3919_s17  ;;  %v1670_v29 = vpop.permute.xlu1 %1669 }
 0xd2f   : > { %v1659_v27 = vpop.permute.xlu0 %1658 }
 0xd30   : > { %v1661_v28 = vmul.f32 %v3634_v6, %v1659_v27 }
 0xd32   : > { %v1672_v30 = vsel %vm1667_vm4, %v1661_v28, %v1670_v29 }
 0xd33   : > { %v1681_v31 = vpop.permute.xlu0 %1680  ;;  %1674 = vrot.lane.b32.xlu1 %v1672_v30, %s3919_s17 }
 0xd34   : > { %v1683_v32 = vsel %vm1667_vm4, %v1655_v17, %v1681_v31 }
 0xd35   : > { %1685 = vrot.lane.b32.xlu0 %v1683_v32, %s3920_s28 }
 0xd38   : > { %v1626_v33 = vpop.permute.xlu0 %1625 }
 0xd39   : > { %1628 = vst.msk [vmem:[#allocation3] sm:$0xff] %vm850_vm3, %v1626_v33 }
 0xd9d   : > { %v1615_v34 = vpop.permute.xlu1 %1614 }
 0xd9e   : > { %1617 = vst.msk [vmem:[#allocation2] sm:$0xff] %vm850_vm3, %v1615_v34 }
 0xda5   : > { %v1675_v35 = vpop.permute.xlu1 %1674 }
 0xda6   : > { %1677 = vst.msk [vmem:[#allocation4] sm:$0xff] %vm850_vm3, %v1675_v35 }
 0xda7   : > { %v1686_v36 = vpop.permute.xlu0 %1685 }
 0xda8   : > { %1688 = vst.msk [vmem:[#allocation5] sm:$0xff] %vm850_vm3, %v1686_v36 }
 0xda9 PF: > { %p1690_p10 = pnand %p3100_p7, %p584_p1 }
 0xdaa   : > { %v1696_v37 = vld [vmem:[#allocation14] sm:$0xff] (!%p1690_p10)  ;;  %v1697_v38 = vld [vmem:[#allocation14 + $0x8] sm:$0xff] (!%p1690_p10)  ;;  %v1698_v40 = vld [vmem:[#allocation14 + $0x10] sm:$0xff] (!%p1690_p10)  ;;  %v3921_v41 = vmov (!%p1690_p10), 0.0|0.0   ;;  %vm3922_vm5 = vmmov (!%p1690_p10), 0   ;;  %v3923_v44 = vmov (!%p1690_p10), 0.0   ;;  %v1775_v58 = vstv (!%p1690_p10), %s4258_s22 }
 0xdab   : > { %1693 = sbr.rel (%p1690_p10) target bundleno = 6349 (0x18cd), region = 112  ;;  %3397 = vmatprep.subr.bf16.mxu0 (!%p1690_p10), %v3921_v41  ;;  %v4491_v42 = vpack.c.bf16 (!%p1690_p10), %v1697_v38, %v1696_v37  ;;  %v1699_v43 = vld [vmem:[#allocation14 + $0x18] sm:$0xff] (!%p1690_p10)  ;;  %3247 = vmatprep.mubr.msk.f32.mxu0 (!%p1690_p10), %vm3922_vm5, %v3923_v44  ;;  %v1695_v46 = vld [vmem:[#allocation2] sm:$0xff] (!%p1690_p10)  ;;  %vm1700_vm3 = vcmask (!%p1690_p10), 261120   ;;  %v3924_v54 = vmov (!%p1690_p10), 0   ;;  %s3925_s1 = smov (!%p1690_p10), 32   ;;  %vm1776_vm6 = vcmp.lt.s32.totalorder (!%p1690_p10), %v1775_v58, %v4322_v39 }
 0xdac   : > { %3403 = vmatprep.subr.bf16.mxu1 (!%p1690_p10), %v3921_v41  ;;  %3258 = vmatprep.mubr.msk.f32.mxu1 (!%p1690_p10), %vm3922_vm5, %v3923_v44  ;;  %v4499_v45 = vpack.c.bf16 (!%p1690_p10), %v1699_v43, %v1698_v40  ;;  %v1694_v50 = vld [vmem:[#allocation6] sm:$0xff] (!%p1690_p10)  ;;  %v1784_v48 = vld [vmem:[#allocation3] sm:$0xff] (!%p1690_p10)  ;;  %v1806_v61 = vsel (!%p1690_p10), %vm1776_vm6, 1, %v3924_v54  ;;  %s3926_s26 = smov (!%p1690_p10), 64   ;;  %s3927_s14 = smov (!%p1690_p10), 96  }
 0xdad   : > { %3399 = vmatpush3.bf16.msra.mxu0 (!%p1690_p10), %v4491_v42  ;;  %3405 = vmatpush3.bf16.msra.mxu1 (!%p1690_p10), %v4491_v42  ;;  %v1832_v15 = vld [vmem:[#allocation6 + $0x8] sm:$0xff] (!%p1690_p10)  ;;  %s1912_s29 = sadd.s32 (!%p1690_p10), 1, %s4258_s22  ;;  %s2050_s19 = sadd.s32 (!%p1690_p10), 2, %s4258_s22 }
 0xdae   : > { %3400 = vmatprep.subr.bf16.mxu0 (!%p1690_p10), %v3921_v41  ;;  %3406 = vmatprep.subr.bf16.mxu1 (!%p1690_p10), %v3921_v41  ;;  %v1913_v22 = vstv (!%p1690_p10), %s1912_s29  ;;  %v2051_v43 = vstv (!%p1690_p10), %s2050_s19  ;;  %s2188_s12 = sadd.s32 (!%p1690_p10), 3, %s4258_s22 }
 0xdaf   : > { %3639 = vset.pattern.permute.xlu1 (!%p1690_p10), %v3924_v54  ;;  %3640 = vset.pattern.permute.xlu0 (!%p1690_p10), %v3924_v54  ;;  %vm1914_vm8 = vcmp.lt.s32.totalorder (!%p1690_p10), %v1913_v22, %v4322_v39  ;;  %vm2052_vm10 = vcmp.lt.s32.totalorder (!%p1690_p10), %v2051_v43, %v4322_v39 }
 0xdb0   : > { %v1944_v23 = vsel (!%p1690_p10), %vm1914_vm8, 1, %v3924_v54 }
 0xdb1   : > { %3402 = vmatpush3.bf16.msra.mxu0 (!%p1690_p10), %v4499_v45  ;;  %3408 = vmatpush3.bf16.msra.mxu1 (!%p1690_p10), %v4499_v45 }
 0xdb2   : > { %3409 = vmatprep.subr.bf16.mxu0 %v3921_v41  ;;  %3415 = vmatprep.subr.bf16.mxu1 %v3921_v41 }
 0xdb4   : > { %3248 = vmatmul.mubr.msk.f32.vlgmr.msra.gmra.mrb[0].mxu0 %vm1700_vm3, %v1695_v46 }
 0xdb5   : > { %3411 = vmatpush3.bf16.msra.mxu0 %v4491_v42  ;;  %3269 = vmatprep.mubr.msk.f32.mxu0 %vm3922_vm5, %v3923_v44 }
 0xdb6   : > { %3412 = vmatprep.subr.bf16.mxu0 %v3921_v41 }
 0xdb9   : > { %3414 = vmatpush3.bf16.msra.mxu0 %v4499_v45 }
 0xe87   : > { %v1770_v47 = vpop.f32.mrb[0].mxu0 }
 0xe88   : > { %v1774_v51 = vadd.f32 %v1770_v47, %v1694_v50  ;;  %v3249_v52 = vpop.f32.mrb[1].mxu0 }
 0xe8a   : > { %3641 = vtanh.f32 %v1774_v51  ;;  %v3123_v56 = vmul.f32 -1.442695, %v1774_v51 }
 0xe8c   : > { %3643 = vpow2.f32 %v3123_v56 }
 0xe94   : > { %v3642_v55 = vpop.eup %3641 }
 0xe95   : > { %1791 = vrot.lane.b32.xlu0 %v3642_v55, %s3925_s1 }
 0xe96   : > { %v3644_v57 = vpop.eup %3643 }
 0xe97   : > { %v1780_v49 = vadd.f32 1.0, %v3644_v57 }
 0xe99   : > { %1786 = vrot.lane.b32.xlu0 %v1784_v48, %s3925_s1  ;;  %3645 = vrcp.f32 %v1780_v49 }
 0xea3   : > { %v3646_v59 = vpop.eup %3645 }
 0xf07   : > { %v1792_v60 = vpop.permute.xlu0 %1791 }
 0xf08   : > { %v1794_v53 = vmul.f32 %v3646_v59, %v1792_v60 }
 0xf0a   : > { %1796 = vrot.lane.b32.xlu1 %v1794_v53, %s3925_s1 }
 0xf0b   : > { %v1787_v62 = vpop.permute.xlu0 %1786 }
 0xf0c   : > { %v1789_v63 = vmul.f32 %v3646_v59, %v1787_v62 }
 0xf0e   : > { %1808 = vperm.xlu1 %3639, %v1806_v61  }
 0xf12   : > { %1811 = vrot.lane.b32.xlu1 %v1695_v46, %s3926_s26  ;;  %v1970_v46 = vld [vmem:[#allocation6 + $0x10] sm:$0xff] }
 0xf16   : > { %1822 = vrot.lane.b32.xlu1 %v1784_v48, %s3925_s1 }
 0xf7c   : > { %v1797_v1 = vpop.permute.xlu1 %1796 }
 0xf7d   : > { %v1799_v2 = vadd.f32 %v1797_v1, %v1789_v63 }
 0xf7f   : > { %3647 = vtanh.f32 %v1799_v2 }
 0xf89   : > { %v3648_v3 = vpop.eup %3647 }
 0xf8a   : > { %1802 = vrot.lane.b32.xlu0 %v3648_v3, %s3925_s1 }
 0xf8d   : > { %v1809_v4 = vpop.permute.xlu1 %1808 }
 0xf8e   : > { %vm1810_vm7 = vcmp.eq.s32.totalorder %v1809_v4, 1 }
 0xf91   : > { %v1812_v5 = vpop.permute.xlu1 %1811 }
 0xf95   : > { %v1823_v9 = vpop.permute.xlu1 %1822 }
 0xf96   : > { %v1825_v10 = vsel %vm1810_vm7, %v1799_v2, %v1823_v9 }
 0xffc   : > { %v1803_v6 = vpop.permute.xlu0 %1802 }
 0xffd   : > { %v1805_v7 = vmul.f32 %v3646_v59, %v1803_v6 }
 0xfff   : > { %v1814_v8 = vsel %vm1810_vm7, %v1805_v7, %v1812_v5 }
0x1000   : > { %1816 = vrot.lane.b32.xlu0 %v1814_v8, %s3926_s26 }
0x1004   : > { %1827 = vrot.lane.b32.xlu0 %v1825_v10, %s3927_s14  ;;  %v2189_v10 = vstv %s2188_s12 }
0x1005   : > { %vm2190_vm12 = vcmp.lt.s32.totalorder %v2189_v10, %v4322_v39 }
0x1072   : > { %v1817_v11 = vpop.permute.xlu0 %1816 }
0x1073   : > { %1819 = vst.msk [vmem:[#allocation2] sm:$0xff] %vm1700_vm3, %v1817_v11 }
0x1076   : > { %v1828_v12 = vpop.permute.xlu0 %1827 }
0x1077   : > { %1830 = vst.msk [vmem:[#allocation3] sm:$0xff] %vm1700_vm3, %v1828_v12  ;;  %v2220_v12 = vsel %vm2190_vm12, 1, %v3924_v54 }
0x107a   : > { %v1833_v13 = vld [vmem:[#allocation2] sm:$0xff] }
0x107b   : > { %3259 = vmatmul.mubr.msk.f32.vlgmr.msra.gmra.mrb[0].mxu1 %vm1700_vm3, %v1833_v13 }
0x107c   : > { %3417 = vmatpush3.bf16.msra.mxu1 %v4491_v42  ;;  %3280 = vmatprep.mubr.msk.f32.mxu1 %vm3922_vm5, %v3923_v44 }
0x107d   : > { %3418 = vmatprep.subr.bf16.mxu1 %v3921_v41 }
0x107e   : > { %v1922_v14 = vld [vmem:[#allocation3] sm:$0xff] }
0x107f   : > { %1924 = vrot.lane.b32.xlu0 %v1922_v14, %s3925_s1 }
0x1080   : > { %3420 = vmatpush3.bf16.msra.mxu1 %v4499_v45  ;;  %v2082_v45 = vsel %vm2052_vm10, 1, %v3924_v54 }
0x1083   : > { %1946 = vperm.xlu0 %3640, %v1944_v23  }
0x10f1   : > { %v1925_v27 = vpop.permute.xlu0 %1924 }
0x1102   : > { %v1947_v32 = vpop.permute.xlu0 %1946 }
0x1103   : > { %vm1948_vm9 = vcmp.eq.s32.totalorder %v1947_v32, 1 }
0x114e   : > { %v1907_v16 = vpop.f32.mrb[0].mxu1 }
0x114f   : > { %v1911_v17 = vadd.f32 %v1907_v16, %v1832_v15  ;;  %v3260_v18 = vpop.f32.mrb[1].mxu1 }
0x1151   : > { %3649 = vtanh.f32 %v1911_v17  ;;  %v3125_v19 = vmul.f32 -1.442695, %v1911_v17 }
0x1153   : > { %3651 = vpow2.f32 %v3125_v19 }
0x115b   : > { %v3650_v0 = vpop.eup %3649 }
0x115c   : > { %1929 = vrot.lane.b32.xlu1 %v3650_v0, %s3925_s1 }
0x115d   : > { %v3652_v20 = vpop.eup %3651 }
0x115e   : > { %v1918_v21 = vadd.f32 1.0, %v3652_v20 }
0x1160   : > { %3653 = vrcp.f32 %v1918_v21 }
0x116a   : > { %v3654_v24 = vpop.eup %3653 }
0x116b   : > { %v1927_v28 = vmul.f32 %v3654_v24, %v1925_v27 }
0x11ce   : > { %v1930_v25 = vpop.permute.xlu1 %1929 }
0x11cf   : > { %v1932_v26 = vmul.f32 %v3654_v24, %v1930_v25 }
0x11d1   : > { %1934 = vrot.lane.b32.xlu1 %v1932_v26, %s3925_s1 }
0x1243   : > { %v1935_v29 = vpop.permute.xlu1 %1934 }
0x1244   : > { %v1937_v30 = vadd.f32 %v1935_v29, %v1927_v28 }
0x1246   : > { %3655 = vtanh.f32 %v1937_v30 }
0x1250   : > { %v3656_v31 = vpop.eup %3655 }
0x1251   : > { %1940 = vrot.lane.b32.xlu1 %v3656_v31, %s3925_s1 }
0x1255   : > { %1949 = vrot.lane.b32.xlu1 %v1833_v13, %s3926_s26  ;;  %v2108_v13 = vld [vmem:[#allocation6 + $0x18] sm:$0xff] }
0x1259   : > { %1960 = vrot.lane.b32.xlu1 %v1922_v14, %s3925_s1 }
0x12c3   : > { %v1941_v33 = vpop.permute.xlu1 %1940 }
0x12c4   : > { %v1943_v34 = vmul.f32 %v3654_v24, %v1941_v33 }
0x12c7   : > { %v1950_v35 = vpop.permute.xlu1 %1949 }
0x12c8   : > { %v1952_v36 = vsel %vm1948_vm9, %v1943_v34, %v1950_v35 }
0x12c9   : > { %1954 = vrot.lane.b32.xlu0 %v1952_v36, %s3926_s26 }
0x12cb   : > { %v1961_v37 = vpop.permute.xlu1 %1960 }
0x12cc   : > { %v1963_v38 = vsel %vm1948_vm9, %v1937_v30, %v1961_v37 }
0x12cd   : > { %1965 = vrot.lane.b32.xlu0 %v1963_v38, %s3927_s14 }
0x133b   : > { %v1955_v40 = vpop.permute.xlu0 %1954 }
0x133c   : > { %1957 = vst.msk [vmem:[#allocation2] sm:$0xff] %vm1700_vm3, %v1955_v40 }
0x133f   : > { %v1966_v41 = vpop.permute.xlu0 %1965 }
0x1340   : > { %1968 = vst.msk [vmem:[#allocation3] sm:$0xff] %vm1700_vm3, %v1966_v41 }
0x1343   : > { %v1971_v42 = vld [vmem:[#allocation2] sm:$0xff] }
0x1344   : > { %3270 = vmatmul.mubr.msk.f32.vlgmr.msra.gmra.mrb[2].mxu0 %vm1700_vm3, %v1971_v42 }
0x1347   : > { %v2060_v44 = vld [vmem:[#allocation3] sm:$0xff] }
0x1348   : > { %2062 = vrot.lane.b32.xlu0 %v2060_v44, %s3925_s1 }
0x134c   : > { %2084 = vperm.xlu0 %3640, %v2082_v45  }
0x1350   : > { %2087 = vrot.lane.b32.xlu0 %v1971_v42, %s3926_s26 }
0x1354   : > { %2098 = vrot.lane.b32.xlu0 %v2060_v44, %s3925_s1 }
0x13ba   : > { %v2063_v59 = vpop.permute.xlu0 %2062 }
0x13cb   : > { %v2085_v63 = vpop.permute.xlu0 %2084 }
0x13cc   : > { %vm2086_vm11 = vcmp.eq.s32.totalorder %v2085_v63, 1 }
0x13cf   : > { %v2088_v1 = vpop.permute.xlu0 %2087 }
0x13d3   : > { %v2099_v5 = vpop.permute.xlu0 %2098 }
0x1417   : > { %v2045_v50 = vpop.f32.mrb[2].mxu0 }
0x1418   : > { %v2049_v47 = vadd.f32 %v2045_v50, %v1970_v46  ;;  %v3271_v51 = vpop.f32.mrb[3].mxu0 }
0x141a   : > { %3657 = vtanh.f32 %v2049_v47  ;;  %v3127_v55 = vmul.f32 -1.442695, %v2049_v47 }
0x141c   : > { %3659 = vpow2.f32 %v3127_v55 }
0x1424   : > { %v3658_v52 = vpop.eup %3657 }
0x1425   : > { %2067 = vrot.lane.b32.xlu1 %v3658_v52, %s3925_s1 }
0x1426   : > { %v3660_v48 = vpop.eup %3659 }
0x1427   : > { %v2056_v56 = vadd.f32 1.0, %v3660_v48 }
0x1429   : > { %3661 = vrcp.f32 %v2056_v56 }
0x1433   : > { %v3662_v57 = vpop.eup %3661 }
0x1434   : > { %v2065_v60 = vmul.f32 %v3662_v57, %v2063_v59 }
0x1497   : > { %v2068_v49 = vpop.permute.xlu1 %2067 }
0x1498   : > { %v2070_v58 = vmul.f32 %v3662_v57, %v2068_v49 }
0x149a   : > { %2072 = vrot.lane.b32.xlu1 %v2070_v58, %s3925_s1 }
0x150c   : > { %v2073_v53 = vpop.permute.xlu1 %2072 }
0x150d   : > { %v2075_v61 = vadd.f32 %v2073_v53, %v2065_v60 }
0x150f   : > { %3663 = vtanh.f32 %v2075_v61  ;;  %v2101_v6 = vsel %vm2086_vm11, %v2075_v61, %v2099_v5 }
0x1519   : > { %v3664_v62 = vpop.eup %3663 }
0x151a   : > { %2078 = vrot.lane.b32.xlu1 %v3664_v62, %s3925_s1 }
0x158c   : > { %v2079_v2 = vpop.permute.xlu1 %2078 }
0x158d   : > { %v2081_v3 = vmul.f32 %v3662_v57, %v2079_v2 }
0x158f   : > { %v2090_v4 = vsel %vm2086_vm11, %v2081_v3, %v2088_v1 }
0x1590   : > { %2092 = vrot.lane.b32.xlu1 %v2090_v4, %s3926_s26 }
0x1594   : > { %2103 = vrot.lane.b32.xlu1 %v2101_v6, %s3927_s14 }
0x1602   : > { %v2093_v7 = vpop.permute.xlu1 %2092 }
0x1603   : > { %2095 = vst.msk [vmem:[#allocation2] sm:$0xff] %vm1700_vm3, %v2093_v7 }
0x1606   : > { %v2104_v8 = vpop.permute.xlu1 %2103 }
0x1607   : > { %2106 = vst.msk [vmem:[#allocation3] sm:$0xff] %vm1700_vm3, %v2104_v8 }
0x160a   : > { %v2109_v9 = vld [vmem:[#allocation2] sm:$0xff] }
0x160b   : > { %3281 = vmatmul.mubr.msk.f32.vlgmr.msra.gmra.mrb[2].mxu1 %vm1700_vm3, %v2109_v9 }
0x160e   : > { %v2198_v11 = vld [vmem:[#allocation3] sm:$0xff] }
0x160f   : > { %2200 = vrot.lane.b32.xlu1 %v2198_v11, %s3925_s1 }
0x1613   : > { %2222 = vperm.xlu1 %3639, %v2220_v12  }
0x1617   : > { %2225 = vrot.lane.b32.xlu1 %v2109_v9, %s3926_s26 }
0x1681   : > { %v2201_v54 = vpop.permute.xlu1 %2200 }
0x1692   : > { %v2223_v27 = vpop.permute.xlu1 %2222 }
0x1693   : > { %vm2224_vm13 = vcmp.eq.s32.totalorder %v2223_v27, 1 }
0x1696   : > { %v2226_v30 = vpop.permute.xlu1 %2225 }
0x16de   : > { %v2183_v14 = vpop.f32.mrb[2].mxu1 }
0x16df   : > { %v2187_v15 = vadd.f32 %v2183_v14, %v2108_v13  ;;  %v3282_v16 = vpop.f32.mrb[3].mxu1 }
0x16e1   : > { %3665 = vtanh.f32 %v2187_v15  ;;  %v3129_v18 = vmul.f32 -1.442695, %v2187_v15 }
0x16e3   : > { %3667 = vpow2.f32 %v3129_v18 }
0x16eb   : > { %v3666_v17 = vpop.eup %3665 }
0x16ec   : > { %2205 = vrot.lane.b32.xlu0 %v3666_v17, %s3925_s1 }
0x16ed   : > { %v3668_v0 = vpop.eup %3667 }
0x16ee   : > { %v2194_v19 = vadd.f32 1.0, %v3668_v0 }
0x16f0   : > { %3669 = vrcp.f32 %v2194_v19 }
0x16fa   : > { %v3670_v20 = vpop.eup %3669 }
0x16fb   : > { %v2203_v23 = vmul.f32 %v3670_v20, %v2201_v54 }
0x175e   : > { %v2206_v21 = vpop.permute.xlu0 %2205 }
0x175f   : > { %v2208_v22 = vmul.f32 %v3670_v20, %v2206_v21 }
0x1761   : > { %2210 = vrot.lane.b32.xlu0 %v2208_v22, %s3925_s1 }
0x17d3   : > { %v2211_v24 = vpop.permute.xlu0 %2210 }
0x17d4   : > { %v2213_v25 = vadd.f32 %v2211_v24, %v2203_v23 }
0x17d6   : > { %3671 = vtanh.f32 %v2213_v25 }
0x17e0   : > { %v3672_v26 = vpop.eup %3671 }
0x17e1   : > { %2216 = vrot.lane.b32.xlu0 %v3672_v26, %s3925_s1 }
0x17e5   : > { %2236 = vrot.lane.b32.xlu0 %v2198_v11, %s3925_s1 }
0x1853   : > { %v2217_v28 = vpop.permute.xlu0 %2216 }
0x1854   : > { %v2219_v29 = vmul.f32 %v3670_v20, %v2217_v28 }
0x1856   : > { %v2228_v31 = vsel %vm2224_vm13, %v2219_v29, %v2226_v30 }
0x1857   : > { %2230 = vrot.lane.b32.xlu1 %v2228_v31, %s3926_s26  ;;  %v2237_v32 = vpop.permute.xlu0 %2236 }
0x1858   : > { %v2239_v33 = vsel %vm2224_vm13, %v2213_v25, %v2237_v32 }
0x1859   : > { %2241 = vrot.lane.b32.xlu0 %v2239_v33, %s3927_s14 }
0x18c9   : > { %v2231_v34 = vpop.permute.xlu1 %2230 }
0x18ca   : > { %2233 = vst.msk [vmem:[#allocation2] sm:$0xff] %vm1700_vm3, %v2231_v34 }
0x18cb   : > { %v2242_v35 = vpop.permute.xlu0 %2241 }
0x18cc   : > { %2244 = vst.msk [vmem:[#allocation3] sm:$0xff] %vm1700_vm3, %v2242_v35 }
0x18cd PF: > { %p2246_p0 = pnand %p3094_p4, %p585_p3 }
0x18ce   : > { %v2253_v36 = vld [vmem:[#allocation15] sm:$0xff] (!%p2246_p0)  ;;  %v2254_v37 = vld [vmem:[#allocation15 + $0x8] sm:$0xff] (!%p2246_p0)  ;;  %v2255_v38 = vld [vmem:[#allocation15 + $0x10] sm:$0xff] (!%p2246_p0)  ;;  %v3928_v40 = vmov (!%p2246_p0), 0.0|0.0   ;;  %vm3929_vm14 = vmmov (!%p2246_p0), 0   ;;  %v3930_v43 = vmov (!%p2246_p0), 0.0  }
0x18cf   : > { %2249 = sbr.rel (%p2246_p0) target bundleno = 9201 (0x23f1), region = 116  ;;  %3421 = vmatprep.subr.bf16.mxu0 (!%p2246_p0), %v3928_v40  ;;  %v4583_v41 = vpack.c.bf16 (!%p2246_p0), %v2254_v37, %v2253_v36  ;;  %v2256_v42 = vld [vmem:[#allocation15 + $0x18] sm:$0xff] (!%p2246_p0)  ;;  %3291 = vmatprep.mubr.msk.f32.mxu0 (!%p2246_p0), %vm3929_vm14, %v3930_v43  ;;  %v2252_v45 = vld [vmem:[#allocation4] sm:$0xff] (!%p2246_p0)  ;;  %vm2257_vm15 = vcmask (!%p2246_p0), 261120   ;;  %v3931_v52 = vmov (!%p2246_p0), 0   ;;  %s3932_s21 = smov (!%p2246_p0), 32  }
0x18d0   : > { %3427 = vmatprep.subr.bf16.mxu1 (!%p2246_p0), %v3928_v40  ;;  %3302 = vmatprep.mubr.msk.f32.mxu1 (!%p2246_p0), %vm3929_vm14, %v3930_v43  ;;  %v4591_v44 = vpack.c.bf16 (!%p2246_p0), %v2256_v42, %v2255_v38  ;;  %v2251_v46 = vld [vmem:[#allocation7 + $0x18] sm:$0xff] (!%p2246_p0)  ;;  %s2332_s22 = sadd.s32 (!%p2246_p0), 3, %s4260_s18  ;;  %s3933_s15 = smov (!%p2246_p0), 64   ;;  %v2390_v15 = vld [vmem:[#allocation7 + $0x10] sm:$0xff] (!%p2246_p0) }
0x18d1   : > { %3423 = vmatpush3.bf16.msra.mxu0 (!%p2246_p0), %v4583_v41  ;;  %3429 = vmatpush3.bf16.msra.mxu1 (!%p2246_p0), %v4583_v41  ;;  %v2342_v48 = vld [vmem:[#allocation5] sm:$0xff] (!%p2246_p0)  ;;  %v2333_v58 = vstv (!%p2246_p0), %s2332_s22  ;;  %s3934_s17 = smov (!%p2246_p0), 96   ;;  %s2470_s28 = sadd.s32 (!%p2246_p0), 2, %s4260_s18 }
0x18d2   : > { %3424 = vmatprep.subr.bf16.mxu0 (!%p2246_p0), %v3928_v40  ;;  %3430 = vmatprep.subr.bf16.mxu1 (!%p2246_p0), %v3928_v40  ;;  %vm2334_vm0 = vcmp.lt.s32.totalorder (!%p2246_p0), %v2333_v58, %v4322_v39  ;;  %v2471_v22 = vstv (!%p2246_p0), %s2470_s28  ;;  %s2608_s27 = sadd.s32 (!%p2246_p0), 1, %s4260_s18 }
0x18d3   : > { %3673 = vset.pattern.permute.xlu1 (!%p2246_p0), %v3931_v52  ;;  %3674 = vset.pattern.permute.xlu0 (!%p2246_p0), %v3931_v52  ;;  %v2364_v61 = vsel (!%p2246_p0), %vm2334_vm0, 1, %v3931_v52  ;;  %vm2472_vm2 = vcmp.lt.s32.totalorder (!%p2246_p0), %v2471_v22, %v4322_v39  ;;  %v2609_v42 = vstv (!%p2246_p0), %s2608_s27 }
0x18d4   : > { %v2502_v54 = vsel (!%p2246_p0), %vm2472_vm2, 1, %v3931_v52  ;;  %vm2610_vm5 = vcmp.lt.s32.totalorder (!%p2246_p0), %v2609_v42, %v4322_v39 }
0x18d5   : > { %3426 = vmatpush3.bf16.msra.mxu0 (!%p2246_p0), %v4591_v44  ;;  %3432 = vmatpush3.bf16.msra.mxu1 (!%p2246_p0), %v4591_v44 }
0x18d6   : > { %3433 = vmatprep.subr.bf16.mxu0 %v3928_v40  ;;  %3439 = vmatprep.subr.bf16.mxu1 %v3928_v40 }
0x18d8   : > { %3292 = vmatmul.mubr.msk.f32.vlgmr.msra.gmra.mrb[0].mxu0 %vm2257_vm15, %v2252_v45 }
0x18d9   : > { %3435 = vmatpush3.bf16.msra.mxu0 %v4583_v41  ;;  %3313 = vmatprep.mubr.msk.f32.mxu0 %vm3929_vm14, %v3930_v43 }
0x18da   : > { %3436 = vmatprep.subr.bf16.mxu0 %v3928_v40 }
0x18dd   : > { %3438 = vmatpush3.bf16.msra.mxu0 %v4591_v44 }
0x19ab   : > { %v2327_v50 = vpop.f32.mrb[0].mxu0 }
0x19ac   : > { %v2331_v47 = vadd.f32 %v2327_v50, %v2251_v46  ;;  %v3293_v51 = vpop.f32.mrb[1].mxu0 }
0x19ae   : > { %3675 = vtanh.f32 %v2331_v47  ;;  %v3131_v56 = vmul.f32 -1.442695, %v2331_v47 }
0x19b0   : > { %3677 = vpow2.f32 %v3131_v56 }
0x19b8   : > { %v3676_v55 = vpop.eup %3675 }
0x19b9   : > { %2349 = vrot.lane.b32.xlu0 %v3676_v55, %s3932_s21 }
0x19ba   : > { %v3678_v57 = vpop.eup %3677 }
0x19bb   : > { %v2338_v49 = vadd.f32 1.0, %v3678_v57 }
0x19bd   : > { %2344 = vrot.lane.b32.xlu0 %v2342_v48, %s3932_s21  ;;  %3679 = vrcp.f32 %v2338_v49 }
0x19c7   : > { %v3680_v59 = vpop.eup %3679 }
0x1a2b   : > { %v2350_v60 = vpop.permute.xlu0 %2349 }
0x1a2c   : > { %v2352_v53 = vmul.f32 %v3680_v59, %v2350_v60 }
0x1a2e   : > { %2354 = vrot.lane.b32.xlu1 %v2352_v53, %s3932_s21 }
0x1a2f   : > { %v2345_v62 = vpop.permute.xlu0 %2344 }
0x1a30   : > { %v2347_v63 = vmul.f32 %v3680_v59, %v2345_v62 }
0x1a32   : > { %2366 = vperm.xlu1 %3673, %v2364_v61  }
0x1a36   : > { %2369 = vrot.lane.b32.xlu1 %v2252_v45, %s3933_s15  ;;  %v2528_v45 = vld [vmem:[#allocation7 + $0x8] sm:$0xff] }
0x1a3a   : > { %2380 = vrot.lane.b32.xlu1 %v2342_v48, %s3932_s21 }
0x1aa0   : > { %v2355_v1 = vpop.permute.xlu1 %2354 }
0x1aa1   : > { %v2357_v2 = vadd.f32 %v2355_v1, %v2347_v63 }
0x1aa3   : > { %3681 = vtanh.f32 %v2357_v2 }
0x1aad   : > { %v3682_v3 = vpop.eup %3681 }
0x1aae   : > { %2360 = vrot.lane.b32.xlu0 %v3682_v3, %s3932_s21 }
0x1ab1   : > { %v2367_v4 = vpop.permute.xlu1 %2366 }
0x1ab2   : > { %vm2368_vm1 = vcmp.eq.s32.totalorder %v2367_v4, 1 }
0x1ab5   : > { %v2370_v5 = vpop.permute.xlu1 %2369 }
0x1ab9   : > { %v2381_v9 = vpop.permute.xlu1 %2380 }
0x1aba   : > { %v2383_v10 = vsel %vm2368_vm1, %v2357_v2, %v2381_v9 }
0x1b20   : > { %v2361_v6 = vpop.permute.xlu0 %2360 }
0x1b21   : > { %v2363_v7 = vmul.f32 %v3680_v59, %v2361_v6 }
0x1b23   : > { %v2372_v8 = vsel %vm2368_vm1, %v2363_v7, %v2370_v5 }
0x1b24   : > { %2374 = vrot.lane.b32.xlu0 %v2372_v8, %s3933_s15 }
0x1b28   : > { %2385 = vrot.lane.b32.xlu0 %v2383_v10, %s3934_s17  ;;  %v2745_v10 = vstv %s4260_s18 }
0x1b29   : > { %vm2746_vm6 = vcmp.lt.s32.totalorder %v2745_v10, %v4322_v39 }
0x1b96   : > { %v2375_v11 = vpop.permute.xlu0 %2374 }
0x1b97   : > { %2377 = vst.msk [vmem:[#allocation4] sm:$0xff] %vm2257_vm15, %v2375_v11 }
0x1b9a   : > { %v2386_v12 = vpop.permute.xlu0 %2385 }
0x1b9b   : > { %2388 = vst.msk [vmem:[#allocation5] sm:$0xff] %vm2257_vm15, %v2386_v12  ;;  %v2776_v12 = vsel %vm2746_vm6, 1, %v3931_v52 }
0x1b9e   : > { %v2391_v13 = vld [vmem:[#allocation4] sm:$0xff] }
0x1b9f   : > { %3303 = vmatmul.mubr.msk.f32.vlgmr.msra.gmra.mrb[0].mxu1 %vm2257_vm15, %v2391_v13 }
0x1ba0   : > { %3441 = vmatpush3.bf16.msra.mxu1 %v4583_v41  ;;  %3324 = vmatprep.mubr.msk.f32.mxu1 %vm3929_vm14, %v3930_v43 }
0x1ba1   : > { %3442 = vmatprep.subr.bf16.mxu1 %v3928_v40 }
0x1ba2   : > { %v2480_v14 = vld [vmem:[#allocation5] sm:$0xff] }
0x1ba3   : > { %2482 = vrot.lane.b32.xlu0 %v2480_v14, %s3932_s21 }
0x1ba4   : > { %3444 = vmatpush3.bf16.msra.mxu1 %v4591_v44  ;;  %v2640_v44 = vsel %vm2610_vm5, 1, %v3931_v52 }
0x1ba7   : > { %2504 = vperm.xlu0 %3674, %v2502_v54  }
0x1c15   : > { %v2483_v26 = vpop.permute.xlu0 %2482 }
0x1c26   : > { %v2505_v31 = vpop.permute.xlu0 %2504 }
0x1c27   : > { %vm2506_vm4 = vcmp.eq.s32.totalorder %v2505_v31, 1 }
0x1c72   : > { %v2465_v16 = vpop.f32.mrb[0].mxu1 }
0x1c73   : > { %v2469_v17 = vadd.f32 %v2465_v16, %v2390_v15  ;;  %v3304_v18 = vpop.f32.mrb[1].mxu1 }
0x1c75   : > { %3683 = vtanh.f32 %v2469_v17  ;;  %v3133_v19 = vmul.f32 -1.442695, %v2469_v17 }
0x1c77   : > { %3685 = vpow2.f32 %v3133_v19 }
0x1c7f   : > { %v3684_v0 = vpop.eup %3683 }
0x1c80   : > { %2487 = vrot.lane.b32.xlu1 %v3684_v0, %s3932_s21 }
0x1c81   : > { %v3686_v20 = vpop.eup %3685 }
0x1c82   : > { %v2476_v21 = vadd.f32 1.0, %v3686_v20 }
0x1c84   : > { %3687 = vrcp.f32 %v2476_v21 }
0x1c8e   : > { %v3688_v23 = vpop.eup %3687 }
0x1c8f   : > { %v2485_v27 = vmul.f32 %v3688_v23, %v2483_v26 }
0x1cf2   : > { %v2488_v24 = vpop.permute.xlu1 %2487 }
0x1cf3   : > { %v2490_v25 = vmul.f32 %v3688_v23, %v2488_v24 }
0x1cf5   : > { %2492 = vrot.lane.b32.xlu1 %v2490_v25, %s3932_s21 }
0x1d67   : > { %v2493_v28 = vpop.permute.xlu1 %2492 }
0x1d68   : > { %v2495_v29 = vadd.f32 %v2493_v28, %v2485_v27 }
0x1d6a   : > { %3689 = vtanh.f32 %v2495_v29 }
0x1d74   : > { %v3690_v30 = vpop.eup %3689 }
0x1d75   : > { %2498 = vrot.lane.b32.xlu1 %v3690_v30, %s3932_s21 }
0x1d79   : > { %2507 = vrot.lane.b32.xlu1 %v2391_v13, %s3933_s15  ;;  %v2665_v13 = vld [vmem:[#allocation7] sm:$0xff] }
0x1d7d   : > { %2518 = vrot.lane.b32.xlu1 %v2480_v14, %s3932_s21 }
0x1de7   : > { %v2499_v32 = vpop.permute.xlu1 %2498 }
0x1de8   : > { %v2501_v33 = vmul.f32 %v3688_v23, %v2499_v32 }
0x1deb   : > { %v2508_v34 = vpop.permute.xlu1 %2507 }
0x1dec   : > { %v2510_v35 = vsel %vm2506_vm4, %v2501_v33, %v2508_v34 }
0x1ded   : > { %2512 = vrot.lane.b32.xlu0 %v2510_v35, %s3933_s15 }
0x1def   : > { %v2519_v36 = vpop.permute.xlu1 %2518 }
0x1df0   : > { %v2521_v37 = vsel %vm2506_vm4, %v2495_v29, %v2519_v36 }
0x1df1   : > { %2523 = vrot.lane.b32.xlu0 %v2521_v37, %s3934_s17 }
0x1e5f   : > { %v2513_v38 = vpop.permute.xlu0 %2512 }
0x1e60   : > { %2515 = vst.msk [vmem:[#allocation4] sm:$0xff] %vm2257_vm15, %v2513_v38 }
0x1e63   : > { %v2524_v40 = vpop.permute.xlu0 %2523 }
0x1e64   : > { %2526 = vst.msk [vmem:[#allocation5] sm:$0xff] %vm2257_vm15, %v2524_v40 }
0x1e67   : > { %v2529_v41 = vld [vmem:[#allocation4] sm:$0xff] }
0x1e68   : > { %3314 = vmatmul.mubr.msk.f32.vlgmr.msra.gmra.mrb[2].mxu0 %vm2257_vm15, %v2529_v41 }
0x1e6b   : > { %v2618_v43 = vld [vmem:[#allocation5] sm:$0xff] }
0x1e6c   : > { %2620 = vrot.lane.b32.xlu0 %v2618_v43, %s3932_s21 }
0x1e70   : > { %2642 = vperm.xlu0 %3674, %v2640_v44  }
0x1e74   : > { %2645 = vrot.lane.b32.xlu0 %v2529_v41, %s3933_s15 }
0x1e78   : > { %2656 = vrot.lane.b32.xlu0 %v2618_v43, %s3932_s21 }
0x1ede   : > { %v2621_v59 = vpop.permute.xlu0 %2620 }
0x1eef   : > { %v2643_v63 = vpop.permute.xlu0 %2642 }
0x1ef0   : > { %vm2644_vm3 = vcmp.eq.s32.totalorder %v2643_v63, 1 }
0x1ef3   : > { %v2646_v1 = vpop.permute.xlu0 %2645 }
0x1ef7   : > { %v2657_v5 = vpop.permute.xlu0 %2656 }
0x1f3b   : > { %v2603_v46 = vpop.f32.mrb[2].mxu0 }
0x1f3c   : > { %v2607_v50 = vadd.f32 %v2603_v46, %v2528_v45  ;;  %v3315_v47 = vpop.f32.mrb[3].mxu0 }
0x1f3e   : > { %3691 = vtanh.f32 %v2607_v50  ;;  %v3135_v55 = vmul.f32 -1.442695, %v2607_v50 }
0x1f40   : > { %3693 = vpow2.f32 %v3135_v55 }
0x1f48   : > { %v3692_v51 = vpop.eup %3691 }
0x1f49   : > { %2625 = vrot.lane.b32.xlu1 %v3692_v51, %s3932_s21 }
0x1f4a   : > { %v3694_v48 = vpop.eup %3693 }
0x1f4b   : > { %v2614_v56 = vadd.f32 1.0, %v3694_v48 }
0x1f4d   : > { %3695 = vrcp.f32 %v2614_v56 }
0x1f57   : > { %v3696_v57 = vpop.eup %3695 }
0x1f58   : > { %v2623_v60 = vmul.f32 %v3696_v57, %v2621_v59 }
0x1fbb   : > { %v2626_v49 = vpop.permute.xlu1 %2625 }
0x1fbc   : > { %v2628_v58 = vmul.f32 %v3696_v57, %v2626_v49 }
0x1fbe   : > { %2630 = vrot.lane.b32.xlu1 %v2628_v58, %s3932_s21 }
0x2030   : > { %v2631_v53 = vpop.permute.xlu1 %2630 }
0x2031   : > { %v2633_v61 = vadd.f32 %v2631_v53, %v2623_v60 }
0x2033   : > { %3697 = vtanh.f32 %v2633_v61  ;;  %v2659_v6 = vsel %vm2644_vm3, %v2633_v61, %v2657_v5 }
0x203d   : > { %v3698_v62 = vpop.eup %3697 }
0x203e   : > { %2636 = vrot.lane.b32.xlu1 %v3698_v62, %s3932_s21 }
0x20b0   : > { %v2637_v2 = vpop.permute.xlu1 %2636 }
0x20b1   : > { %v2639_v3 = vmul.f32 %v3696_v57, %v2637_v2 }
0x20b3   : > { %v2648_v4 = vsel %vm2644_vm3, %v2639_v3, %v2646_v1 }
0x20b4   : > { %2650 = vrot.lane.b32.xlu1 %v2648_v4, %s3933_s15 }
0x20b8   : > { %2661 = vrot.lane.b32.xlu1 %v2659_v6, %s3934_s17 }
0x2126   : > { %v2651_v7 = vpop.permute.xlu1 %2650 }
0x2127   : > { %2653 = vst.msk [vmem:[#allocation4] sm:$0xff] %vm2257_vm15, %v2651_v7 }
0x212a   : > { %v2662_v8 = vpop.permute.xlu1 %2661 }
0x212b   : > { %2664 = vst.msk [vmem:[#allocation5] sm:$0xff] %vm2257_vm15, %v2662_v8 }
0x212e   : > { %v2666_v9 = vld [vmem:[#allocation4] sm:$0xff] }
0x212f   : > { %3325 = vmatmul.mubr.msk.f32.vlgmr.msra.gmra.mrb[2].mxu1 %vm2257_vm15, %v2666_v9 }
0x2132   : > { %v2754_v11 = vld [vmem:[#allocation5] sm:$0xff] }
0x2133   : > { %2756 = vrot.lane.b32.xlu1 %v2754_v11, %s3932_s21 }
0x2137   : > { %2778 = vperm.xlu1 %3673, %v2776_v12  }
0x213b   : > { %2781 = vrot.lane.b32.xlu1 %v2666_v9, %s3933_s15 }
0x21a5   : > { %v2757_v52 = vpop.permute.xlu1 %2756 }
0x21b6   : > { %v2779_v25 = vpop.permute.xlu1 %2778 }
0x21b7   : > { %vm2780_vm7 = vcmp.eq.s32.totalorder %v2779_v25, 1 }
0x21ba   : > { %v2782_v28 = vpop.permute.xlu1 %2781 }
0x2202   : > { %v2740_v14 = vpop.f32.mrb[2].mxu1 }
0x2203   : > { %v2744_v15 = vadd.f32 %v2740_v14, %v2665_v13  ;;  %v3326_v16 = vpop.f32.mrb[3].mxu1 }
0x2205   : > { %3699 = vtanh.f32 %v2744_v15  ;;  %v3137_v18 = vmul.f32 -1.442695, %v2744_v15 }
0x2207   : > { %3701 = vpow2.f32 %v3137_v18 }
0x220f   : > { %v3700_v17 = vpop.eup %3699 }
0x2210   : > { %2761 = vrot.lane.b32.xlu0 %v3700_v17, %s3932_s21 }
0x2211   : > { %v3702_v0 = vpop.eup %3701 }
0x2212   : > { %v2750_v39 = vadd.f32 1.0, %v3702_v0 }
0x2214   : > { %3703 = vrcp.f32 %v2750_v39 }
0x221e   : > { %v3704_v19 = vpop.eup %3703 }
0x221f   : > { %v2759_v22 = vmul.f32 %v3704_v19, %v2757_v52 }
0x2282   : > { %v2762_v20 = vpop.permute.xlu0 %2761 }
0x2283   : > { %v2764_v21 = vmul.f32 %v3704_v19, %v2762_v20 }
0x2285   : > { %2766 = vrot.lane.b32.xlu0 %v2764_v21, %s3932_s21 }
0x22f7   : > { %v2767_v54 = vpop.permute.xlu0 %2766 }
0x22f8   : > { %v2769_v23 = vadd.f32 %v2767_v54, %v2759_v22 }
0x22fa   : > { %3705 = vtanh.f32 %v2769_v23 }
0x2304   : > { %v3706_v24 = vpop.eup %3705 }
0x2305   : > { %2772 = vrot.lane.b32.xlu0 %v3706_v24, %s3932_s21 }
0x2309   : > { %2792 = vrot.lane.b32.xlu0 %v2754_v11, %s3932_s21 }
0x2377   : > { %v2773_v26 = vpop.permute.xlu0 %2772 }
0x2378   : > { %v2775_v27 = vmul.f32 %v3704_v19, %v2773_v26 }
0x237a   : > { %v2784_v29 = vsel %vm2780_vm7, %v2775_v27, %v2782_v28 }
0x237b   : > { %2786 = vrot.lane.b32.xlu1 %v2784_v29, %s3933_s15  ;;  %v2793_v30 = vpop.permute.xlu0 %2792 }
0x237c   : > { %v2795_v31 = vsel %vm2780_vm7, %v2769_v23, %v2793_v30 }
0x237d   : > { %2797 = vrot.lane.b32.xlu0 %v2795_v31, %s3934_s17 }
0x23ed   : > { %v2787_v32 = vpop.permute.xlu1 %2786 }
0x23ee   : > { %2789 = vst.msk [vmem:[#allocation4] sm:$0xff] %vm2257_vm15, %v2787_v32 }
0x23ef   : > { %v2798_v33 = vpop.permute.xlu0 %2797 }
0x23f0   : > { %2800 = vst.msk [vmem:[#allocation5] sm:$0xff] %vm2257_vm15, %v2798_v33 }
0x23f1 PF: > { %p3138_p5 = scmp.ne.s32.totalorder %s4044_s0, 1 }
0x23f2   : > { %s4753_s23 = sld [smem:[#allocation24_spill]] (!%p3138_p5)  ;;  %s4755_s29 = sld [smem:[#allocation23_spill]] (!%p3138_p5)  ;;  %v3935_v37 = vmov (!%p3138_p5), 0.0|0.0   ;;  %vm3936_vm8 = vmmov (!%p3138_p5), 0   ;;  %v3937_v46 = vmov (!%p3138_p5), 0.0   ;;  %vm2815_vm9 = vcmask (!%p3138_p5), 261120  }
0x23f3   : > { %2804 = sbr.rel (%p3138_p5) target bundleno = 9436 (0x24dc), region = 120  ;;  %3445 = vmatprep.subr.bf16.mxu0 (!%p3138_p5), %v3935_v37  ;;  %3451 = vmatprep.subr.bf16.mxu1 (!%p3138_p5), %v3935_v37  ;;  %v2805_v55 = vld [vmem:[#allocation2] sm:$0xff] (!%p3138_p5)  ;;  %s4756_s20 = sld [smem:[#allocation25_spill]] (!%p3138_p5)  ;;  %vm2970_vm10 = vcmask (!%p3138_p5), 31744  }
0x23f4   : > { %3335 = vmatprep.mubr.msk.f32.mxu0 (!%p3138_p5), %vm3936_vm8, %v3937_v46  ;;  %3346 = vmatprep.mubr.msk.f32.mxu1 (!%p3138_p5), %vm3936_vm8, %v3937_v46  ;;  %s4757_s14 = sld [smem:[#allocation26_spill]] (!%p3138_p5) }
0x23f5   : > { %v2810_v51 = vld [vmem:[#allocation4] sm:$0xff] (!%p3138_p5) }
0x23f8   : > { %s4754_s30 = smov (!%p3138_p5), %s4753_s23  ;;  %v2811_v34 = vld [vmem:[%s4753_s23] sm:$0xff] (!%p3138_p5)  ;;  %v2807_v40 = vld [vmem:[%s4755_s29 + $0x8] sm:$0xff] (!%p3138_p5)  ;;  %v2808_v44 = vld [vmem:[%s4755_s29 + $0x10] sm:$0xff] (!%p3138_p5) }
0x23f9   : > { %v2812_v35 = vld [vmem:[%s4754_s30 + $0x8] sm:$0xff] (!%p3138_p5)  ;;  %v2806_v36 = vld [vmem:[%s4755_s29] sm:$0xff] (!%p3138_p5)  ;;  %v2813_v41 = vld [vmem:[%s4754_s30 + $0x10] sm:$0xff] (!%p3138_p5) }
0x23fa   : > { %v3446_v38 = vpack.c.bf16 %v2812_v35, %v2811_v34  ;;  %v2814_v42 = vld [vmem:[%s4754_s30 + $0x18] sm:$0xff]  ;;  %v3452_v43 = vpack.c.bf16 %v2807_v40, %v2806_v36  ;;  %v3141_v57 = vld [vmem:[%s4756_s20] ss:$0 sm:$0xff] }
0x23fb   : > { %v2809_v45 = vld [vmem:[%s4755_s29 + $0x18] sm:$0xff]  ;;  %v3449_v50 = vpack.c.bf16 %v2814_v42, %v2813_v41 }
0x23fc   : > { %3447 = vmatpush3.bf16.msra.mxu0 %v3446_v38  ;;  %3453 = vmatpush3.bf16.msra.mxu1 %v3452_v43  ;;  %v3455_v47 = vpack.c.bf16 %v2809_v45, %v2808_v44 }
0x23fd   : > { %3448 = vmatprep.subr.bf16.mxu0 %v3935_v37  ;;  %3454 = vmatprep.subr.bf16.mxu1 %v3935_v37 }
0x2400   : > { %3450 = vmatpush3.bf16.msra.mxu0 %v3449_v50  ;;  %3456 = vmatpush3.bf16.msra.mxu1 %v3455_v47 }
0x2403   : > { %3336 = vmatmul.mubr.msk.f32.vlgmr.msra.gmra.mrb[0].mxu0 %vm2815_vm9, %v2810_v51  ;;  %3347 = vmatmul.mubr.msk.f32.vlgmr.msra.gmra.mrb[0].mxu1 %vm2815_vm9, %v2805_v55 }
0x24d6   : > { %v2885_v48 = vpop.f32.mrb[0].mxu0  ;;  %v2958_v56 = vpop.f32.mrb[0].mxu1 }
0x24d7   : > { %v3337_v49 = vpop.f32.mrb[1].mxu0  ;;  %v2959_v58 = vadd.f32 %v2958_v56, %v2885_v48  ;;  %v3348_v59 = vpop.f32.mrb[1].mxu1 }
0x24d9   : > { %v2969_v60 = vadd.f32 %v3141_v57, %v2959_v58 }
0x24db   : > { %2971 = vst.msk [vmem:[%s4757_s14] sm:$0xff] %vm2970_vm10, %v2969_v60 }
0x24dc PF: > { %p30_p11 = scmp.ge.s32.totalorder %s4174_s13, 4   ;;  %s4758_s23 = smov %s3895_s24 }
0x24dd   : > { %s4759_s24 = smov %s3899_s25  ;;  %s4760_s25 = smov %s4235_s16 }
0x24de   : > { %s4761_s26 = smov %s4174_s13  ;;  %32 = sbr.rel (!%p30_p11) target bundleno = 18 (0x12), region = 167 }
0x24e5   :  { %2983 = vsyncpa [#allocation11], 1 }
0x24e6   :  { %2985 = vsyncpa [#allocation11 + $0x1], 1 }
0x24e7   :  { %2986 = vsyncpa [#allocation13], 1 }
0x24e8   :  { %2987 = vsyncpa [#allocation16], 1 }

</bundles_post_ra>
